<compile_context>
chip_gen: v7x
topology: tpu7x:2x2x1
jax: 0.10.0
libtpu: 0.0.40
codegen_flags: <defaults>
</compile_context>

<pallas_src>
import jax
import jax.numpy as jnp
from jax.experimental import pallas as pl
from jax.experimental.pallas import tpu as pltpu

LANE = 128
SUBLANE = 8
_W1_BLOCK_BYTES_CAP = 6 << 20  # max bf16 bytes of one fc1 weight K-block


def _round_up(x, m):
    return ((x + m - 1) // m) * m


def _cdiv(a, b):
    return -(-a // b)


def _fc1_k_tiling(in_dim, h1_p):
    """fc1 K-tiling derived from model dims only (shared by prepare_params and
    the forward wrapper, so both always agree)."""
    in_p0 = _round_up(max(in_dim, LANE), LANE)
    w1_bytes = in_p0 * h1_p * 2  # bf16
    nk = max(1, _cdiv(w1_bytes, _W1_BLOCK_BYTES_CAP))
    tile_k = _round_up(_cdiv(in_p0, nk), LANE)
    nk = _cdiv(in_p0, tile_k)
    in_p = tile_k * nk
    return in_p, tile_k, nk


def _vmem_capacity_bytes():
    try:
        cap = int(pltpu.get_tpu_info().vmem_capacity_bytes)
        if cap > 0:
            return cap
    except Exception:
        pass
    return 64 << 20  # conservative fallback (v7x per-TensorCore VMEM)


def _vmem_working_set(tile_b, tile_k, nk, h1_p, h2_p, nc_p):
    """Rough upper bound of the kernel's VMEM working set in bytes."""
    w1_buffers = 1 if nk == 1 else 2  # resident vs pipelined over K
    fixed = (tile_k * h1_p * 2 * w1_buffers          # fc1 weight block(s), bf16
             + h1_p * h2_p * 2 + h2_p * nc_p * 2     # fc2/fc3 weights (single buffer)
             + (h1_p + h2_p + nc_p) * 4)             # biases (single buffer)
    per_row = (tile_k * 4 * 2                        # x tile f32, double-buffered
               + nc_p * 4 * 2                        # out tile f32, double-buffered
               + h1_p * 4                            # f32 fc1 accumulator scratch
               + (tile_k + h1_p + h2_p) * 2          # bf16 copies of x / h1 / h2
               + (h1_p + h2_p + nc_p) * 4)           # f32 temporaries
    return fixed + tile_b * per_row


def _pick_tile_b(B, tile_k, nk, h1_p, h2_p, nc_p, vmem_budget):
    chosen = SUBLANE
    for cand in (1024, 512, 256, 128, 64, 32, 16, 8):
        if _vmem_working_set(cand, tile_k, nk, h1_p, h2_p, nc_p) <= vmem_budget:
            chosen = cand
            break
    # Avoid rounding an awkward batch (e.g. B=300) up to 2 full max-size tiles.
    n_tiles = max(1, _cdiv(B, chosen))
    tile_b = _round_up(_cdiv(B, n_tiles), SUBLANE)
    return max(SUBLANE, min(tile_b, chosen))


# --------------------------------------------------------------------------
# Kernel: fused 3-layer MLP on one (batch tile, fc1-K block) grid point.
# Grid = (batch_tiles, k_tiles); fc1 accumulates in f32 VMEM scratch; fc2/fc3
# run on the final K step.  Weights of fc2/fc3 and all biases are VMEM-resident
# (constant index_map + Buffered(1)).
# --------------------------------------------------------------------------
def mlp_kernel(x_ref, w1_ref, b1_ref, w2_ref, b2_ref, w3_ref, b3_ref,
               o_ref, acc_ref):
    k = pl.program_id(1)

    @pl.when(k == 0)
    def _():
        acc_ref[...] = jnp.zeros_like(acc_ref)

    # fc1 partial product for this K block (bf16 x bf16 -> f32 on MXU).
    x = x_ref[...].astype(jnp.bfloat16)
    acc_ref[...] += jnp.dot(x, w1_ref[...], preferred_element_type=jnp.float32)

    @pl.when(k == pl.num_programs(1) - 1)
    def _():
        h1 = jnp.maximum(acc_ref[...] + b1_ref[...], 0.0)
        h2 = jnp.dot(h1.astype(jnp.bfloat16), w2_ref[...],
                     preferred_element_type=jnp.float32)
        h2 = jnp.maximum(h2 + b2_ref[...], 0.0)
        o = jnp.dot(h2.astype(jnp.bfloat16), w3_ref[...],
                    preferred_element_type=jnp.float32)
        o_ref[...] = (o + b3_ref[...]).astype(o_ref.dtype)


# --------------------------------------------------------------------------
# Parameter preparation: pad to lane multiples, cast weights to bf16.
# Do this ONCE per model, not per call.
# --------------------------------------------------------------------------
def prepare_params(params):
    """params: (w1, b1, w2, b2, w3, b3) with w: [in, out] f32, b: [1, out] f32."""
    w1, b1, w2, b2, w3, b3 = params
    h1_p = _round_up(w1.shape[1], LANE)          # 1200 -> 1280
    h2_p = _round_up(w2.shape[1], LANE)          # 600  -> 640
    nc_p = _round_up(w3.shape[1], LANE)          # num_classes -> 128
    in_p, _, _ = _fc1_k_tiling(w1.shape[0], h1_p)

    def pad_w(w, rows, cols):
        w = jnp.pad(w, ((0, rows - w.shape[0]), (0, cols - w.shape[1])))
        return w.astype(jnp.bfloat16)

    def pad_b(b, cols):
        b = b.reshape(1, -1).astype(jnp.float32)
        return jnp.pad(b, ((0, 0), (0, cols - b.shape[1])))

    return (pad_w(w1, in_p, h1_p), pad_b(b1, h1_p),
            pad_w(w2, h1_p, h2_p), pad_b(b2, h2_p),
            pad_w(w3, h2_p, nc_p), pad_b(b3, nc_p))


# --------------------------------------------------------------------------
# Forward pass wrapper.
# --------------------------------------------------------------------------
def facial_keypoints_classifier(x_nchw, prepared_params, num_classes):
    """x_nchw: [B, C, H, W] float32. Returns [B, num_classes] float32."""
    w1, b1, w2, b2, w3, b3 = prepared_params
    B = x_nchw.shape[0]
    x = x_nchw.reshape(B, -1).astype(jnp.float32)     # x.view(x.size(0), -1)
    in_dim = x.shape[1]

    h1_p, h2_p, nc_p = w1.shape[1], w2.shape[1], w3.shape[1]
    in_p, tile_k, nk = _fc1_k_tiling(in_dim, h1_p)
    assert in_p == w1.shape[0], "prepared params do not match this input size"

    # VMEM-budget-aware batch tiling.
    vmem_cap = _vmem_capacity_bytes()
    budget = int(0.55 * vmem_cap)
    tile_b = _pick_tile_b(B, tile_k, nk, h1_p, h2_p, nc_p, budget)
    n_b_tiles = _cdiv(B, tile_b)
    b_pad = n_b_tiles * tile_b

    # Pad only when needed (skip an extra HBM pass over x if already aligned).
    pad_rows, pad_cols = b_pad - B, in_p - in_dim
    if pad_rows or pad_cols:
        x = jnp.pad(x, ((0, pad_rows), (0, pad_cols)))

    # Megacore: only shard the batch axis when each core gets several tiles;
    # otherwise a parallel axis duplicates the resident-weight DMA per core.
    batch_sem = "parallel" if n_b_tiles >= 4 else "arbitrary"

    # Resident (fetched once, single-buffered) weight/bias specs.
    def resident(shape):
        return pl.BlockSpec(shape, lambda i, k: (0, 0),
                            pipeline_mode=pl.Buffered(1))

    if nk == 1:
        w1_spec = resident(w1.shape)                       # fully resident fc1
    else:
        w1_spec = pl.BlockSpec((tile_k, h1_p), lambda i, k: (k, 0))  # pipelined over K

    est = _vmem_working_set(tile_b, tile_k, nk, h1_p, h2_p, nc_p)
    vmem_limit = int(min(max(int(est * 1.4) + (4 << 20), 32 << 20),
                         int(0.9 * vmem_cap)))

    flops = 2 * b_pad * (in_p * h1_p + h1_p * h2_p + h2_p * nc_p)
    bytes_accessed = (b_pad * in_p * 4 + b_pad * nc_p * 4
                      + (in_p * h1_p + h1_p * h2_p + h2_p * nc_p) * 2
                      + (h1_p + h2_p + nc_p) * 4)

    out = pl.pallas_call(
        mlp_kernel,
        out_shape=jax.ShapeDtypeStruct((b_pad, nc_p), jnp.float32),
        grid_spec=pltpu.PrefetchScalarGridSpec(
            num_scalar_prefetch=0,
            grid=(n_b_tiles, nk),
            in_specs=[
                pl.BlockSpec((tile_b, tile_k), lambda i, k: (i, k)),   # x tile
                w1_spec, resident(b1.shape),
                resident(w2.shape), resident(b2.shape),
                resident(w3.shape), resident(b3.shape),
            ],
            out_specs=pl.BlockSpec((tile_b, nc_p), lambda i, k: (i, 0)),
            scratch_shapes=[pltpu.VMEM((tile_b, h1_p), jnp.float32)],
        ),
        compiler_params=pltpu.CompilerParams(
            dimension_semantics=(batch_sem, "arbitrary"),
            vmem_limit_bytes=vmem_limit,
        ),
        cost_estimate=pl.CostEstimate(flops=flops, transcendentals=0,
                                      bytes_accessed=bytes_accessed),
    )(x, w1, b1, w2, b2, w3, b3)

    return out[:B, :num_classes]


# --------------------------------------------------------------------------
# Init (matches nn.Linear default: U(-1/sqrt(fan_in), 1/sqrt(fan_in))),
# weights stored as [in_features, out_features] (i.e. W.T of PyTorch).
# --------------------------------------------------------------------------
def init_params(key, input_size, num_classes):
    dims = [(input_size, 1200), (1200, 600), (600, num_classes)]
    params = []
    for fan_in, fan_out in dims:
        key, kw, kb = jax.random.split(key, 3)
        bound = 1.0 / jnp.sqrt(fan_in)
        w = jax.random.uniform(kw, (fan_in, fan_out), jnp.float32, -bound, bound)
        b = jax.random.uniform(kb, (1, fan_out), jnp.float32, -bound, bound)
        params += [w, b]
    return tuple(params)


# --------------------------------------------------------------------------
# References.
# --------------------------------------------------------------------------
def reference_forward_f32(x_nchw, params):
    """Pure-f32 reference equal to the PyTorch module."""
    w1, b1, w2, b2, w3, b3 = params
    x = x_nchw.reshape(x_nchw.shape[0], -1)
    h1 = jnp.maximum(x @ w1 + b1, 0.0)
    h2 = jnp.maximum(h1 @ w2 + b2, 0.0)
    return h2 @ w3 + b3


def reference_forward_matched(x_nchw, prepared_params, num_classes):
    """Reference with the same bf16 numerics as the kernel."""
    w1, b1, w2, b2, w3, b3 = prepared_params
    B = x_nchw.shape[0]
    x = x_nchw.reshape(B, -1).astype(jnp.bfloat16)
    x = jnp.pad(x, ((0, 0), (0, w1.shape[0] - x.shape[1])))
    h1 = jnp.maximum(jnp.dot(x, w1, preferred_element_type=jnp.float32) + b1, 0.0)
    h2 = jnp.maximum(
        jnp.dot(h1.astype(jnp.bfloat16), w2, preferred_element_type=jnp.float32) + b2, 0.0)
    o = jnp.dot(h2.astype(jnp.bfloat16), w3, preferred_element_type=jnp.float32) + b3
    return o[:, :num_classes]


if __name__ == "__main__":
    # Small shapes consistent with the module: B=2, C=4, H=W=16 -> input_size=1024.
    B, C, H, W = 2, 4, 16, 16
    input_size = C * H * W
    num_classes = 8

    key = jax.random.PRNGKey(0)
    key, kx = jax.random.split(key)
    x = jax.random.normal(kx, (B, C, H, W), jnp.float32)
    raw_params = init_params(key, input_size, num_classes)
    prepared = prepare_params(raw_params)   # done once; reused across calls

    out = facial_keypoints_classifier(x, prepared, num_classes)
    out = jax.block_until_ready(out)
    assert out.shape == (B, num_classes)

    # Tight check vs bf16-matched reference (same numerics as the kernel).
    ref_bf16 = reference_forward_matched(x, prepared, num_classes)
    assert jnp.allclose(out, ref_bf16, atol=1e-3, rtol=1e-3), "mismatch vs bf16 reference"

    # Loose check vs full-f32 PyTorch-equivalent reference (bf16 weight cast only).
    ref_f32 = reference_forward_f32(x, raw_params)
    assert jnp.allclose(out, ref_f32, atol=2e-2, rtol=2e-2), "mismatch vs f32 reference"

    print("KERNEL_OK")
</pallas_src>

<mosaic_0001>
module attributes {stable_mosaic.version = 11 : i64} {
  func.func @mlp_kernel(%arg0: i32, %arg1: i32, %arg2: memref<8x1024xf32, #tpu.memory_space<vmem>>, %arg3: memref<1024x1280xbf16, #tpu.memory_space<vmem>>, %arg4: memref<1x1280xf32, #tpu.memory_space<vmem>>, %arg5: memref<1280x640xbf16, #tpu.memory_space<vmem>>, %arg6: memref<1x640xf32, #tpu.memory_space<vmem>>, %arg7: memref<640x128xbf16, #tpu.memory_space<vmem>>, %arg8: memref<1x128xf32, #tpu.memory_space<vmem>>, %arg9: memref<8x128xf32, #tpu.memory_space<vmem>>, %arg10: memref<8x1280xf32, #tpu.memory_space<vmem>>) attributes {dimension_semantics = [#tpu.dimension_semantics<arbitrary>, #tpu.dimension_semantics<arbitrary>], iteration_bounds = array<i64: 1, 1>, scalar_prefetch = 0 : i64, scratch_operands = 1 : i64, tpu.core_type = #tpu.core_type<tc>, window_params = [{transform_indices = @transform_0, window_bounds = array<i64: 8, 1024>}, {pipeline_mode = #tpu.pipeline_mode<synchronous>, transform_indices = @transform_1, window_bounds = array<i64: 1024, 1280>}, {pipeline_mode = #tpu.pipeline_mode<synchronous>, transform_indices = @transform_2, window_bounds = array<i64: 1, 1280>}, {pipeline_mode = #tpu.pipeline_mode<synchronous>, transform_indices = @transform_3, window_bounds = array<i64: 1280, 640>}, {pipeline_mode = #tpu.pipeline_mode<synchronous>, transform_indices = @transform_4, window_bounds = array<i64: 1, 640>}, {pipeline_mode = #tpu.pipeline_mode<synchronous>, transform_indices = @transform_5, window_bounds = array<i64: 640, 128>}, {pipeline_mode = #tpu.pipeline_mode<synchronous>, transform_indices = @transform_6, window_bounds = array<i64: 1, 128>}, {transform_indices = @transform_7, window_bounds = array<i64: 8, 128>}]} {
    %c0_i32 = arith.constant 0 : i32
    %0 = arith.cmpi eq, %arg1, %c0_i32 : i32
    %1 = arith.extui %0 : i1 to i32
    %c0_i32_0 = arith.constant 0 : i32
    %2 = arith.cmpi ne, %1, %c0_i32_0 : i32
    scf.if %2 {
      %cst_10 = arith.constant 0.000000e+00 : f32
      %13 = vector.broadcast %cst_10 : f32 to vector<8x1280xf32>
      %c0_11 = arith.constant 0 : index
      %c0_12 = arith.constant 0 : index
      %14 = vector.load %arg10[%c0_11, %c0_12] : memref<8x1280xf32, #tpu.memory_space<vmem>>, vector<8x1280xf32>
      tpu.vector_store %arg10[%c0_11, %c0_12], %13 {strides = array<i32>} : memref<8x1280xf32, #tpu.memory_space<vmem>>, vector<8x1280xf32>,
    } else {
    }
    %c0 = arith.constant 0 : index
    %c0_1 = arith.constant 0 : index
    %3 = vector.load %arg2[%c0, %c0_1] : memref<8x1024xf32, #tpu.memory_space<vmem>>, vector<8x1024xf32>
    %4 = arith.truncf %3 : vector<8x1024xf32> to vector<8x1024xbf16>
    %c0_2 = arith.constant 0 : index
    %c0_3 = arith.constant 0 : index
    %5 = vector.load %arg10[%c0_2, %c0_3] : memref<8x1280xf32, #tpu.memory_space<vmem>>, vector<8x1280xf32>
    %c0_4 = arith.constant 0 : index
    %c0_5 = arith.constant 0 : index
    %6 = vector.load %arg3[%c0_4, %c0_5] : memref<1024x1280xbf16, #tpu.memory_space<vmem>>, vector<1024x1280xbf16>
    %cst = arith.constant dense<0.000000e+00> : vector<8x1280xf32>
    %7 = tpu.matmul %4, %6, %cst {dimension_numbers = #tpu.dot_dimension_numbers<[1], [0], [0], [1], [0, 0, 1, 1], [], []>} : vector<8x1024xbf16>, vector<1024x1280xbf16>, vector<8x1280xf32> -> vector<8x1280xf32>
    %8 = arith.addf %5, %7 : vector<8x1280xf32>
    %c0_6 = arith.constant 0 : index
    %c0_7 = arith.constant 0 : index
    %9 = vector.load %arg10[%c0_6, %c0_7] : memref<8x1280xf32, #tpu.memory_space<vmem>>, vector<8x1280xf32>
    tpu.vector_store %arg10[%c0_6, %c0_7], %8 {strides = array<i32>} : memref<8x1280xf32, #tpu.memory_space<vmem>>, vector<8x1280xf32>,
    %c0_i32_8 = arith.constant 0 : i32
    %10 = arith.cmpi eq, %arg1, %c0_i32_8 : i32
    %11 = arith.extui %10 : i1 to i32
    %c0_i32_9 = arith.constant 0 : i32
    %12 = arith.cmpi ne, %11, %c0_i32_9 : i32
    scf.if %12 {
      %c0_10 = arith.constant 0 : index
      %c0_11 = arith.constant 0 : index
      %13 = vector.load %arg10[%c0_10, %c0_11] : memref<8x1280xf32, #tpu.memory_space<vmem>>, vector<8x1280xf32>
      %c0_12 = arith.constant 0 : index
      %c0_13 = arith.constant 0 : index
      %14 = vector.load %arg4[%c0_12, %c0_13] : memref<1x1280xf32, #tpu.memory_space<vmem>>, vector<1x1280xf32>
      %15 = vector.broadcast %14 : vector<1x1280xf32> to vector<8x1280xf32>
      %16 = arith.addf %13, %15 : vector<8x1280xf32>
      %cst_14 = arith.constant 0.000000e+00 : f32
      %17 = vector.broadcast %cst_14 : f32 to vector<8x1280xf32>
      %18 = arith.maximumf %16, %17 : vector<8x1280xf32>
      %19 = arith.truncf %18 : vector<8x1280xf32> to vector<8x1280xbf16>
      %c0_15 = arith.constant 0 : index
      %c0_16 = arith.constant 0 : index
      %20 = vector.load %arg5[%c0_15, %c0_16] : memref<1280x640xbf16, #tpu.memory_space<vmem>>, vector<1280x640xbf16>
      %cst_17 = arith.constant dense<0.000000e+00> : vector<8x640xf32>
      %21 = tpu.matmul %19, %20, %cst_17 {dimension_numbers = #tpu.dot_dimension_numbers<[1], [0], [0], [1], [0, 0, 1, 1], [], []>} : vector<8x1280xbf16>, vector<1280x640xbf16>, vector<8x640xf32> -> vector<8x640xf32>
      %c0_18 = arith.constant 0 : index
      %c0_19 = arith.constant 0 : index
      %22 = vector.load %arg6[%c0_18, %c0_19] : memref<1x640xf32, #tpu.memory_space<vmem>>, vector<1x640xf32>
      %23 = vector.broadcast %22 : vector<1x640xf32> to vector<8x640xf32>
      %24 = arith.addf %21, %23 : vector<8x640xf32>
      %cst_20 = arith.constant 0.000000e+00 : f32
      %25 = vector.broadcast %cst_20 : f32 to vector<8x640xf32>
      %26 = arith.maximumf %24, %25 : vector<8x640xf32>
      %27 = arith.truncf %26 : vector<8x640xf32> to vector<8x640xbf16>
      %c0_21 = arith.constant 0 : index
      %c0_22 = arith.constant 0 : index
      %28 = vector.load %arg7[%c0_21, %c0_22] : memref<640x128xbf16, #tpu.memory_space<vmem>>, vector<640x128xbf16>
      %cst_23 = arith.constant dense<0.000000e+00> : vector<8x128xf32>
      %29 = tpu.matmul %27, %28, %cst_23 {dimension_numbers = #tpu.dot_dimension_numbers<[1], [0], [0], [1], [0, 0, 1, 1], [], []>} : vector<8x640xbf16>, vector<640x128xbf16>, vector<8x128xf32> -> vector<8x128xf32>
      %c0_24 = arith.constant 0 : index
      %c0_25 = arith.constant 0 : index
      %30 = vector.load %arg8[%c0_24, %c0_25] : memref<1x128xf32, #tpu.memory_space<vmem>>, vector<1x128xf32>
      %31 = vector.broadcast %30 : vector<1x128xf32> to vector<8x128xf32>
      %32 = arith.addf %29, %31 : vector<8x128xf32>
      %c0_26 = arith.constant 0 : index
      %c0_27 = arith.constant 0 : index
      %33 = vector.load %arg9[%c0_26, %c0_27] : memref<8x128xf32, #tpu.memory_space<vmem>>, vector<8x128xf32>
      tpu.vector_store %arg9[%c0_26, %c0_27], %32 {strides = array<i32>} : memref<8x128xf32, #tpu.memory_space<vmem>>, vector<8x128xf32>,
    } else {
    }
    return
  }
  func.func @transform_0(%arg0: i32, %arg1: i32) -> (i32, i32) {
    %c0_i32 = arith.constant 0 : i32
    return %arg0, %arg1 : i32, i32
  }
  func.func @transform_1(%arg0: i32, %arg1: i32) -> (i32, i32) {
    %c0_i32 = arith.constant 0 : i32
    %c0_i32_0 = arith.constant 0 : i32
    %c0_i32_1 = arith.constant 0 : i32
    return %c0_i32, %c0_i32_0 : i32, i32
  }
  func.func @transform_2(%arg0: i32, %arg1: i32) -> (i32, i32) {
    %c0_i32 = arith.constant 0 : i32
    %c0_i32_0 = arith.constant 0 : i32
    %c0_i32_1 = arith.constant 0 : i32
    return %c0_i32, %c0_i32_0 : i32, i32
  }
  func.func @transform_3(%arg0: i32, %arg1: i32) -> (i32, i32) {
    %c0_i32 = arith.constant 0 : i32
    %c0_i32_0 = arith.constant 0 : i32
    %c0_i32_1 = arith.constant 0 : i32
    return %c0_i32, %c0_i32_0 : i32, i32
  }
  func.func @transform_4(%arg0: i32, %arg1: i32) -> (i32, i32) {
    %c0_i32 = arith.constant 0 : i32
    %c0_i32_0 = arith.constant 0 : i32
    %c0_i32_1 = arith.constant 0 : i32
    return %c0_i32, %c0_i32_0 : i32, i32
  }
  func.func @transform_5(%arg0: i32, %arg1: i32) -> (i32, i32) {
    %c0_i32 = arith.constant 0 : i32
    %c0_i32_0 = arith.constant 0 : i32
    %c0_i32_1 = arith.constant 0 : i32
    return %c0_i32, %c0_i32_0 : i32, i32
  }
  func.func @transform_6(%arg0: i32, %arg1: i32) -> (i32, i32) {
    %c0_i32 = arith.constant 0 : i32
    %c0_i32_0 = arith.constant 0 : i32
    %c0_i32_1 = arith.constant 0 : i32
    return %c0_i32, %c0_i32_0 : i32, i32
  }
  func.func @transform_7(%arg0: i32, %arg1: i32) -> (i32, i32) {
    %c0_i32 = arith.constant 0 : i32
    %c0_i32_0 = arith.constant 0 : i32
    return %arg0, %c0_i32 : i32, i32
  }
}

</mosaic_0001>

<bundles_post_ra>
// kernel: tpu_custom_call.1
= control target key start
LH: loop header
LB: loop body
LE: loop exit
PB: predicated region body
PF: predicated region fallthrough
CT: control target
= control target key end

     0   :  { %12 = vsyncpa [#allocation4], 0  ;;  %s12043_s0 = inlined_call_operand.hbm [shape: f32[8,1024], index: 0, kind: input, shape index: {}]   ;;  %s12044_s1 = inlined_call_operand.hbm [shape: bf16[1024,1280], index: 1, kind: input, shape index: {}]   ;;  %s12045_s2 = inlined_call_operand.hbm [shape: f32[1,1280], index: 2, kind: input, shape index: {}]   ;;  %s12046_s3 = inlined_call_operand.hbm [shape: bf16[1280,640], index: 3, kind: input, shape index: {}]   ;;  %s12047_s4 = inlined_call_operand.hbm [shape: f32[1,640], index: 4, kind: input, shape index: {}]   ;;  %s12048_s5 = inlined_call_operand.hbm [shape: bf16[640,128], index: 5, kind: input, shape index: {}]   ;;  %s12049_s6 = inlined_call_operand.hbm [shape: f32[1,128], index: 6, kind: input, shape index: {}]   ;;  %s12050_s7 = inlined_call_operand.hbm [shape: f32[8,128], index: 7, kind: output, shape index: {}]  }
   0x1   :  { %13 = vsyncpa [#allocation7], 0 }
   0x2   :  { %14 = vsyncpa [#allocation10], 0 }
   0x3   :  { %15 = vsyncpa [#allocation13], 0 }
   0x4   :  { %16 = vsyncpa [#allocation5], 0  ;;  %s11668_s24 = smov [#allocation6]   ;;  %s11482_s28 = scalar_lea.hbm %s12044_s1, 81920 }
   0x5   :  { %s32_s25 = sshll.u32 %s11668_s24, 4  ;;  %p11483_p0 = scmp.ne.s32.totalorder %s12044_s1, %s11482_s28  ;;  %s33_s25 = int_to_ptr.vmem [resolvable:$true] %s32_s25 }
   0x6   :  { %p11486_p1 = scmp.lt.u32.totalorder %s11482_s28, %s12044_s1 }
   0x8   :  { %p11488_p2 = pnand %p11486_p1, %p11483_p0 }
   0xa   :  { %11491 = shalt.err (!%p11488_p2)
}
   0xb   :  { %s11492_s10 = scalar_lea.vmem %s33_s25, 81920  ;;  %p11497_p4 = scmp.lt.s32.totalorder %s33_s25, %s33_s25 }
   0xc   :  { %p11493_p3 = scmp.ne.s32.totalorder %s33_s25, %s11492_s10  ;;  %p11498_p5 = scmp.lt.s32.totalorder %s11492_s10, %s11492_s10 }
   0xe   :  { %p11499_p6 = por %p11498_p5, %p11497_p4 }
  0x10   :  { %p11500_p7 = pnand %p11499_p6, %p11493_p3 }
  0x12   :  { %11503 = shalt.err (!%p11500_p7)
}
  0x13   :  { %s11669_s11 = smov 640   ;;  %s11670_s12 = smov 40  }
  0x14   :  { %38 = dma.hbm_to_vmem [thread:$0]  %s12044_s1, 81920, %s33_s25, [#allocation7], %s11669_s11, %s11669_s11, %s11670_s12  }
  0x15   :  { %s11671_s15 = smov [#allocation9]   ;;  %s11504_s19 = scalar_lea.hbm %s12046_s3, 51200 }
  0x16   :  { %s54_s16 = sshll.u32 %s11671_s15, 4  ;;  %p11505_p8 = scmp.ne.s32.totalorder %s12046_s3, %s11504_s19  ;;  %s55_s16 = int_to_ptr.vmem [resolvable:$true] %s54_s16 }
  0x17   :  { %p11508_p9 = scmp.lt.u32.totalorder %s11504_s19, %s12046_s3 }
  0x19   :  { %p11510_p10 = pnand %p11508_p9, %p11505_p8 }
  0x1b   :  { %11513 = shalt.err (!%p11510_p10)
}
  0x1c   :  { %s11514_s24 = scalar_lea.vmem %s55_s16, 51200  ;;  %p11519_p12 = scmp.lt.s32.totalorder %s55_s16, %s55_s16 }
  0x1d   :  { %p11515_p11 = scmp.ne.s32.totalorder %s55_s16, %s11514_s24  ;;  %p11520_p13 = scmp.lt.s32.totalorder %s11514_s24, %s11514_s24 }
  0x1f   :  { %p11521_p0 = por %p11520_p13, %p11519_p12 }
  0x21   :  { %p11522_p1 = pnand %p11521_p0, %p11515_p11 }
  0x23   :  { %11525 = shalt.err (!%p11522_p1)
}
  0x24   :  { %s11672_s1 = smov 320   ;;  %s11673_s25 = smov 20  }
  0x25   :  { %60 = dma.hbm_to_vmem [thread:$0]  %s12046_s3, 51200, %s55_s16, [#allocation10], %s11672_s1, %s11672_s1, %s11673_s25  }
  0x26   :  { %s11674_s28 = smov [#allocation12]   ;;  %s11526_s9 = scalar_lea.hbm %s12048_s5, 5120 }
  0x27   :  { %s76_s29 = sshll.u32 %s11674_s28, 4  ;;  %p11527_p2 = scmp.ne.s32.totalorder %s12048_s5, %s11526_s9  ;;  %s77_s29 = int_to_ptr.vmem [resolvable:$true] %s76_s29 }
  0x28   :  { %p11530_p3 = scmp.lt.u32.totalorder %s11526_s9, %s12048_s5 }
  0x2a   :  { %p11532_p4 = pnand %p11530_p3, %p11527_p2 }
  0x2c   :  { %11535 = shalt.err (!%p11532_p4)
}
  0x2d   :  { %s11536_s14 = scalar_lea.vmem %s77_s29, 5120  ;;  %p11541_p6 = scmp.lt.s32.totalorder %s77_s29, %s77_s29 }
  0x2e   :  { %p11537_p5 = scmp.ne.s32.totalorder %s77_s29, %s11536_s14  ;;  %p11542_p7 = scmp.lt.s32.totalorder %s11536_s14, %s11536_s14 }
  0x30   :  { %p11543_p8 = por %p11542_p7, %p11541_p6 }
  0x32   :  { %p11544_p9 = pnand %p11543_p8, %p11537_p5 }
  0x34   :  { %11547 = shalt.err (!%p11544_p9)
}
  0x35   :  { %s11675_s3 = smov 64   ;;  %s11676_s15 = smov 4  }
  0x36   :  { %82 = dma.hbm_to_vmem [thread:$0]  %s12048_s5, 5120, %s77_s29, [#allocation13], %s11675_s3, %s11675_s3, %s11676_s15  }
  0x37   :  { %s11677_s18 = smov [#allocation3]   ;;  %s11678_s20 = smov [#allocation8]  }
  0x38   :  { %s23_s19 = sshll.u32 %s11677_s18, 4  ;;  %s45_s21 = sshll.u32 %s11678_s20, 4  ;;  %s24_s19 = int_to_ptr.vmem [resolvable:$true] %s23_s19  ;;  %s46_s21 = int_to_ptr.vmem [resolvable:$true] %s45_s21 }
  0x39   :  { %s11548_s24 = scalar_lea.hbm %s12043_s0, 1024 }
  0x3a   :  { %p11549_p10 = scmp.ne.s32.totalorder %s12043_s0, %s11548_s24  ;;  %p11552_p11 = scmp.lt.u32.totalorder %s11548_s24, %s12043_s0 }
  0x3c   :  { %p11554_p12 = pnand %p11552_p11, %p11549_p10 }
  0x3e   :  { %11557 = shalt.err (!%p11554_p12)
}
  0x3f   :  { %s11558_s5 = scalar_lea.vmem %s24_s19, 1024  ;;  %p11563_p0 = scmp.lt.s32.totalorder %s24_s19, %s24_s19 }
  0x40   :  { %p11559_p13 = scmp.ne.s32.totalorder %s24_s19, %s11558_s5  ;;  %p11564_p1 = scmp.lt.s32.totalorder %s11558_s5, %s11558_s5 }
  0x42   :  { %p11565_p2 = por %p11564_p1, %p11563_p0 }
  0x44   :  { %p11566_p3 = pnand %p11565_p2, %p11559_p13 }
  0x46   :  { %11569 = shalt.err (!%p11566_p3)
}
  0x47   :  { %26 = dma.hbm_to_vmem [thread:$0]  %s12043_s0, 1024, %s24_s19, [#allocation4]  }
  0x48   :  { %s11570_s9 = scalar_lea.hbm %s12045_s2, 160 }
  0x49   :  { %p11571_p4 = scmp.ne.s32.totalorder %s12045_s2, %s11570_s9  ;;  %p11574_p5 = scmp.lt.u32.totalorder %s11570_s9, %s12045_s2 }
  0x4b   :  { %p11576_p6 = pnand %p11574_p5, %p11571_p4 }
  0x4d   :  { %11579 = shalt.err (!%p11576_p6)
}
  0x4e   :  { %s11580_s14 = scalar_lea.vmem %s46_s21, 160  ;;  %p11585_p8 = scmp.lt.s32.totalorder %s46_s21, %s46_s21 }
  0x4f   :  { %p11581_p7 = scmp.ne.s32.totalorder %s46_s21, %s11580_s14  ;;  %p11586_p9 = scmp.lt.s32.totalorder %s11580_s14, %s11580_s14 }
  0x51   :  { %p11587_p10 = por %p11586_p9, %p11585_p8 }
  0x53   :  { %p11588_p11 = pnand %p11587_p10, %p11581_p7 }
  0x55   :  { %11591 = shalt.err (!%p11588_p11)
}
  0x56   :  { %48 = dma.hbm_to_vmem [thread:$0]  %s12045_s2, 160, %s46_s21, [#allocation7]  }
  0x57   :  { %s11679_s15 = smov [#allocation11]   ;;  %s11680_s17 = smov [#allocation14]  }
  0x58   :  { %s67_s16 = sshll.u32 %s11679_s15, 4  ;;  %s89_s18 = sshll.u32 %s11680_s17, 4  ;;  %s68_s16 = int_to_ptr.vmem [resolvable:$true] %s67_s16  ;;  %s90_s18 = int_to_ptr.vmem [resolvable:$true] %s89_s18 }
  0x59   :  { %s11592_s22 = scalar_lea.hbm %s12047_s4, 80 }
  0x5a   :  { %p11593_p12 = scmp.ne.s32.totalorder %s12047_s4, %s11592_s22  ;;  %p11596_p13 = scmp.lt.u32.totalorder %s11592_s22, %s12047_s4 }
  0x5c   :  { %p11598_p0 = pnand %p11596_p13, %p11593_p12 }
  0x5e   :  { %11601 = shalt.err (!%p11598_p0)
}
  0x5f   :  { %s11602_s2 = scalar_lea.vmem %s68_s16, 80  ;;  %s11606_s21 = scalar_lea.vmem %s68_s16, 96 }
  0x60   :  { %p11603_p1 = scmp.ne.s32.totalorder %s68_s16, %s11602_s2  ;;  %p11607_p2 = scmp.lt.s32.totalorder %s68_s16, %s68_s16 }
  0x61   :  { %p11608_p3 = scmp.lt.s32.totalorder %s11606_s21, %s11602_s2 }
  0x63   :  { %p11609_p4 = por %p11608_p3, %p11607_p2 }
  0x65   :  { %p11610_p5 = pnand %p11609_p4, %p11603_p1 }
  0x67   :  { %11613 = shalt.err (!%p11610_p5)
}
  0x68   :  { %70 = dma.hbm_to_vmem [thread:$0]  %s12047_s4, 80, %s68_s16, [#allocation10]  }
  0x69   :  { %s11614_s29 = scalar_lea.hbm %s12049_s6, 16 }
  0x6a   :  { %p11615_p6 = scmp.ne.s32.totalorder %s12049_s6, %s11614_s29  ;;  %p11618_p7 = scmp.lt.u32.totalorder %s11614_s29, %s12049_s6 }
  0x6c   :  { %p11620_p8 = pnand %p11618_p7, %p11615_p6 }
  0x6e   :  { %11623 = shalt.err (!%p11620_p8)
}
  0x6f   :  { %s11624_s11 = scalar_lea.vmem %s90_s18, 16  ;;  %s11628_s12 = scalar_lea.vmem %s90_s18, 32 }
  0x70   :  { %p11625_p9 = scmp.ne.s32.totalorder %s90_s18, %s11624_s11  ;;  %p11629_p10 = scmp.lt.s32.totalorder %s90_s18, %s90_s18 }
  0x71   :  { %p11630_p11 = scmp.lt.s32.totalorder %s11628_s12, %s11624_s11 }
  0x73   :  { %p11631_p12 = por %p11630_p11, %p11629_p10 }
  0x75   :  { %p11632_p13 = pnand %p11631_p12, %p11625_p9 }
  0x77   :  { %11635 = shalt.err (!%p11632_p13)
}
  0x78   :  { %92 = dma.hbm_to_vmem [thread:$0]  %s12049_s6, 16, %s90_s18, [#allocation13]  }
  0x79   :  { %11658 = dma.done.wait [#allocation4], 1024  }
  0x7a   :  { %11659 = vsyncadd [#allocation4], 4294966272 }
  0x7b   :  { %11660 = dma.done.wait [#allocation7], 82080  }
  0x7c   :  { %11661 = vsyncadd [#allocation7], 4294885216 }
  0x7d   :  { %11662 = dma.done.wait [#allocation10], 51280  }
  0x7e   :  { %11663 = vsyncadd [#allocation10], 4294916016 }
  0x7f   :  { %11664 = dma.done.wait [#allocation13], 5136  }
  0x80   :  { %11665 = vsyncadd [#allocation13], 4294962160  ;;  %v9921_v0 = vld [vmem:[#allocation6 + $0x4] ss:$40 sps:$4 sm:$0xff]   ;;  %v9925_v2 = vld [vmem:[#allocation6] ss:$40 sps:$4 sm:$0xff]  }
  0x81   :  { %v9923_v1 = vld [vmem:[#allocation6 + $0x504] ss:$40 sps:$4 sm:$0xff]   ;;  %3995 = vmatprep.subr.bf16.mxu0 %v9921_v0  ;;  %v9926_v3 = vld [vmem:[#allocation6 + $0x500] ss:$40 sps:$4 sm:$0xff]   ;;  %v9927_v4 = vld [vmem:[#allocation6 + $0x54] ss:$40 sps:$4 sm:$0xff]  }
  0x82   :  { %4036 = vmatprep.subr.bf16.mxu1 %v9923_v1  ;;  %3996 = vmatpush1.bf16.msra.mxu0 %v9925_v2  ;;  %v9929_v5 = vld [vmem:[#allocation6 + $0x554] ss:$40 sps:$4 sm:$0xff]   ;;  %v9931_v6 = vld [vmem:[#allocation6 + $0x50] ss:$40 sps:$4 sm:$0xff]   ;;  %v9933_v8 = vld [vmem:[#allocation6 + $0xa4] ss:$40 sps:$4 sm:$0xff]  }
  0x83   :  { %4037 = vmatpush1.bf16.msra.mxu1 %v9926_v3  ;;  %3997 = vmatprep.subr.bf16.mxu0 %v9927_v4  ;;  %v9932_v7 = vld [vmem:[#allocation6 + $0x550] ss:$40 sps:$4 sm:$0xff]   ;;  %v9935_v9 = vld [vmem:[#allocation6 + $0x5a4] ss:$40 sps:$4 sm:$0xff]   ;;  %v9937_v10 = vld [vmem:[#allocation6 + $0xa0] ss:$40 sps:$4 sm:$0xff]  }
  0x84   :  { %4038 = vmatprep.subr.bf16.mxu1 %v9929_v5  ;;  %v9938_v11 = vld [vmem:[#allocation6 + $0x5a0] ss:$40 sps:$4 sm:$0xff]   ;;  %v9939_v12 = vld [vmem:[#allocation6 + $0xf4] ss:$40 sps:$4 sm:$0xff]   ;;  %v9943_v14 = vld [vmem:[#allocation6 + $0xf0] ss:$40 sps:$4 sm:$0xff]  }
  0x85   :  { %v9941_v13 = vld [vmem:[#allocation6 + $0x5f4] ss:$40 sps:$4 sm:$0xff]   ;;  %v9944_v15 = vld [vmem:[#allocation6 + $0x5f0] ss:$40 sps:$4 sm:$0xff]   ;;  %v9945_v16 = vld [vmem:[#allocation6 + $0x144] ss:$40 sps:$4 sm:$0xff]  }
  0x86   :  { %3998 = vmatpush1.bf16.msra.mxu0 %v9931_v6  ;;  %v9947_v17 = vld [vmem:[#allocation6 + $0x644] ss:$40 sps:$4 sm:$0xff]   ;;  %v9949_v18 = vld [vmem:[#allocation6 + $0x140] ss:$40 sps:$4 sm:$0xff]   ;;  %v9951_v20 = vld [vmem:[#allocation6 + $0x194] ss:$40 sps:$4 sm:$0xff]  }
  0x87   :  { %4039 = vmatpush1.bf16.msra.mxu1 %v9932_v7  ;;  %3999 = vmatprep.subr.bf16.mxu0 %v9933_v8  ;;  %v9950_v19 = vld [vmem:[#allocation6 + $0x640] ss:$40 sps:$4 sm:$0xff]   ;;  %v9953_v21 = vld [vmem:[#allocation6 + $0x694] ss:$40 sps:$4 sm:$0xff]   ;;  %v9955_v22 = vld [vmem:[#allocation6 + $0x190] ss:$40 sps:$4 sm:$0xff]  }
  0x88   :  { %4040 = vmatprep.subr.bf16.mxu1 %v9935_v9  ;;  %v9956_v23 = vld [vmem:[#allocation6 + $0x690] ss:$40 sps:$4 sm:$0xff]   ;;  %v9957_v24 = vld [vmem:[#allocation6 + $0x1e4] ss:$40 sps:$4 sm:$0xff]   ;;  %v9961_v26 = vld [vmem:[#allocation6 + $0x1e0] ss:$40 sps:$4 sm:$0xff]  }
  0x89   :  { %v9959_v25 = vld [vmem:[#allocation6 + $0x6e4] ss:$40 sps:$4 sm:$0xff]   ;;  %v9962_v27 = vld [vmem:[#allocation6 + $0x6e0] ss:$40 sps:$4 sm:$0xff]   ;;  %v9963_v28 = vld [vmem:[#allocation6 + $0x234] ss:$40 sps:$4 sm:$0xff]  }
  0x8a   :  { %4000 = vmatpush1.bf16.msra.mxu0 %v9937_v10  ;;  %v9965_v29 = vld [vmem:[#allocation6 + $0x734] ss:$40 sps:$4 sm:$0xff]   ;;  %v9967_v30 = vld [vmem:[#allocation6 + $0x230] ss:$40 sps:$4 sm:$0xff]   ;;  %v9969_v32 = vld [vmem:[#allocation6 + $0x284] ss:$40 sps:$4 sm:$0xff]  }
  0x8b   :  { %4041 = vmatpush1.bf16.msra.mxu1 %v9938_v11  ;;  %4001 = vmatprep.subr.bf16.mxu0 %v9939_v12  ;;  %v9968_v31 = vld [vmem:[#allocation6 + $0x730] ss:$40 sps:$4 sm:$0xff]   ;;  %v9971_v33 = vld [vmem:[#allocation6 + $0x784] ss:$40 sps:$4 sm:$0xff]   ;;  %v9973_v34 = vld [vmem:[#allocation6 + $0x280] ss:$40 sps:$4 sm:$0xff]  }
  0x8c   :  { %4042 = vmatprep.subr.bf16.mxu1 %v9941_v13  ;;  %v9974_v35 = vld [vmem:[#allocation6 + $0x780] ss:$40 sps:$4 sm:$0xff]   ;;  %v9975_v36 = vld [vmem:[#allocation6 + $0x2d4] ss:$40 sps:$4 sm:$0xff]   ;;  %v9979_v38 = vld [vmem:[#allocation6 + $0x2d0] ss:$40 sps:$4 sm:$0xff]  }
  0x8d   :  { %v9977_v37 = vld [vmem:[#allocation6 + $0x7d4] ss:$40 sps:$4 sm:$0xff]   ;;  %v9980_v39 = vld [vmem:[#allocation6 + $0x7d0] ss:$40 sps:$4 sm:$0xff]   ;;  %v9981_v40 = vld [vmem:[#allocation6 + $0x324] ss:$40 sps:$4 sm:$0xff]  }
  0x8e   :  { %4002 = vmatpush1.bf16.msra.mxu0 %v9943_v14  ;;  %v9983_v41 = vld [vmem:[#allocation6 + $0x824] ss:$40 sps:$4 sm:$0xff]   ;;  %v9985_v42 = vld [vmem:[#allocation6 + $0x320] ss:$40 sps:$4 sm:$0xff]   ;;  %v9987_v44 = vld [vmem:[#allocation6 + $0x374] ss:$40 sps:$4 sm:$0xff]  }
  0x8f   :  { %4043 = vmatpush1.bf16.msra.mxu1 %v9944_v15  ;;  %4003 = vmatprep.subr.bf16.mxu0 %v9945_v16  ;;  %v9986_v43 = vld [vmem:[#allocation6 + $0x820] ss:$40 sps:$4 sm:$0xff]   ;;  %v9989_v45 = vld [vmem:[#allocation6 + $0x874] ss:$40 sps:$4 sm:$0xff]   ;;  %v9991_v47 = vld [vmem:[#allocation6 + $0x370] ss:$40 sps:$4 sm:$0xff]  }
  0x90   :  { %4044 = vmatprep.subr.bf16.mxu1 %v9947_v17  ;;  %v130_v46 = vld [vmem:[#allocation3 + $0x8] sm:$0xff]  ;;  %v9992_v48 = vld [vmem:[#allocation6 + $0x870] ss:$40 sps:$4 sm:$0xff]   ;;  %v9999_v56 = vld [vmem:[#allocation6 + $0x414] ss:$40 sps:$4 sm:$0xff]   ;;  %vm11682_vm0 = vmmov 0  }
  0x91   :  { %v11808_v49 = vpack.c.bf16 %v130_v46, %v130_v46  ;;  %v132_v50 = vld [vmem:[#allocation3 + $0x18] sm:$0xff]  ;;  %v9993_v51 = vld [vmem:[#allocation6 + $0x3c4] ss:$40 sps:$4 sm:$0xff]   ;;  %v9997_v54 = vld [vmem:[#allocation6 + $0x3c0] ss:$40 sps:$4 sm:$0xff]   ;;  %s11683_s6 = smov [#allocation15]  }
  0x92   :  { %4004 = vmatpush1.bf16.msra.mxu0 %v9949_v18  ;;  %v11810_v52 = vpack.c.bf16 %v132_v50, %v132_v50  ;;  %v9995_v53 = vld [vmem:[#allocation6 + $0x8c4] ss:$40 sps:$4 sm:$0xff]   ;;  %v9998_v55 = vld [vmem:[#allocation6 + $0x8c0] ss:$40 sps:$4 sm:$0xff]   ;;  %v10001_v57 = vld [vmem:[#allocation6 + $0x914] ss:$40 sps:$4 sm:$0xff]  }
  0x93   :  { %4045 = vmatpush1.bf16.msra.mxu1 %v9950_v19  ;;  %4005 = vmatprep.subr.bf16.mxu0 %v9951_v20  ;;  %v10003_v58 = vld [vmem:[#allocation6 + $0x410] ss:$40 sps:$4 sm:$0xff]   ;;  %v10005_v60 = vld [vmem:[#allocation6 + $0x464] ss:$40 sps:$4 sm:$0xff]   ;;  %v10009_v62 = vld [vmem:[#allocation6 + $0x460] ss:$40 sps:$4 sm:$0xff]  }
  0x94   :  { %4046 = vmatprep.subr.bf16.mxu1 %v9953_v21  ;;  %4027 = vmatprep.mubr.bf16.mxu0 %v11808_v49  ;;  %v10004_v59 = vld [vmem:[#allocation6 + $0x910] ss:$40 sps:$4 sm:$0xff]   ;;  %v10007_v61 = vld [vmem:[#allocation6 + $0x964] ss:$40 sps:$4 sm:$0xff]   ;;  %v10010_v63 = vld [vmem:[#allocation6 + $0x960] ss:$40 sps:$4 sm:$0xff]  }
  0x95   :  { %4068 = vmatprep.mubr.bf16.mxu1 %v11810_v52  ;;  %v10011_v0 = vld [vmem:[#allocation6 + $0x4b4] ss:$40 sps:$4 sm:$0xff]   ;;  %v10015_v2 = vld [vmem:[#allocation6 + $0x4b0] ss:$40 sps:$4 sm:$0xff]   ;;  %v129_v4 = vld [vmem:[#allocation3] sm:$0xff]  ;;  %s8593_s14 = sshll.u32 %s11683_s6, 4  ;;  %s8594_s14 = int_to_ptr.vmem [resolvable:$true] %s8593_s14 }
  0x96   :  { %4006 = vmatpush1.bf16.msra.mxu0 %v9955_v22  ;;  %v10013_v1 = vld [vmem:[#allocation6 + $0x9b4] ss:$40 sps:$4 sm:$0xff]   ;;  %v10016_v3 = vld [vmem:[#allocation6 + $0x9b0] ss:$40 sps:$4 sm:$0xff]   ;;  %v10019_v6 = vld [vmem:[#allocation6 + $0xa04] ss:$40 sps:$4 sm:$0xff]   ;;  %v11814_v8 = vpack.c.bf16 %v129_v4, %v129_v4  ;;  %p11641_p1 = scmp.lt.s32.totalorder %s8594_s14, %s8594_s14 }
  0x97   :  { %4047 = vmatpush1.bf16.msra.mxu1 %v9956_v23  ;;  %4007 = vmatprep.subr.bf16.mxu0 %v9957_v24  ;;  %v131_v5 = vld [vmem:[#allocation3 + $0x10] sm:$0xff]  ;;  %v10022_v7 = vld [vmem:[#allocation6 + $0xf04] ss:$40 sps:$4 sm:$0xff]   ;;  %v10017_v10 = vld [vmem:[#allocation6 + $0xa00] ss:$40 sps:$4 sm:$0xff]   ;;  %s11636_s0 = scalar_lea.vmem %s8594_s14, 128 }
  0x98   :  { %4048 = vmatprep.subr.bf16.mxu1 %v9959_v25  ;;  %v11816_v9 = vpack.c.bf16 %v131_v5, %v131_v5  ;;  %v10020_v11 = vld [vmem:[#allocation6 + $0xf00] ss:$40 sps:$4 sm:$0xff]   ;;  %v10025_v12 = vld [vmem:[#allocation6 + $0xa54] ss:$40 sps:$4 sm:$0xff]   ;;  %v10023_v14 = vld [vmem:[#allocation6 + $0xa50] ss:$40 sps:$4 sm:$0xff]   ;;  %p11637_p0 = scmp.ne.s32.totalorder %s8594_s14, %s11636_s0  ;;  %p11642_p2 = scmp.lt.s32.totalorder %s11636_s0, %s11636_s0 }
  0x99   :  { %v10028_v13 = vld [vmem:[#allocation6 + $0xf54] ss:$40 sps:$4 sm:$0xff]   ;;  %v10026_v15 = vld [vmem:[#allocation6 + $0xf50] ss:$40 sps:$4 sm:$0xff]   ;;  %v10031_v16 = vld [vmem:[#allocation6 + $0xaa4] ss:$40 sps:$4 sm:$0xff]  }
  0x9a   :  { %4008 = vmatpush1.bf16.msra.mxu0 %v9961_v26  ;;  %v10034_v17 = vld [vmem:[#allocation6 + $0xfa4] ss:$40 sps:$4 sm:$0xff]   ;;  %v10029_v18 = vld [vmem:[#allocation6 + $0xaa0] ss:$40 sps:$4 sm:$0xff]   ;;  %v10037_v20 = vld [vmem:[#allocation6 + $0xaf4] ss:$40 sps:$4 sm:$0xff]   ;;  %p11643_p3 = por %p11642_p2, %p11641_p1 }
  0x9b   :  { %4049 = vmatpush1.bf16.msra.mxu1 %v9962_v27  ;;  %4009 = vmatprep.subr.bf16.mxu0 %v9963_v28  ;;  %v10032_v19 = vld [vmem:[#allocation6 + $0xfa0] ss:$40 sps:$4 sm:$0xff]   ;;  %v10040_v21 = vld [vmem:[#allocation6 + $0xff4] ss:$40 sps:$4 sm:$0xff]   ;;  %v10035_v22 = vld [vmem:[#allocation6 + $0xaf0] ss:$40 sps:$4 sm:$0xff]  }
  0x9c   :  { %4050 = vmatprep.subr.bf16.mxu1 %v9965_v29  ;;  %v10038_v23 = vld [vmem:[#allocation6 + $0xff0] ss:$40 sps:$4 sm:$0xff]   ;;  %v10043_v24 = vld [vmem:[#allocation6 + $0xb44] ss:$40 sps:$4 sm:$0xff]   ;;  %v10041_v26 = vld [vmem:[#allocation6 + $0xb40] ss:$40 sps:$4 sm:$0xff]   ;;  %p11644_p4 = pnand %p11643_p3, %p11637_p0 }
  0x9d   :  { %v10046_v25 = vld [vmem:[#allocation6 + $0x1044] ss:$40 sps:$4 sm:$0xff]   ;;  %v10044_v27 = vld [vmem:[#allocation6 + $0x1040] ss:$40 sps:$4 sm:$0xff]   ;;  %v10049_v28 = vld [vmem:[#allocation6 + $0xb94] ss:$40 sps:$4 sm:$0xff]  }
  0x9e   :  { %4010 = vmatpush1.bf16.msra.mxu0 %v9967_v30  ;;  %v10052_v29 = vld [vmem:[#allocation6 + $0x1094] ss:$40 sps:$4 sm:$0xff]   ;;  %v10047_v30 = vld [vmem:[#allocation6 + $0xb90] ss:$40 sps:$4 sm:$0xff]   ;;  %v10065_v46 = vld [vmem:[#allocation6 + $0xc80] ss:$40 sps:$4 sm:$0xff]  }
  0x9f   :  { %4051 = vmatpush1.bf16.msra.mxu1 %v9968_v31  ;;  %4011 = vmatprep.subr.bf16.mxu0 %v9969_v32  ;;  %v10050_v31 = vld [vmem:[#allocation6 + $0x1090] ss:$40 sps:$4 sm:$0xff]   ;;  %v10055_v32 = vld [vmem:[#allocation6 + $0xbe4] ss:$40 sps:$4 sm:$0xff]   ;;  %v10076_v50 = vld [vmem:[#allocation6 + $0x11d4] ss:$40 sps:$4 sm:$0xff]  }
  0xa0   :  { %4052 = vmatprep.subr.bf16.mxu1 %v9971_v33  ;;  %v10058_v33 = vld [vmem:[#allocation6 + $0x10e4] ss:$40 sps:$4 sm:$0xff]   ;;  %v10095_v4 = vld [vmem:[#allocation6 + $0xe10] ss:$40 sps:$4 sm:$0xff]  }
  0xa1   :  { %v10098_v5 = vld [vmem:[#allocation6 + $0x1310] ss:$40 sps:$4 sm:$0xff]  }
  0xa2   :  { %4012 = vmatpush1.bf16.msra.mxu0 %v9973_v34  ;;  %v134_v34 = vld [vmem:[#allocation3 + $0x28] sm:$0xff] }
  0xa3   :  { %4053 = vmatpush1.bf16.msra.mxu1 %v9974_v35  ;;  %4013 = vmatprep.subr.bf16.mxu0 %v9975_v36  ;;  %v10053_v35 = vld [vmem:[#allocation6 + $0xbe0] ss:$40 sps:$4 sm:$0xff]   ;;  %v11820_v36 = vpack.c.bf16 %v134_v34, %v134_v34 }
  0xa4   :  { %4054 = vmatprep.subr.bf16.mxu1 %v9977_v37  ;;  %v136_v37 = vld [vmem:[#allocation3 + $0x38] sm:$0xff] }
  0xa5   :  { %v10131_v34 = vld [vmem:[#allocation6 + $0xf8] ss:$40 sps:$4 sm:$0xff]  }
  0xa6   :  { %4014 = vmatpush1.bf16.msra.mxu0 %v9979_v38  ;;  %v10056_v38 = vld [vmem:[#allocation6 + $0x10e0] ss:$40 sps:$4 sm:$0xff]  }
  0xa7   :  { %4055 = vmatpush1.bf16.msra.mxu1 %v9980_v39  ;;  %4015 = vmatprep.subr.bf16.mxu0 %v9981_v40  ;;  %v10061_v39 = vld [vmem:[#allocation6 + $0xc34] ss:$40 sps:$4 sm:$0xff]   ;;  %v11822_v40 = vpack.c.bf16 %v136_v37, %v136_v37 }
  0xa8   :  { %4056 = vmatprep.subr.bf16.mxu1 %v9983_v41  ;;  %v10064_v41 = vld [vmem:[#allocation6 + $0x1134] ss:$40 sps:$4 sm:$0xff]  }
  0xa9   :  { %v10139_v37 = vld [vmem:[#allocation6 + $0x14c] ss:$40 sps:$4 sm:$0xff]  }
  0xaa   :  { %4016 = vmatpush1.bf16.msra.mxu0 %v9985_v42  ;;  %v10059_v42 = vld [vmem:[#allocation6 + $0xc30] ss:$40 sps:$4 sm:$0xff]  }
  0xab   :  { %4057 = vmatpush1.bf16.msra.mxu1 %v9986_v43  ;;  %4017 = vmatprep.subr.bf16.mxu0 %v9987_v44  ;;  %v10062_v43 = vld [vmem:[#allocation6 + $0x1130] ss:$40 sps:$4 sm:$0xff]   ;;  %v10067_v44 = vld [vmem:[#allocation6 + $0xc84] ss:$40 sps:$4 sm:$0xff]  }
  0xac   :  { %4058 = vmatprep.subr.bf16.mxu1 %v9989_v45  ;;  %v10070_v45 = vld [vmem:[#allocation6 + $0x1184] ss:$40 sps:$4 sm:$0xff]  }
  0xae   :  { %4018 = vmatpush1.bf16.msra.mxu0 %v9991_v47  ;;  %v10068_v47 = vld [vmem:[#allocation6 + $0x1180] ss:$40 sps:$4 sm:$0xff]  }
  0xaf   :  { %4059 = vmatpush1.bf16.msra.mxu1 %v9992_v48  ;;  %4019 = vmatprep.subr.bf16.mxu0 %v9993_v51  ;;  %v10073_v48 = vld [vmem:[#allocation6 + $0xcd4] ss:$40 sps:$4 sm:$0xff]   ;;  %v10071_v51 = vld [vmem:[#allocation6 + $0xcd0] ss:$40 sps:$4 sm:$0xff]  }
  0xb0   :  { %4060 = vmatprep.subr.bf16.mxu1 %v9995_v53  ;;  %v10074_v53 = vld [vmem:[#allocation6 + $0x11d0] ss:$40 sps:$4 sm:$0xff]  }
  0xb2   :  { %4020 = vmatpush1.bf16.msra.mxu0 %v9997_v54  ;;  %v10079_v54 = vld [vmem:[#allocation6 + $0xd24] ss:$40 sps:$4 sm:$0xff]  }
  0xb3   :  { %4061 = vmatpush1.bf16.msra.mxu1 %v9998_v55  ;;  %4021 = vmatprep.subr.bf16.mxu0 %v9999_v56  ;;  %v10082_v55 = vld [vmem:[#allocation6 + $0x1224] ss:$40 sps:$4 sm:$0xff]   ;;  %v10077_v56 = vld [vmem:[#allocation6 + $0xd20] ss:$40 sps:$4 sm:$0xff]  }
  0xb4   :  { %4062 = vmatprep.subr.bf16.mxu1 %v10001_v57  ;;  %v10080_v57 = vld [vmem:[#allocation6 + $0x1220] ss:$40 sps:$4 sm:$0xff]  }
  0xb6   :  { %4022 = vmatpush1.bf16.msra.mxu0 %v10003_v58  ;;  %v10085_v58 = vld [vmem:[#allocation6 + $0xd74] ss:$40 sps:$4 sm:$0xff]  }
  0xb7   :  { %4063 = vmatpush1.bf16.msra.mxu1 %v10004_v59  ;;  %4023 = vmatprep.subr.bf16.mxu0 %v10005_v60  ;;  %v10088_v59 = vld [vmem:[#allocation6 + $0x1274] ss:$40 sps:$4 sm:$0xff]   ;;  %v10083_v60 = vld [vmem:[#allocation6 + $0xd70] ss:$40 sps:$4 sm:$0xff]  }
  0xb8   :  { %4064 = vmatprep.subr.bf16.mxu1 %v10007_v61  ;;  %v10086_v61 = vld [vmem:[#allocation6 + $0x1270] ss:$40 sps:$4 sm:$0xff]  }
  0xba   :  { %4024 = vmatpush1.bf16.msra.mxu0 %v10009_v62  ;;  %v10091_v62 = vld [vmem:[#allocation6 + $0xdc4] ss:$40 sps:$4 sm:$0xff]  }
  0xbb   :  { %4065 = vmatpush1.bf16.msra.mxu1 %v10010_v63  ;;  %4025 = vmatprep.subr.bf16.mxu0 %v10011_v0  ;;  %v10094_v63 = vld [vmem:[#allocation6 + $0x12c4] ss:$40 sps:$4 sm:$0xff]   ;;  %v10089_v0 = vld [vmem:[#allocation6 + $0xdc0] ss:$40 sps:$4 sm:$0xff]  }
  0xbc   :  { %4066 = vmatprep.subr.bf16.mxu1 %v10013_v1  ;;  %v10092_v1 = vld [vmem:[#allocation6 + $0x12c0] ss:$40 sps:$4 sm:$0xff]  }
  0xbe   :  { %4026 = vmatpush1.bf16.msra.mxu0 %v10015_v2  ;;  %v10097_v2 = vld [vmem:[#allocation6 + $0xe14] ss:$40 sps:$4 sm:$0xff]  }
  0xbf   :  { %4067 = vmatpush1.bf16.msra.mxu1 %v10016_v3  ;;  %4077 = vmatprep.subr.bf16.mxu0 %v10019_v6  ;;  %v10100_v3 = vld [vmem:[#allocation6 + $0x1314] ss:$40 sps:$4 sm:$0xff]   ;;  %v10103_v6 = vld [vmem:[#allocation6 + $0xe64] ss:$40 sps:$4 sm:$0xff]  }
  0xc0   :  { %4118 = vmatprep.subr.bf16.mxu1 %v10022_v7  ;;  %v10106_v7 = vld [vmem:[#allocation6 + $0x1364] ss:$40 sps:$4 sm:$0xff]  }
  0xc1   :  { %4028 = vmatmul.mubr.bf16.vlgmr.msra.gmra.mrb[0].mxu0 %v11814_v8 }
  0xc2   :  { %4069 = vmatmul.mubr.bf16.vlgmr.msra.gmra.mrb[0].mxu1 %v11816_v9  ;;  %4078 = vmatpush1.bf16.msra.mxu0 %v10017_v10  ;;  %v10101_v10 = vld [vmem:[#allocation6 + $0xe60] ss:$40 sps:$4 sm:$0xff]  }
  0xc3   :  { %4119 = vmatpush1.bf16.msra.mxu1 %v10020_v11  ;;  %4079 = vmatprep.subr.bf16.mxu0 %v10025_v12  ;;  %v10104_v11 = vld [vmem:[#allocation6 + $0x1360] ss:$40 sps:$4 sm:$0xff]   ;;  %v10109_v12 = vld [vmem:[#allocation6 + $0xeb4] ss:$40 sps:$4 sm:$0xff]  }
  0xc4   :  { %4120 = vmatprep.subr.bf16.mxu1 %v10028_v13  ;;  %4109 = vmatprep.mubr.bf16.mxu0 %v11820_v36  ;;  %v10112_v13 = vld [vmem:[#allocation6 + $0x13b4] ss:$40 sps:$4 sm:$0xff]  }
  0xc5   :  { %4150 = vmatprep.mubr.bf16.mxu1 %v11822_v40 }
  0xc6   :  { %4080 = vmatpush1.bf16.msra.mxu0 %v10023_v14  ;;  %v10107_v14 = vld [vmem:[#allocation6 + $0xeb0] ss:$40 sps:$4 sm:$0xff]  }
  0xc7   :  { %4121 = vmatpush1.bf16.msra.mxu1 %v10026_v15  ;;  %4081 = vmatprep.subr.bf16.mxu0 %v10031_v16  ;;  %v10110_v15 = vld [vmem:[#allocation6 + $0x13b0] ss:$40 sps:$4 sm:$0xff]   ;;  %v133_v16 = vld [vmem:[#allocation3 + $0x20] sm:$0xff] }
  0xc8   :  { %4122 = vmatprep.subr.bf16.mxu1 %v10034_v17  ;;  %v10115_v17 = vld [vmem:[#allocation6 + $0xc] ss:$40 sps:$4 sm:$0xff]  }
  0xca   :  { %4082 = vmatpush1.bf16.msra.mxu0 %v10029_v18  ;;  %v135_v18 = vld [vmem:[#allocation3 + $0x30] sm:$0xff] }
  0xcb   :  { %4123 = vmatpush1.bf16.msra.mxu1 %v10032_v19  ;;  %4083 = vmatprep.subr.bf16.mxu0 %v10037_v20  ;;  %v10118_v19 = vld [vmem:[#allocation6 + $0x50c] ss:$40 sps:$4 sm:$0xff]   ;;  %v11826_v20 = vpack.c.bf16 %v133_v16, %v133_v16  ;;  %v10191_v16 = vld [vmem:[#allocation6 + $0x418] ss:$40 sps:$4 sm:$0xff]  }
  0xcc   :  { %4124 = vmatprep.subr.bf16.mxu1 %v10040_v21  ;;  %v10113_v21 = vld [vmem:[#allocation6 + $0x8] ss:$40 sps:$4 sm:$0xff]  }
  0xce   :  { %4084 = vmatpush1.bf16.msra.mxu0 %v10035_v22  ;;  %v10116_v22 = vld [vmem:[#allocation6 + $0x508] ss:$40 sps:$4 sm:$0xff]  }
  0xcf   :  { %4125 = vmatpush1.bf16.msra.mxu1 %v10038_v23  ;;  %4085 = vmatprep.subr.bf16.mxu0 %v10043_v24  ;;  %v11828_v23 = vpack.c.bf16 %v135_v18, %v135_v18  ;;  %v10121_v24 = vld [vmem:[#allocation6 + $0x5c] ss:$40 sps:$4 sm:$0xff]   ;;  %v10199_v18 = vld [vmem:[#allocation6 + $0x46c] ss:$40 sps:$4 sm:$0xff]  }
  0xd0   :  { %4126 = vmatprep.subr.bf16.mxu1 %v10046_v25  ;;  %v10124_v25 = vld [vmem:[#allocation6 + $0x55c] ss:$40 sps:$4 sm:$0xff]  }
  0xd2   :  { %4086 = vmatpush1.bf16.msra.mxu0 %v10041_v26  ;;  %v10119_v26 = vld [vmem:[#allocation6 + $0x58] ss:$40 sps:$4 sm:$0xff]  }
  0xd3   :  { %4127 = vmatpush1.bf16.msra.mxu1 %v10044_v27  ;;  %4087 = vmatprep.subr.bf16.mxu0 %v10049_v28  ;;  %v10122_v27 = vld [vmem:[#allocation6 + $0x558] ss:$40 sps:$4 sm:$0xff]   ;;  %v10127_v28 = vld [vmem:[#allocation6 + $0xac] ss:$40 sps:$4 sm:$0xff]  }
  0xd4   :  { %4128 = vmatprep.subr.bf16.mxu1 %v10052_v29  ;;  %v10130_v29 = vld [vmem:[#allocation6 + $0x5ac] ss:$40 sps:$4 sm:$0xff]  }
  0xd6   :  { %4088 = vmatpush1.bf16.msra.mxu0 %v10047_v30  ;;  %v10125_v30 = vld [vmem:[#allocation6 + $0xa8] ss:$40 sps:$4 sm:$0xff]  }
  0xd7   :  { %4129 = vmatpush1.bf16.msra.mxu1 %v10050_v31  ;;  %4089 = vmatprep.subr.bf16.mxu0 %v10055_v32  ;;  %v10128_v31 = vld [vmem:[#allocation6 + $0x5a8] ss:$40 sps:$4 sm:$0xff]   ;;  %v10133_v32 = vld [vmem:[#allocation6 + $0xfc] ss:$40 sps:$4 sm:$0xff]  }
  0xd8   :  { %4130 = vmatprep.subr.bf16.mxu1 %v10058_v33  ;;  %v10136_v33 = vld [vmem:[#allocation6 + $0x5fc] ss:$40 sps:$4 sm:$0xff]  }
  0xda   :  { %4090 = vmatpush1.bf16.msra.mxu0 %v10053_v35  ;;  %v10134_v35 = vld [vmem:[#allocation6 + $0x5f8] ss:$40 sps:$4 sm:$0xff]  }
  0xdb   :  { %4131 = vmatpush1.bf16.msra.mxu1 %v10056_v38  ;;  %4091 = vmatprep.subr.bf16.mxu0 %v10061_v39  ;;  %v10142_v38 = vld [vmem:[#allocation6 + $0x64c] ss:$40 sps:$4 sm:$0xff]   ;;  %v10137_v39 = vld [vmem:[#allocation6 + $0x148] ss:$40 sps:$4 sm:$0xff]  }
  0xdc   :  { %4132 = vmatprep.subr.bf16.mxu1 %v10064_v41  ;;  %v10140_v41 = vld [vmem:[#allocation6 + $0x648] ss:$40 sps:$4 sm:$0xff]  }
  0xde   :  { %4092 = vmatpush1.bf16.msra.mxu0 %v10059_v42  ;;  %v10145_v42 = vld [vmem:[#allocation6 + $0x19c] ss:$40 sps:$4 sm:$0xff]  }
  0xdf   :  { %4133 = vmatpush1.bf16.msra.mxu1 %v10062_v43  ;;  %4093 = vmatprep.subr.bf16.mxu0 %v10067_v44  ;;  %v10148_v43 = vld [vmem:[#allocation6 + $0x69c] ss:$40 sps:$4 sm:$0xff]   ;;  %v10143_v44 = vld [vmem:[#allocation6 + $0x198] ss:$40 sps:$4 sm:$0xff]  }
  0xe0   :  { %4134 = vmatprep.subr.bf16.mxu1 %v10070_v45  ;;  %v10146_v45 = vld [vmem:[#allocation6 + $0x698] ss:$40 sps:$4 sm:$0xff]  }
  0xe2   :  { %4094 = vmatpush1.bf16.msra.mxu0 %v10065_v46  ;;  %v10151_v46 = vld [vmem:[#allocation6 + $0x1ec] ss:$40 sps:$4 sm:$0xff]  }
  0xe3   :  { %4135 = vmatpush1.bf16.msra.mxu1 %v10068_v47  ;;  %4095 = vmatprep.subr.bf16.mxu0 %v10073_v48  ;;  %v10154_v47 = vld [vmem:[#allocation6 + $0x6ec] ss:$40 sps:$4 sm:$0xff]   ;;  %v10149_v48 = vld [vmem:[#allocation6 + $0x1e8] ss:$40 sps:$4 sm:$0xff]  }
  0xe4   :  { %4136 = vmatprep.subr.bf16.mxu1 %v10076_v50  ;;  %v10152_v50 = vld [vmem:[#allocation6 + $0x6e8] ss:$40 sps:$4 sm:$0xff]  }
  0xe6   :  { %4096 = vmatpush1.bf16.msra.mxu0 %v10071_v51  ;;  %v10157_v51 = vld [vmem:[#allocation6 + $0x23c] ss:$40 sps:$4 sm:$0xff]  }
  0xe7   :  { %4137 = vmatpush1.bf16.msra.mxu1 %v10074_v53  ;;  %4097 = vmatprep.subr.bf16.mxu0 %v10079_v54  ;;  %v10160_v53 = vld [vmem:[#allocation6 + $0x73c] ss:$40 sps:$4 sm:$0xff]   ;;  %v10155_v54 = vld [vmem:[#allocation6 + $0x238] ss:$40 sps:$4 sm:$0xff]  }
  0xe8   :  { %4138 = vmatprep.subr.bf16.mxu1 %v10082_v55  ;;  %v10158_v55 = vld [vmem:[#allocation6 + $0x738] ss:$40 sps:$4 sm:$0xff]  }
  0xea   :  { %4098 = vmatpush1.bf16.msra.mxu0 %v10077_v56  ;;  %v10163_v56 = vld [vmem:[#allocation6 + $0x28c] ss:$40 sps:$4 sm:$0xff]  }
  0xeb   :  { %4139 = vmatpush1.bf16.msra.mxu1 %v10080_v57  ;;  %4099 = vmatprep.subr.bf16.mxu0 %v10085_v58  ;;  %v10166_v57 = vld [vmem:[#allocation6 + $0x78c] ss:$40 sps:$4 sm:$0xff]   ;;  %v10161_v58 = vld [vmem:[#allocation6 + $0x288] ss:$40 sps:$4 sm:$0xff]  }
  0xec   :  { %4140 = vmatprep.subr.bf16.mxu1 %v10088_v59  ;;  %v10164_v59 = vld [vmem:[#allocation6 + $0x788] ss:$40 sps:$4 sm:$0xff]  }
  0xee   :  { %4100 = vmatpush1.bf16.msra.mxu0 %v10083_v60  ;;  %v10169_v60 = vld [vmem:[#allocation6 + $0x2dc] ss:$40 sps:$4 sm:$0xff]  }
  0xef   :  { %4141 = vmatpush1.bf16.msra.mxu1 %v10086_v61  ;;  %4101 = vmatprep.subr.bf16.mxu0 %v10091_v62  ;;  %v10172_v61 = vld [vmem:[#allocation6 + $0x7dc] ss:$40 sps:$4 sm:$0xff]   ;;  %v10167_v62 = vld [vmem:[#allocation6 + $0x2d8] ss:$40 sps:$4 sm:$0xff]  }
  0xf0   :  { %4142 = vmatprep.subr.bf16.mxu1 %v10094_v63  ;;  %v10170_v63 = vld [vmem:[#allocation6 + $0x7d8] ss:$40 sps:$4 sm:$0xff]  }
  0xf2   :  { %4102 = vmatpush1.bf16.msra.mxu0 %v10089_v0  ;;  %v10175_v0 = vld [vmem:[#allocation6 + $0x32c] ss:$40 sps:$4 sm:$0xff]  }
  0xf3   :  { %4143 = vmatpush1.bf16.msra.mxu1 %v10092_v1  ;;  %4103 = vmatprep.subr.bf16.mxu0 %v10097_v2  ;;  %v10178_v1 = vld [vmem:[#allocation6 + $0x82c] ss:$40 sps:$4 sm:$0xff]   ;;  %v10173_v2 = vld [vmem:[#allocation6 + $0x328] ss:$40 sps:$4 sm:$0xff]  }
  0xf4   :  { %4144 = vmatprep.subr.bf16.mxu1 %v10100_v3  ;;  %v10176_v3 = vld [vmem:[#allocation6 + $0x828] ss:$40 sps:$4 sm:$0xff]  }
  0xf6   :  { %4104 = vmatpush1.bf16.msra.mxu0 %v10095_v4  ;;  %v10181_v4 = vld [vmem:[#allocation6 + $0x37c] ss:$40 sps:$4 sm:$0xff]  }
  0xf7   :  { %4145 = vmatpush1.bf16.msra.mxu1 %v10098_v5  ;;  %4105 = vmatprep.subr.bf16.mxu0 %v10103_v6  ;;  %v10184_v5 = vld [vmem:[#allocation6 + $0x87c] ss:$40 sps:$4 sm:$0xff]   ;;  %v10179_v6 = vld [vmem:[#allocation6 + $0x378] ss:$40 sps:$4 sm:$0xff]  }
  0xf8   :  { %4146 = vmatprep.subr.bf16.mxu1 %v10106_v7  ;;  %v10182_v7 = vld [vmem:[#allocation6 + $0x878] ss:$40 sps:$4 sm:$0xff]  }
  0xfa   :  { %4106 = vmatpush1.bf16.msra.mxu0 %v10101_v10  ;;  %v10187_v10 = vld [vmem:[#allocation6 + $0x3cc] ss:$40 sps:$4 sm:$0xff]  }
  0xfb   :  { %4147 = vmatpush1.bf16.msra.mxu1 %v10104_v11  ;;  %4107 = vmatprep.subr.bf16.mxu0 %v10109_v12  ;;  %v10190_v11 = vld [vmem:[#allocation6 + $0x8cc] ss:$40 sps:$4 sm:$0xff]   ;;  %v10185_v12 = vld [vmem:[#allocation6 + $0x3c8] ss:$40 sps:$4 sm:$0xff]  }
  0xfc   :  { %4148 = vmatprep.subr.bf16.mxu1 %v10112_v13  ;;  %v10188_v13 = vld [vmem:[#allocation6 + $0x8c8] ss:$40 sps:$4 sm:$0xff]  }
  0xfe   :  { %4108 = vmatpush1.bf16.msra.mxu0 %v10107_v14  ;;  %v10193_v14 = vld [vmem:[#allocation6 + $0x41c] ss:$40 sps:$4 sm:$0xff]  }
  0xff   :  { %4149 = vmatpush1.bf16.msra.mxu1 %v10110_v15  ;;  %4159 = vmatprep.subr.bf16.mxu0 %v10115_v17  ;;  %v10196_v15 = vld [vmem:[#allocation6 + $0x91c] ss:$40 sps:$4 sm:$0xff]   ;;  %v10194_v17 = vld [vmem:[#allocation6 + $0x918] ss:$40 sps:$4 sm:$0xff]  }
 0x100   :  { %4200 = vmatprep.subr.bf16.mxu1 %v10118_v19  ;;  %v10202_v19 = vld [vmem:[#allocation6 + $0x96c] ss:$40 sps:$4 sm:$0xff]  }
 0x101   :  { %4110 = vmatmul.mubr.bf16.vlgmr.msra.gmra.mrb[4].mxu0 %v11826_v20 }
 0x102   :  { %4151 = vmatmul.mubr.bf16.vlgmr.msra.gmra.mrb[4].mxu1 %v11828_v23  ;;  %4160 = vmatpush1.bf16.msra.mxu0 %v10113_v21  ;;  %v10197_v21 = vld [vmem:[#allocation6 + $0x468] ss:$40 sps:$4 sm:$0xff]  }
 0x103   :  { %4201 = vmatpush1.bf16.msra.mxu1 %v10116_v22  ;;  %4161 = vmatprep.subr.bf16.mxu0 %v10121_v24  ;;  %v10200_v22 = vld [vmem:[#allocation6 + $0x968] ss:$40 sps:$4 sm:$0xff]   ;;  %v10205_v24 = vld [vmem:[#allocation6 + $0x4bc] ss:$40 sps:$4 sm:$0xff]  }
 0x104   :  { %4202 = vmatprep.subr.bf16.mxu1 %v10124_v25  ;;  %4191 = vmatprep.mubr.bf16.mxu0 %v11808_v49  ;;  %v10208_v25 = vld [vmem:[#allocation6 + $0x9bc] ss:$40 sps:$4 sm:$0xff]  }
 0x105   :  { %4232 = vmatprep.mubr.bf16.mxu1 %v11810_v52 }
 0x106   :  { %4162 = vmatpush1.bf16.msra.mxu0 %v10119_v26  ;;  %v10203_v26 = vld [vmem:[#allocation6 + $0x4b8] ss:$40 sps:$4 sm:$0xff]  }
 0x107   :  { %4203 = vmatpush1.bf16.msra.mxu1 %v10122_v27  ;;  %4163 = vmatprep.subr.bf16.mxu0 %v10127_v28  ;;  %v10206_v27 = vld [vmem:[#allocation6 + $0x9b8] ss:$40 sps:$4 sm:$0xff]   ;;  %v10211_v28 = vld [vmem:[#allocation6 + $0xa0c] ss:$40 sps:$4 sm:$0xff]  }
 0x108   :  { %4204 = vmatprep.subr.bf16.mxu1 %v10130_v29  ;;  %v10214_v29 = vld [vmem:[#allocation6 + $0xf0c] ss:$40 sps:$4 sm:$0xff]  }
 0x10a   :  { %4164 = vmatpush1.bf16.msra.mxu0 %v10125_v30  ;;  %v10209_v30 = vld [vmem:[#allocation6 + $0xa08] ss:$40 sps:$4 sm:$0xff]  }
 0x10b   :  { %4205 = vmatpush1.bf16.msra.mxu1 %v10128_v31  ;;  %4165 = vmatprep.subr.bf16.mxu0 %v10133_v32  ;;  %v10212_v31 = vld [vmem:[#allocation6 + $0xf08] ss:$40 sps:$4 sm:$0xff]   ;;  %v10217_v32 = vld [vmem:[#allocation6 + $0xa5c] ss:$40 sps:$4 sm:$0xff]  }
 0x10c   :  { %4206 = vmatprep.subr.bf16.mxu1 %v10136_v33  ;;  %v10220_v33 = vld [vmem:[#allocation6 + $0xf5c] ss:$40 sps:$4 sm:$0xff]  }
 0x10e   :  { %4166 = vmatpush1.bf16.msra.mxu0 %v10131_v34  ;;  %v10215_v34 = vld [vmem:[#allocation6 + $0xa58] ss:$40 sps:$4 sm:$0xff]  }
 0x10f   :  { %4207 = vmatpush1.bf16.msra.mxu1 %v10134_v35  ;;  %4167 = vmatprep.subr.bf16.mxu0 %v10139_v37  ;;  %v10218_v35 = vld [vmem:[#allocation6 + $0xf58] ss:$40 sps:$4 sm:$0xff]   ;;  %v10223_v37 = vld [vmem:[#allocation6 + $0xaac] ss:$40 sps:$4 sm:$0xff]  }
 0x110   :  { %4208 = vmatprep.subr.bf16.mxu1 %v10142_v38  ;;  %v10226_v38 = vld [vmem:[#allocation6 + $0xfac] ss:$40 sps:$4 sm:$0xff]  }
 0x112   :  { %4168 = vmatpush1.bf16.msra.mxu0 %v10137_v39  ;;  %v10221_v39 = vld [vmem:[#allocation6 + $0xaa8] ss:$40 sps:$4 sm:$0xff]  }
 0x113   :  { %4209 = vmatpush1.bf16.msra.mxu1 %v10140_v41  ;;  %4169 = vmatprep.subr.bf16.mxu0 %v10145_v42  ;;  %v10224_v41 = vld [vmem:[#allocation6 + $0xfa8] ss:$40 sps:$4 sm:$0xff]   ;;  %v10229_v42 = vld [vmem:[#allocation6 + $0xafc] ss:$40 sps:$4 sm:$0xff]  }
 0x114   :  { %4210 = vmatprep.subr.bf16.mxu1 %v10148_v43  ;;  %v10232_v43 = vld [vmem:[#allocation6 + $0xffc] ss:$40 sps:$4 sm:$0xff]  }
 0x116   :  { %4170 = vmatpush1.bf16.msra.mxu0 %v10143_v44  ;;  %v10227_v44 = vld [vmem:[#allocation6 + $0xaf8] ss:$40 sps:$4 sm:$0xff]  }
 0x117   :  { %4211 = vmatpush1.bf16.msra.mxu1 %v10146_v45  ;;  %4171 = vmatprep.subr.bf16.mxu0 %v10151_v46  ;;  %v10230_v45 = vld [vmem:[#allocation6 + $0xff8] ss:$40 sps:$4 sm:$0xff]   ;;  %v10235_v46 = vld [vmem:[#allocation6 + $0xb4c] ss:$40 sps:$4 sm:$0xff]  }
 0x118   :  { %4212 = vmatprep.subr.bf16.mxu1 %v10154_v47  ;;  %v10238_v47 = vld [vmem:[#allocation6 + $0x104c] ss:$40 sps:$4 sm:$0xff]  }
 0x11a   :  { %4172 = vmatpush1.bf16.msra.mxu0 %v10149_v48  ;;  %v10233_v48 = vld [vmem:[#allocation6 + $0xb48] ss:$40 sps:$4 sm:$0xff]  }
 0x11b   :  { %4213 = vmatpush1.bf16.msra.mxu1 %v10152_v50  ;;  %4173 = vmatprep.subr.bf16.mxu0 %v10157_v51  ;;  %v10236_v50 = vld [vmem:[#allocation6 + $0x1048] ss:$40 sps:$4 sm:$0xff]   ;;  %v10241_v51 = vld [vmem:[#allocation6 + $0xb9c] ss:$40 sps:$4 sm:$0xff]  }
 0x11c   :  { %4214 = vmatprep.subr.bf16.mxu1 %v10160_v53  ;;  %v10244_v53 = vld [vmem:[#allocation6 + $0x109c] ss:$40 sps:$4 sm:$0xff]  }
 0x11e   :  { %4174 = vmatpush1.bf16.msra.mxu0 %v10155_v54  ;;  %v10239_v54 = vld [vmem:[#allocation6 + $0xb98] ss:$40 sps:$4 sm:$0xff]  }
 0x11f   :  { %4215 = vmatpush1.bf16.msra.mxu1 %v10158_v55  ;;  %4175 = vmatprep.subr.bf16.mxu0 %v10163_v56  ;;  %v10242_v55 = vld [vmem:[#allocation6 + $0x1098] ss:$40 sps:$4 sm:$0xff]   ;;  %v10247_v56 = vld [vmem:[#allocation6 + $0xbec] ss:$40 sps:$4 sm:$0xff]  }
 0x120   :  { %4216 = vmatprep.subr.bf16.mxu1 %v10166_v57  ;;  %v10250_v57 = vld [vmem:[#allocation6 + $0x10ec] ss:$40 sps:$4 sm:$0xff]  }
 0x122   :  { %4176 = vmatpush1.bf16.msra.mxu0 %v10161_v58  ;;  %v10245_v58 = vld [vmem:[#allocation6 + $0xbe8] ss:$40 sps:$4 sm:$0xff]  }
 0x123   :  { %4217 = vmatpush1.bf16.msra.mxu1 %v10164_v59  ;;  %4177 = vmatprep.subr.bf16.mxu0 %v10169_v60  ;;  %v10248_v59 = vld [vmem:[#allocation6 + $0x10e8] ss:$40 sps:$4 sm:$0xff]   ;;  %v10253_v60 = vld [vmem:[#allocation6 + $0xc3c] ss:$40 sps:$4 sm:$0xff]  }
 0x124   :  { %4218 = vmatprep.subr.bf16.mxu1 %v10172_v61  ;;  %v10256_v61 = vld [vmem:[#allocation6 + $0x113c] ss:$40 sps:$4 sm:$0xff]  }
 0x126   :  { %4178 = vmatpush1.bf16.msra.mxu0 %v10167_v62  ;;  %v10251_v62 = vld [vmem:[#allocation6 + $0xc38] ss:$40 sps:$4 sm:$0xff]  }
 0x127   :  { %4219 = vmatpush1.bf16.msra.mxu1 %v10170_v63  ;;  %4179 = vmatprep.subr.bf16.mxu0 %v10175_v0  ;;  %v10254_v63 = vld [vmem:[#allocation6 + $0x1138] ss:$40 sps:$4 sm:$0xff]   ;;  %v10259_v0 = vld [vmem:[#allocation6 + $0xc8c] ss:$40 sps:$4 sm:$0xff]  }
 0x128   :  { %4220 = vmatprep.subr.bf16.mxu1 %v10178_v1  ;;  %v10262_v1 = vld [vmem:[#allocation6 + $0x118c] ss:$40 sps:$4 sm:$0xff]  }
 0x12a   :  { %4180 = vmatpush1.bf16.msra.mxu0 %v10173_v2  ;;  %v10257_v2 = vld [vmem:[#allocation6 + $0xc88] ss:$40 sps:$4 sm:$0xff]  }
 0x12b   :  { %4221 = vmatpush1.bf16.msra.mxu1 %v10176_v3  ;;  %4181 = vmatprep.subr.bf16.mxu0 %v10181_v4  ;;  %v10260_v3 = vld [vmem:[#allocation6 + $0x1188] ss:$40 sps:$4 sm:$0xff]   ;;  %v10265_v4 = vld [vmem:[#allocation6 + $0xcdc] ss:$40 sps:$4 sm:$0xff]  }
 0x12c   :  { %4222 = vmatprep.subr.bf16.mxu1 %v10184_v5  ;;  %v10268_v5 = vld [vmem:[#allocation6 + $0x11dc] ss:$40 sps:$4 sm:$0xff]  }
 0x12e   :  { %4182 = vmatpush1.bf16.msra.mxu0 %v10179_v6  ;;  %v10263_v6 = vld [vmem:[#allocation6 + $0xcd8] ss:$40 sps:$4 sm:$0xff]  }
 0x12f   :  { %4223 = vmatpush1.bf16.msra.mxu1 %v10182_v7  ;;  %4183 = vmatprep.subr.bf16.mxu0 %v10187_v10  ;;  %v10266_v7 = vld [vmem:[#allocation6 + $0x11d8] ss:$40 sps:$4 sm:$0xff]   ;;  %v10271_v10 = vld [vmem:[#allocation6 + $0xd2c] ss:$40 sps:$4 sm:$0xff]  }
 0x130   :  { %4224 = vmatprep.subr.bf16.mxu1 %v10190_v11  ;;  %v10274_v11 = vld [vmem:[#allocation6 + $0x122c] ss:$40 sps:$4 sm:$0xff]  }
 0x132   :  { %4184 = vmatpush1.bf16.msra.mxu0 %v10185_v12  ;;  %v10269_v12 = vld [vmem:[#allocation6 + $0xd28] ss:$40 sps:$4 sm:$0xff]  }
 0x133   :  { %4225 = vmatpush1.bf16.msra.mxu1 %v10188_v13  ;;  %4185 = vmatprep.subr.bf16.mxu0 %v10193_v14  ;;  %v10272_v13 = vld [vmem:[#allocation6 + $0x1228] ss:$40 sps:$4 sm:$0xff]   ;;  %v10277_v14 = vld [vmem:[#allocation6 + $0xd7c] ss:$40 sps:$4 sm:$0xff]  }
 0x134   :  { %4226 = vmatprep.subr.bf16.mxu1 %v10196_v15  ;;  %v10280_v15 = vld [vmem:[#allocation6 + $0x127c] ss:$40 sps:$4 sm:$0xff]  }
 0x136   :  { %4186 = vmatpush1.bf16.msra.mxu0 %v10191_v16  ;;  %v10275_v16 = vld [vmem:[#allocation6 + $0xd78] ss:$40 sps:$4 sm:$0xff]  }
 0x137   :  { %4227 = vmatpush1.bf16.msra.mxu1 %v10194_v17  ;;  %4187 = vmatprep.subr.bf16.mxu0 %v10199_v18  ;;  %v10278_v17 = vld [vmem:[#allocation6 + $0x1278] ss:$40 sps:$4 sm:$0xff]   ;;  %v10283_v18 = vld [vmem:[#allocation6 + $0xdcc] ss:$40 sps:$4 sm:$0xff]  }
 0x138   :  { %4228 = vmatprep.subr.bf16.mxu1 %v10202_v19  ;;  %v10286_v19 = vld [vmem:[#allocation6 + $0x12cc] ss:$40 sps:$4 sm:$0xff]  }
 0x13a   :  { %4188 = vmatpush1.bf16.msra.mxu0 %v10197_v21  ;;  %v10281_v21 = vld [vmem:[#allocation6 + $0xdc8] ss:$40 sps:$4 sm:$0xff]  }
 0x13b   :  { %4229 = vmatpush1.bf16.msra.mxu1 %v10200_v22  ;;  %4189 = vmatprep.subr.bf16.mxu0 %v10205_v24  ;;  %v10284_v22 = vld [vmem:[#allocation6 + $0x12c8] ss:$40 sps:$4 sm:$0xff]   ;;  %v10289_v24 = vld [vmem:[#allocation6 + $0xe1c] ss:$40 sps:$4 sm:$0xff]  }
 0x13c   :  { %4230 = vmatprep.subr.bf16.mxu1 %v10208_v25  ;;  %v10292_v25 = vld [vmem:[#allocation6 + $0x131c] ss:$40 sps:$4 sm:$0xff]  }
 0x13e   :  { %4190 = vmatpush1.bf16.msra.mxu0 %v10203_v26  ;;  %v10287_v26 = vld [vmem:[#allocation6 + $0xe18] ss:$40 sps:$4 sm:$0xff]  }
 0x13f   :  { %4231 = vmatpush1.bf16.msra.mxu1 %v10206_v27  ;;  %4241 = vmatprep.subr.bf16.mxu0 %v10211_v28  ;;  %v10290_v27 = vld [vmem:[#allocation6 + $0x1318] ss:$40 sps:$4 sm:$0xff]   ;;  %v10295_v28 = vld [vmem:[#allocation6 + $0xe6c] ss:$40 sps:$4 sm:$0xff]  }
 0x140   :  { %4282 = vmatprep.subr.bf16.mxu1 %v10214_v29  ;;  %v10298_v29 = vld [vmem:[#allocation6 + $0x136c] ss:$40 sps:$4 sm:$0xff]  }
 0x141   :  { %4192 = vmatmul.mubr.bf16.vlgmr.msra.gmra.mrb[8].mxu0 %v11814_v8 }
 0x142   :  { %4233 = vmatmul.mubr.bf16.vlgmr.msra.gmra.mrb[8].mxu1 %v11816_v9  ;;  %4242 = vmatpush1.bf16.msra.mxu0 %v10209_v30  ;;  %v10293_v30 = vld [vmem:[#allocation6 + $0xe68] ss:$40 sps:$4 sm:$0xff]  }
 0x143   :  { %4283 = vmatpush1.bf16.msra.mxu1 %v10212_v31  ;;  %4243 = vmatprep.subr.bf16.mxu0 %v10217_v32  ;;  %v10296_v31 = vld [vmem:[#allocation6 + $0x1368] ss:$40 sps:$4 sm:$0xff]   ;;  %v10301_v32 = vld [vmem:[#allocation6 + $0xebc] ss:$40 sps:$4 sm:$0xff]  }
 0x144   :  { %4284 = vmatprep.subr.bf16.mxu1 %v10220_v33  ;;  %4273 = vmatprep.mubr.bf16.mxu0 %v11820_v36  ;;  %v10304_v33 = vld [vmem:[#allocation6 + $0x13bc] ss:$40 sps:$4 sm:$0xff]  }
 0x145   :  { %4314 = vmatprep.mubr.bf16.mxu1 %v11822_v40 }
 0x146   :  { %4244 = vmatpush1.bf16.msra.mxu0 %v10215_v34  ;;  %v10299_v34 = vld [vmem:[#allocation6 + $0xeb8] ss:$40 sps:$4 sm:$0xff]  }
 0x147   :  { %4285 = vmatpush1.bf16.msra.mxu1 %v10218_v35  ;;  %4245 = vmatprep.subr.bf16.mxu0 %v10223_v37  ;;  %v10302_v35 = vld [vmem:[#allocation6 + $0x13b8] ss:$40 sps:$4 sm:$0xff]   ;;  %v10307_v37 = vld [vmem:[#allocation6 + $0x14] ss:$40 sps:$4 sm:$0xff]  }
 0x148   :  { %4286 = vmatprep.subr.bf16.mxu1 %v10226_v38  ;;  %v10310_v38 = vld [vmem:[#allocation6 + $0x514] ss:$40 sps:$4 sm:$0xff]  }
 0x14a   :  { %4246 = vmatpush1.bf16.msra.mxu0 %v10221_v39  ;;  %v10305_v39 = vld [vmem:[#allocation6 + $0x10] ss:$40 sps:$4 sm:$0xff]  }
 0x14b   :  { %4287 = vmatpush1.bf16.msra.mxu1 %v10224_v41  ;;  %4247 = vmatprep.subr.bf16.mxu0 %v10229_v42  ;;  %v10308_v41 = vld [vmem:[#allocation6 + $0x510] ss:$40 sps:$4 sm:$0xff]   ;;  %v10313_v42 = vld [vmem:[#allocation6 + $0x64] ss:$40 sps:$4 sm:$0xff]  }
 0x14c   :  { %4288 = vmatprep.subr.bf16.mxu1 %v10232_v43  ;;  %v10316_v43 = vld [vmem:[#allocation6 + $0x564] ss:$40 sps:$4 sm:$0xff]  }
 0x14e   :  { %4248 = vmatpush1.bf16.msra.mxu0 %v10227_v44  ;;  %v10311_v44 = vld [vmem:[#allocation6 + $0x60] ss:$40 sps:$4 sm:$0xff]  }
 0x14f   :  { %4289 = vmatpush1.bf16.msra.mxu1 %v10230_v45  ;;  %4249 = vmatprep.subr.bf16.mxu0 %v10235_v46  ;;  %v10314_v45 = vld [vmem:[#allocation6 + $0x560] ss:$40 sps:$4 sm:$0xff]   ;;  %v10319_v46 = vld [vmem:[#allocation6 + $0xb4] ss:$40 sps:$4 sm:$0xff]  }
 0x150   :  { %4290 = vmatprep.subr.bf16.mxu1 %v10238_v47  ;;  %v10322_v47 = vld [vmem:[#allocation6 + $0x5b4] ss:$40 sps:$4 sm:$0xff]  }
 0x152   :  { %4250 = vmatpush1.bf16.msra.mxu0 %v10233_v48  ;;  %v10317_v48 = vld [vmem:[#allocation6 + $0xb0] ss:$40 sps:$4 sm:$0xff]  }
 0x153   :  { %4291 = vmatpush1.bf16.msra.mxu1 %v10236_v50  ;;  %4251 = vmatprep.subr.bf16.mxu0 %v10241_v51  ;;  %v10320_v50 = vld [vmem:[#allocation6 + $0x5b0] ss:$40 sps:$4 sm:$0xff]   ;;  %v10325_v51 = vld [vmem:[#allocation6 + $0x104] ss:$40 sps:$4 sm:$0xff]  }
 0x154   :  { %4292 = vmatprep.subr.bf16.mxu1 %v10244_v53  ;;  %v10328_v53 = vld [vmem:[#allocation6 + $0x604] ss:$40 sps:$4 sm:$0xff]  }
 0x156   :  { %4252 = vmatpush1.bf16.msra.mxu0 %v10239_v54  ;;  %v10323_v54 = vld [vmem:[#allocation6 + $0x100] ss:$40 sps:$4 sm:$0xff]  }
 0x157   :  { %4293 = vmatpush1.bf16.msra.mxu1 %v10242_v55  ;;  %4253 = vmatprep.subr.bf16.mxu0 %v10247_v56  ;;  %v10326_v55 = vld [vmem:[#allocation6 + $0x600] ss:$40 sps:$4 sm:$0xff]   ;;  %v10331_v56 = vld [vmem:[#allocation6 + $0x154] ss:$40 sps:$4 sm:$0xff]  }
 0x158   :  { %4294 = vmatprep.subr.bf16.mxu1 %v10250_v57  ;;  %v10334_v57 = vld [vmem:[#allocation6 + $0x654] ss:$40 sps:$4 sm:$0xff]  }
 0x15a   :  { %4254 = vmatpush1.bf16.msra.mxu0 %v10245_v58  ;;  %v10329_v58 = vld [vmem:[#allocation6 + $0x150] ss:$40 sps:$4 sm:$0xff]  }
 0x15b   :  { %4295 = vmatpush1.bf16.msra.mxu1 %v10248_v59  ;;  %4255 = vmatprep.subr.bf16.mxu0 %v10253_v60  ;;  %v10332_v59 = vld [vmem:[#allocation6 + $0x650] ss:$40 sps:$4 sm:$0xff]   ;;  %v10337_v60 = vld [vmem:[#allocation6 + $0x1a4] ss:$40 sps:$4 sm:$0xff]  }
 0x15c   :  { %4296 = vmatprep.subr.bf16.mxu1 %v10256_v61  ;;  %v10340_v61 = vld [vmem:[#allocation6 + $0x6a4] ss:$40 sps:$4 sm:$0xff]  }
 0x15e   :  { %4256 = vmatpush1.bf16.msra.mxu0 %v10251_v62  ;;  %v10335_v62 = vld [vmem:[#allocation6 + $0x1a0] ss:$40 sps:$4 sm:$0xff]  }
 0x15f   :  { %4297 = vmatpush1.bf16.msra.mxu1 %v10254_v63  ;;  %4257 = vmatprep.subr.bf16.mxu0 %v10259_v0  ;;  %v10338_v63 = vld [vmem:[#allocation6 + $0x6a0] ss:$40 sps:$4 sm:$0xff]   ;;  %v10343_v0 = vld [vmem:[#allocation6 + $0x1f4] ss:$40 sps:$4 sm:$0xff]  }
 0x160   :  { %4298 = vmatprep.subr.bf16.mxu1 %v10262_v1  ;;  %v10346_v1 = vld [vmem:[#allocation6 + $0x6f4] ss:$40 sps:$4 sm:$0xff]  }
 0x162   :  { %4258 = vmatpush1.bf16.msra.mxu0 %v10257_v2 }
 0x163   :  { %4299 = vmatpush1.bf16.msra.mxu1 %v10260_v3  ;;  %4259 = vmatprep.subr.bf16.mxu0 %v10265_v4  ;;  %v10341_v4 = vld [vmem:[#allocation6 + $0x1f0] ss:$40 sps:$4 sm:$0xff]  }
 0x164   :  { %4300 = vmatprep.subr.bf16.mxu1 %v10268_v5  ;;  %v10344_v5 = vld [vmem:[#allocation6 + $0x6f0] ss:$40 sps:$4 sm:$0xff]  }
 0x166   :  { %4260 = vmatpush1.bf16.msra.mxu0 %v10263_v6 }
 0x167   :  { %4301 = vmatpush1.bf16.msra.mxu1 %v10266_v7  ;;  %4261 = vmatprep.subr.bf16.mxu0 %v10271_v10 }
 0x168   :  { %4302 = vmatprep.subr.bf16.mxu1 %v10274_v11 }
 0x16a   :  { %4262 = vmatpush1.bf16.msra.mxu0 %v10269_v12 }
 0x16b   :  { %4303 = vmatpush1.bf16.msra.mxu1 %v10272_v13  ;;  %4263 = vmatprep.subr.bf16.mxu0 %v10277_v14 }
 0x16c   :  { %4304 = vmatprep.subr.bf16.mxu1 %v10280_v15  ;;  %v10349_v15 = vld [vmem:[#allocation6 + $0x244] ss:$40 sps:$4 sm:$0xff]  }
 0x16e   :  { %4264 = vmatpush1.bf16.msra.mxu0 %v10275_v16  ;;  %v10352_v16 = vld [vmem:[#allocation6 + $0x744] ss:$40 sps:$4 sm:$0xff]  }
 0x16f   :  { %4305 = vmatpush1.bf16.msra.mxu1 %v10278_v17  ;;  %4265 = vmatprep.subr.bf16.mxu0 %v10283_v18  ;;  %v10347_v18 = vld [vmem:[#allocation6 + $0x240] ss:$40 sps:$4 sm:$0xff]  }
 0x170   :  { %4306 = vmatprep.subr.bf16.mxu1 %v10286_v19  ;;  %v10350_v19 = vld [vmem:[#allocation6 + $0x740] ss:$40 sps:$4 sm:$0xff]  }
 0x172   :  { %4266 = vmatpush1.bf16.msra.mxu0 %v10281_v21  ;;  %v10355_v21 = vld [vmem:[#allocation6 + $0x294] ss:$40 sps:$4 sm:$0xff]  }
 0x173   :  { %4307 = vmatpush1.bf16.msra.mxu1 %v10284_v22  ;;  %4267 = vmatprep.subr.bf16.mxu0 %v10289_v24  ;;  %v10358_v22 = vld [vmem:[#allocation6 + $0x794] ss:$40 sps:$4 sm:$0xff]   ;;  %v10353_v24 = vld [vmem:[#allocation6 + $0x290] ss:$40 sps:$4 sm:$0xff]  }
 0x174   :  { %4308 = vmatprep.subr.bf16.mxu1 %v10292_v25  ;;  %v10356_v25 = vld [vmem:[#allocation6 + $0x790] ss:$40 sps:$4 sm:$0xff]  }
 0x176   :  { %4268 = vmatpush1.bf16.msra.mxu0 %v10287_v26  ;;  %v10361_v26 = vld [vmem:[#allocation6 + $0x2e4] ss:$40 sps:$4 sm:$0xff]  }
 0x177   :  { %4309 = vmatpush1.bf16.msra.mxu1 %v10290_v27  ;;  %4269 = vmatprep.subr.bf16.mxu0 %v10295_v28  ;;  %v10364_v27 = vld [vmem:[#allocation6 + $0x7e4] ss:$40 sps:$4 sm:$0xff]   ;;  %v10359_v28 = vld [vmem:[#allocation6 + $0x2e0] ss:$40 sps:$4 sm:$0xff]  }
 0x178   :  { %4310 = vmatprep.subr.bf16.mxu1 %v10298_v29  ;;  %v10362_v29 = vld [vmem:[#allocation6 + $0x7e0] ss:$40 sps:$4 sm:$0xff]  }
 0x17a   :  { %4270 = vmatpush1.bf16.msra.mxu0 %v10293_v30  ;;  %v10367_v30 = vld [vmem:[#allocation6 + $0x334] ss:$40 sps:$4 sm:$0xff]  }
 0x17b   :  { %4311 = vmatpush1.bf16.msra.mxu1 %v10296_v31  ;;  %4271 = vmatprep.subr.bf16.mxu0 %v10301_v32  ;;  %v10370_v31 = vld [vmem:[#allocation6 + $0x834] ss:$40 sps:$4 sm:$0xff]   ;;  %v10365_v32 = vld [vmem:[#allocation6 + $0x330] ss:$40 sps:$4 sm:$0xff]  }
 0x17c   :  { %4312 = vmatprep.subr.bf16.mxu1 %v10304_v33  ;;  %v10368_v33 = vld [vmem:[#allocation6 + $0x830] ss:$40 sps:$4 sm:$0xff]  }
 0x17e   :  { %4272 = vmatpush1.bf16.msra.mxu0 %v10299_v34  ;;  %v10373_v34 = vld [vmem:[#allocation6 + $0x384] ss:$40 sps:$4 sm:$0xff]  }
 0x17f   :  { %4313 = vmatpush1.bf16.msra.mxu1 %v10302_v35  ;;  %4323 = vmatprep.subr.bf16.mxu0 %v10307_v37  ;;  %v10376_v35 = vld [vmem:[#allocation6 + $0x884] ss:$40 sps:$4 sm:$0xff]   ;;  %v10371_v37 = vld [vmem:[#allocation6 + $0x380] ss:$40 sps:$4 sm:$0xff]  }
 0x180   :  { %4364 = vmatprep.subr.bf16.mxu1 %v10310_v38  ;;  %v10374_v38 = vld [vmem:[#allocation6 + $0x880] ss:$40 sps:$4 sm:$0xff]  }
 0x181   :  { %4274 = vmatmul.mubr.bf16.vlgmr.msra.gmra.mrb[12].mxu0 %v11826_v20 }
 0x182   :  { %4315 = vmatmul.mubr.bf16.vlgmr.msra.gmra.mrb[12].mxu1 %v11828_v23  ;;  %4324 = vmatpush1.bf16.msra.mxu0 %v10305_v39  ;;  %v10379_v39 = vld [vmem:[#allocation6 + $0x3d4] ss:$40 sps:$4 sm:$0xff]  }
 0x183   :  { %4365 = vmatpush1.bf16.msra.mxu1 %v10308_v41  ;;  %4325 = vmatprep.subr.bf16.mxu0 %v10313_v42  ;;  %v10382_v41 = vld [vmem:[#allocation6 + $0x8d4] ss:$40 sps:$4 sm:$0xff]   ;;  %v10377_v42 = vld [vmem:[#allocation6 + $0x3d0] ss:$40 sps:$4 sm:$0xff]  }
 0x184   :  { %4366 = vmatprep.subr.bf16.mxu1 %v10316_v43  ;;  %4355 = vmatprep.mubr.bf16.mxu0 %v11808_v49  ;;  %v10380_v43 = vld [vmem:[#allocation6 + $0x8d0] ss:$40 sps:$4 sm:$0xff]  }
 0x185   :  { %4396 = vmatprep.mubr.bf16.mxu1 %v11810_v52 }
 0x186   :  { %4326 = vmatpush1.bf16.msra.mxu0 %v10311_v44  ;;  %v10385_v44 = vld [vmem:[#allocation6 + $0x424] ss:$40 sps:$4 sm:$0xff]  }
 0x187   :  { %4367 = vmatpush1.bf16.msra.mxu1 %v10314_v45  ;;  %4327 = vmatprep.subr.bf16.mxu0 %v10319_v46  ;;  %v10388_v45 = vld [vmem:[#allocation6 + $0x924] ss:$40 sps:$4 sm:$0xff]   ;;  %v10383_v46 = vld [vmem:[#allocation6 + $0x420] ss:$40 sps:$4 sm:$0xff]  }
 0x188   :  { %4368 = vmatprep.subr.bf16.mxu1 %v10322_v47  ;;  %v10386_v47 = vld [vmem:[#allocation6 + $0x920] ss:$40 sps:$4 sm:$0xff]  }
 0x18a   :  { %4328 = vmatpush1.bf16.msra.mxu0 %v10317_v48  ;;  %v10391_v48 = vld [vmem:[#allocation6 + $0x474] ss:$40 sps:$4 sm:$0xff]  }
 0x18b   :  { %4369 = vmatpush1.bf16.msra.mxu1 %v10320_v50  ;;  %4329 = vmatprep.subr.bf16.mxu0 %v10325_v51  ;;  %v10394_v50 = vld [vmem:[#allocation6 + $0x974] ss:$40 sps:$4 sm:$0xff]   ;;  %v10389_v51 = vld [vmem:[#allocation6 + $0x470] ss:$40 sps:$4 sm:$0xff]  }
 0x18c   :  { %4370 = vmatprep.subr.bf16.mxu1 %v10328_v53  ;;  %v10392_v53 = vld [vmem:[#allocation6 + $0x970] ss:$40 sps:$4 sm:$0xff]  }
 0x18e   :  { %4330 = vmatpush1.bf16.msra.mxu0 %v10323_v54  ;;  %v10397_v54 = vld [vmem:[#allocation6 + $0x4c4] ss:$40 sps:$4 sm:$0xff]  }
 0x18f   :  { %4371 = vmatpush1.bf16.msra.mxu1 %v10326_v55  ;;  %4331 = vmatprep.subr.bf16.mxu0 %v10331_v56  ;;  %v10400_v55 = vld [vmem:[#allocation6 + $0x9c4] ss:$40 sps:$4 sm:$0xff]   ;;  %v10395_v56 = vld [vmem:[#allocation6 + $0x4c0] ss:$40 sps:$4 sm:$0xff]  }
 0x190   :  { %4372 = vmatprep.subr.bf16.mxu1 %v10334_v57  ;;  %v10398_v57 = vld [vmem:[#allocation6 + $0x9c0] ss:$40 sps:$4 sm:$0xff]  }
 0x192   :  { %4332 = vmatpush1.bf16.msra.mxu0 %v10329_v58  ;;  %v10403_v58 = vld [vmem:[#allocation6 + $0xa14] ss:$40 sps:$4 sm:$0xff]  }
 0x193   :  { %4373 = vmatpush1.bf16.msra.mxu1 %v10332_v59  ;;  %4333 = vmatprep.subr.bf16.mxu0 %v10337_v60  ;;  %v10406_v59 = vld [vmem:[#allocation6 + $0xf14] ss:$40 sps:$4 sm:$0xff]   ;;  %v10401_v60 = vld [vmem:[#allocation6 + $0xa10] ss:$40 sps:$4 sm:$0xff]  }
 0x194   :  { %4374 = vmatprep.subr.bf16.mxu1 %v10340_v61  ;;  %v4029_v2 = vpop.f32.mrb[0].mxu0  ;;  %v10404_v61 = vld [vmem:[#allocation6 + $0xf10] ss:$40 sps:$4 sm:$0xff]  }
 0x195   :  { %v4070_v3 = vpop.f32.mrb[0].mxu1  ;;  %v4031_v7 = vpop.f32.mrb[1].mxu0 }
 0x196   :  { %v11842_v6 = vadd.f32 %v4070_v3, %v4029_v2  ;;  %v4072_v10 = vpop.f32.mrb[1].mxu1  ;;  %v4033_v12 = vpop.f32.mrb[2].mxu0  ;;  %4334 = vmatpush1.bf16.msra.mxu0 %v10335_v62  ;;  %v10409_v62 = vld [vmem:[#allocation6 + $0xa64] ss:$40 sps:$4 sm:$0xff]   ;;  %v10415_v2 = vld [vmem:[#allocation6 + $0xab4] ss:$40 sps:$4 sm:$0xff]  }
 0x197   :  { %v11844_v11 = vadd.f32 %v4072_v10, %v4031_v7  ;;  %4375 = vmatpush1.bf16.msra.mxu1 %v10338_v63  ;;  %v4074_v13 = vpop.f32.mrb[2].mxu1  ;;  %v4034_v14 = vpop.f32.mrb[3].mxu0  ;;  %4335 = vmatprep.subr.bf16.mxu0 %v10343_v0  ;;  %v10412_v63 = vld [vmem:[#allocation6 + $0xf64] ss:$40 sps:$4 sm:$0xff]   ;;  %v10407_v0 = vld [vmem:[#allocation6 + $0xa60] ss:$40 sps:$4 sm:$0xff]  }
 0x198   :  { %4376 = vmatprep.subr.bf16.mxu1 %v10346_v1  ;;  %v4075_v17 = vpop.f32.mrb[3].mxu1  ;;  %v10410_v1 = vld [vmem:[#allocation6 + $0xf60] ss:$40 sps:$4 sm:$0xff]   ;;  %v10418_v3 = vld [vmem:[#allocation6 + $0xfb4] ss:$40 sps:$4 sm:$0xff]  }
 0x199   :  { %v10421_v7 = vld [vmem:[#allocation6 + $0xb04] ss:$40 sps:$4 sm:$0xff]   ;;  %v10419_v12 = vld [vmem:[#allocation6 + $0xb00] ss:$40 sps:$4 sm:$0xff]   ;;  %v10427_v14 = vld [vmem:[#allocation6 + $0xb54] ss:$40 sps:$4 sm:$0xff]  }
 0x19a   :  { %4336 = vmatpush1.bf16.msra.mxu0 %v10341_v4  ;;  %v10413_v4 = vld [vmem:[#allocation6 + $0xab0] ss:$40 sps:$4 sm:$0xff]   ;;  %v10424_v10 = vld [vmem:[#allocation6 + $0x1004] ss:$40 sps:$4 sm:$0xff]   ;;  %v10422_v13 = vld [vmem:[#allocation6 + $0x1000] ss:$40 sps:$4 sm:$0xff]  }
 0x19b   :  { %4377 = vmatpush1.bf16.msra.mxu1 %v10344_v5  ;;  %4337 = vmatprep.subr.bf16.mxu0 %v10349_v15  ;;  %v10416_v5 = vld [vmem:[#allocation6 + $0xfb0] ss:$40 sps:$4 sm:$0xff]   ;;  %v10430_v15 = vld [vmem:[#allocation6 + $0x1054] ss:$40 sps:$4 sm:$0xff]  }
 0x19c   :  { %4378 = vmatprep.subr.bf16.mxu1 %v10352_v16  ;;  %v10425_v16 = vld [vmem:[#allocation6 + $0xb50] ss:$40 sps:$4 sm:$0xff]  }
 0x19d   :  { %v10428_v17 = vld [vmem:[#allocation6 + $0x1050] ss:$40 sps:$4 sm:$0xff]  }
 0x19e   :  { %4338 = vmatpush1.bf16.msra.mxu0 %v10347_v18  ;;  %v10433_v18 = vld [vmem:[#allocation6 + $0xba4] ss:$40 sps:$4 sm:$0xff]  }
 0x19f   :  { %4379 = vmatpush1.bf16.msra.mxu1 %v10350_v19  ;;  %4339 = vmatprep.subr.bf16.mxu0 %v10355_v21  ;;  %v10436_v19 = vld [vmem:[#allocation6 + $0x10a4] ss:$40 sps:$4 sm:$0xff]   ;;  %v10431_v21 = vld [vmem:[#allocation6 + $0xba0] ss:$40 sps:$4 sm:$0xff]  }
 0x1a0   :  { %4380 = vmatprep.subr.bf16.mxu1 %v10358_v22  ;;  %v10434_v22 = vld [vmem:[#allocation6 + $0x10a0] ss:$40 sps:$4 sm:$0xff]  }
 0x1a2   :  { %4340 = vmatpush1.bf16.msra.mxu0 %v10353_v24  ;;  %v10439_v24 = vld [vmem:[#allocation6 + $0xbf4] ss:$40 sps:$4 sm:$0xff]  }
 0x1a3   :  { %4381 = vmatpush1.bf16.msra.mxu1 %v10356_v25  ;;  %4341 = vmatprep.subr.bf16.mxu0 %v10361_v26  ;;  %v10442_v25 = vld [vmem:[#allocation6 + $0x10f4] ss:$40 sps:$4 sm:$0xff]  }
 0x1a4   :  { %4382 = vmatprep.subr.bf16.mxu1 %v10364_v27 }
 0x1a6   :  { %4342 = vmatpush1.bf16.msra.mxu0 %v10359_v28  ;;  %v10437_v28 = vld [vmem:[#allocation6 + $0xbf0] ss:$40 sps:$4 sm:$0xff]  }
 0x1a7   :  { %4383 = vmatpush1.bf16.msra.mxu1 %v10362_v29  ;;  %4343 = vmatprep.subr.bf16.mxu0 %v10367_v30  ;;  %v10440_v29 = vld [vmem:[#allocation6 + $0x10f0] ss:$40 sps:$4 sm:$0xff]  }
 0x1a8   :  { %4384 = vmatprep.subr.bf16.mxu1 %v10370_v31 }
 0x1aa   :  { %4344 = vmatpush1.bf16.msra.mxu0 %v10365_v32 }
 0x1ab   :  { %4385 = vmatpush1.bf16.msra.mxu1 %v10368_v33  ;;  %4345 = vmatprep.subr.bf16.mxu0 %v10373_v34 }
 0x1ac   :  { %4386 = vmatprep.subr.bf16.mxu1 %v10376_v35 }
 0x1ae   :  { %4346 = vmatpush1.bf16.msra.mxu0 %v10371_v37 }
 0x1af   :  { %4387 = vmatpush1.bf16.msra.mxu1 %v10374_v38  ;;  %4347 = vmatprep.subr.bf16.mxu0 %v10379_v39  ;;  %v10445_v39 = vld [vmem:[#allocation6 + $0xc44] ss:$40 sps:$4 sm:$0xff]  }
 0x1b0   :  { %4388 = vmatprep.subr.bf16.mxu1 %v10382_v41  ;;  %v10448_v41 = vld [vmem:[#allocation6 + $0x1144] ss:$40 sps:$4 sm:$0xff]  }
 0x1b2   :  { %4348 = vmatpush1.bf16.msra.mxu0 %v10377_v42 }
 0x1b3   :  { %4389 = vmatpush1.bf16.msra.mxu1 %v10380_v43  ;;  %4349 = vmatprep.subr.bf16.mxu0 %v10385_v44  ;;  %v10443_v44 = vld [vmem:[#allocation6 + $0xc40] ss:$40 sps:$4 sm:$0xff]  }
 0x1b4   :  { %4390 = vmatprep.subr.bf16.mxu1 %v10388_v45  ;;  %v10454_v45 = vld [vmem:[#allocation6 + $0x1194] ss:$40 sps:$4 sm:$0xff]  }
 0x1b6   :  { %4350 = vmatpush1.bf16.msra.mxu0 %v10383_v46  ;;  %v10449_v46 = vld [vmem:[#allocation6 + $0xc90] ss:$40 sps:$4 sm:$0xff]  }
 0x1b7   :  { %4391 = vmatpush1.bf16.msra.mxu1 %v10386_v47  ;;  %4351 = vmatprep.subr.bf16.mxu0 %v10391_v48  ;;  %v10452_v47 = vld [vmem:[#allocation6 + $0x1190] ss:$40 sps:$4 sm:$0xff]   ;;  %v10457_v48 = vld [vmem:[#allocation6 + $0xce4] ss:$40 sps:$4 sm:$0xff]  }
 0x1b8   :  { %4392 = vmatprep.subr.bf16.mxu1 %v10394_v50  ;;  %v10460_v50 = vld [vmem:[#allocation6 + $0x11e4] ss:$40 sps:$4 sm:$0xff]  }
 0x1ba   :  { %4352 = vmatpush1.bf16.msra.mxu0 %v10389_v51  ;;  %v10455_v51 = vld [vmem:[#allocation6 + $0xce0] ss:$40 sps:$4 sm:$0xff]  }
 0x1bb   :  { %4393 = vmatpush1.bf16.msra.mxu1 %v10392_v53  ;;  %4353 = vmatprep.subr.bf16.mxu0 %v10397_v54  ;;  %v10458_v53 = vld [vmem:[#allocation6 + $0x11e0] ss:$40 sps:$4 sm:$0xff]   ;;  %v10463_v54 = vld [vmem:[#allocation6 + $0xd34] ss:$40 sps:$4 sm:$0xff]  }
 0x1bc   :  { %4394 = vmatprep.subr.bf16.mxu1 %v10400_v55  ;;  %v10466_v55 = vld [vmem:[#allocation6 + $0x1234] ss:$40 sps:$4 sm:$0xff]  }
 0x1be   :  { %4354 = vmatpush1.bf16.msra.mxu0 %v10395_v56  ;;  %v10461_v56 = vld [vmem:[#allocation6 + $0xd30] ss:$40 sps:$4 sm:$0xff]  }
 0x1bf   :  { %4395 = vmatpush1.bf16.msra.mxu1 %v10398_v57  ;;  %4405 = vmatprep.subr.bf16.mxu0 %v10403_v58  ;;  %v10464_v57 = vld [vmem:[#allocation6 + $0x1230] ss:$40 sps:$4 sm:$0xff]   ;;  %v10469_v58 = vld [vmem:[#allocation6 + $0xd84] ss:$40 sps:$4 sm:$0xff]  }
 0x1c0   :  { %4446 = vmatprep.subr.bf16.mxu1 %v10406_v59  ;;  %v10472_v59 = vld [vmem:[#allocation6 + $0x1284] ss:$40 sps:$4 sm:$0xff]  }
 0x1c1   :  { %4356 = vmatmul.mubr.bf16.vlgmr.msra.gmra.mrb[16].mxu0 %v11814_v8 }
 0x1c2   :  { %4397 = vmatmul.mubr.bf16.vlgmr.msra.gmra.mrb[16].mxu1 %v11816_v9  ;;  %4406 = vmatpush1.bf16.msra.mxu0 %v10401_v60  ;;  %v10467_v60 = vld [vmem:[#allocation6 + $0xd80] ss:$40 sps:$4 sm:$0xff]  }
 0x1c3   :  { %4447 = vmatpush1.bf16.msra.mxu1 %v10404_v61  ;;  %4407 = vmatprep.subr.bf16.mxu0 %v10409_v62  ;;  %v10470_v61 = vld [vmem:[#allocation6 + $0x1280] ss:$40 sps:$4 sm:$0xff]   ;;  %v10475_v62 = vld [vmem:[#allocation6 + $0xdd4] ss:$40 sps:$4 sm:$0xff]  }
 0x1c4   :  { %4448 = vmatprep.subr.bf16.mxu1 %v10412_v63  ;;  %4437 = vmatprep.mubr.bf16.mxu0 %v11820_v36  ;;  %v10478_v63 = vld [vmem:[#allocation6 + $0x12d4] ss:$40 sps:$4 sm:$0xff]  }
 0x1c5   :  { %4478 = vmatprep.mubr.bf16.mxu1 %v11822_v40 }
 0x1c6   :  { %4408 = vmatpush1.bf16.msra.mxu0 %v10407_v0  ;;  %v10473_v0 = vld [vmem:[#allocation6 + $0xdd0] ss:$40 sps:$4 sm:$0xff]  }
 0x1c7   :  { %4449 = vmatpush1.bf16.msra.mxu1 %v10410_v1  ;;  %4409 = vmatprep.subr.bf16.mxu0 %v10415_v2  ;;  %v10476_v1 = vld [vmem:[#allocation6 + $0x12d0] ss:$40 sps:$4 sm:$0xff]   ;;  %v10481_v2 = vld [vmem:[#allocation6 + $0xe24] ss:$40 sps:$4 sm:$0xff]  }
 0x1c8   :  { %4450 = vmatprep.subr.bf16.mxu1 %v10418_v3  ;;  %v10484_v3 = vld [vmem:[#allocation6 + $0x1324] ss:$40 sps:$4 sm:$0xff]  }
 0x1ca   :  { %4410 = vmatpush1.bf16.msra.mxu0 %v10413_v4  ;;  %v10479_v4 = vld [vmem:[#allocation6 + $0xe20] ss:$40 sps:$4 sm:$0xff]  }
 0x1cb   :  { %4451 = vmatpush1.bf16.msra.mxu1 %v10416_v5  ;;  %4411 = vmatprep.subr.bf16.mxu0 %v10421_v7  ;;  %v10482_v5 = vld [vmem:[#allocation6 + $0x1320] ss:$40 sps:$4 sm:$0xff]   ;;  %v10487_v7 = vld [vmem:[#allocation6 + $0xe74] ss:$40 sps:$4 sm:$0xff]  }
 0x1cc   :  { %4452 = vmatprep.subr.bf16.mxu1 %v10424_v10  ;;  %v10490_v10 = vld [vmem:[#allocation6 + $0x1374] ss:$40 sps:$4 sm:$0xff]  }
 0x1ce   :  { %4412 = vmatpush1.bf16.msra.mxu0 %v10419_v12  ;;  %v10485_v12 = vld [vmem:[#allocation6 + $0xe70] ss:$40 sps:$4 sm:$0xff]  }
 0x1cf   :  { %4453 = vmatpush1.bf16.msra.mxu1 %v10422_v13  ;;  %4413 = vmatprep.subr.bf16.mxu0 %v10427_v14  ;;  %v10488_v13 = vld [vmem:[#allocation6 + $0x1370] ss:$40 sps:$4 sm:$0xff]   ;;  %v10493_v14 = vld [vmem:[#allocation6 + $0xec4] ss:$40 sps:$4 sm:$0xff]  }
 0x1d0   :  { %4454 = vmatprep.subr.bf16.mxu1 %v10430_v15  ;;  %v10496_v15 = vld [vmem:[#allocation6 + $0x13c4] ss:$40 sps:$4 sm:$0xff]  }
 0x1d2   :  { %4414 = vmatpush1.bf16.msra.mxu0 %v10425_v16  ;;  %v10491_v16 = vld [vmem:[#allocation6 + $0xec0] ss:$40 sps:$4 sm:$0xff]  }
 0x1d3   :  { %4455 = vmatpush1.bf16.msra.mxu1 %v10428_v17  ;;  %4415 = vmatprep.subr.bf16.mxu0 %v10433_v18  ;;  %v10494_v17 = vld [vmem:[#allocation6 + $0x13c0] ss:$40 sps:$4 sm:$0xff]   ;;  %v10499_v18 = vld [vmem:[#allocation6 + $0x1c] ss:$40 sps:$4 sm:$0xff]  }
 0x1d4   :  { %4456 = vmatprep.subr.bf16.mxu1 %v10436_v19  ;;  %v4111_v26 = vpop.f32.mrb[4].mxu0  ;;  %v10502_v19 = vld [vmem:[#allocation6 + $0x51c] ss:$40 sps:$4 sm:$0xff]  }
 0x1d5   :  { %v4152_v27 = vpop.f32.mrb[4].mxu1  ;;  %v4112_v30 = vadd.f32 %v4111_v26, %v11842_v6  ;;  %v4113_v31 = vpop.f32.mrb[5].mxu0  ;;  %v10446_v6 = vld [vmem:[#allocation6 + $0x1140] ss:$40 sps:$4 sm:$0xff]  }
 0x1d6   :  { %v4154_v32 = vpop.f32.mrb[5].mxu1  ;;  %v4114_v33 = vadd.f32 %v4113_v31, %v11844_v11  ;;  %v4115_v34 = vpop.f32.mrb[6].mxu0  ;;  %4416 = vmatpush1.bf16.msra.mxu0 %v10431_v21  ;;  %v10451_v11 = vld [vmem:[#allocation6 + $0xc94] ss:$40 sps:$4 sm:$0xff]   ;;  %v10497_v21 = vld [vmem:[#allocation6 + $0x18] ss:$40 sps:$4 sm:$0xff]  }
 0x1d7   :  { %4457 = vmatpush1.bf16.msra.mxu1 %v10434_v22  ;;  %v4156_v35 = vpop.f32.mrb[6].mxu1  ;;  %v11852_v37 = vadd.f32 %v4152_v27, %v4112_v30  ;;  %v4116_v38 = vpop.f32.mrb[7].mxu0  ;;  %4417 = vmatprep.subr.bf16.mxu0 %v10439_v24  ;;  %v10500_v22 = vld [vmem:[#allocation6 + $0x518] ss:$40 sps:$4 sm:$0xff]   ;;  %v10505_v24 = vld [vmem:[#allocation6 + $0x6c] ss:$40 sps:$4 sm:$0xff]  }
 0x1d8   :  { %4458 = vmatprep.subr.bf16.mxu1 %v10442_v25  ;;  %v4157_v42 = vpop.f32.mrb[7].mxu1  ;;  %v11854_v43 = vadd.f32 %v4154_v32, %v4114_v33  ;;  %v10508_v25 = vld [vmem:[#allocation6 + $0x56c] ss:$40 sps:$4 sm:$0xff]   ;;  %v10503_v26 = vld [vmem:[#allocation6 + $0x68] ss:$40 sps:$4 sm:$0xff]  }
 0x1d9   :  { %v10506_v27 = vld [vmem:[#allocation6 + $0x568] ss:$40 sps:$4 sm:$0xff]   ;;  %v10509_v30 = vld [vmem:[#allocation6 + $0xb8] ss:$40 sps:$4 sm:$0xff]   ;;  %v10517_v32 = vld [vmem:[#allocation6 + $0x10c] ss:$40 sps:$4 sm:$0xff]  }
 0x1da   :  { %4418 = vmatpush1.bf16.msra.mxu0 %v10437_v28  ;;  %v10511_v28 = vld [vmem:[#allocation6 + $0xbc] ss:$40 sps:$4 sm:$0xff]   ;;  %v10512_v31 = vld [vmem:[#allocation6 + $0x5b8] ss:$40 sps:$4 sm:$0xff]   ;;  %v10520_v33 = vld [vmem:[#allocation6 + $0x60c] ss:$40 sps:$4 sm:$0xff]  }
 0x1db   :  { %4459 = vmatpush1.bf16.msra.mxu1 %v10440_v29  ;;  %4419 = vmatprep.subr.bf16.mxu0 %v10445_v39  ;;  %v10514_v29 = vld [vmem:[#allocation6 + $0x5bc] ss:$40 sps:$4 sm:$0xff]   ;;  %v10515_v34 = vld [vmem:[#allocation6 + $0x108] ss:$40 sps:$4 sm:$0xff]   ;;  %v10524_v42 = vld [vmem:[#allocation6 + $0x658] ss:$40 sps:$4 sm:$0xff]  }
 0x1dc   :  { %4460 = vmatprep.subr.bf16.mxu1 %v10448_v41  ;;  %v10518_v35 = vld [vmem:[#allocation6 + $0x608] ss:$40 sps:$4 sm:$0xff]   ;;  %v10523_v38 = vld [vmem:[#allocation6 + $0x15c] ss:$40 sps:$4 sm:$0xff]   ;;  %v10521_v41 = vld [vmem:[#allocation6 + $0x158] ss:$40 sps:$4 sm:$0xff]  }
 0x1dd   :  { %v10526_v39 = vld [vmem:[#allocation6 + $0x65c] ss:$40 sps:$4 sm:$0xff]  }
 0x1de   :  { %4420 = vmatpush1.bf16.msra.mxu0 %v10443_v44  ;;  %v10529_v44 = vld [vmem:[#allocation6 + $0x1ac] ss:$40 sps:$4 sm:$0xff]  }
 0x1df   :  { %4461 = vmatpush1.bf16.msra.mxu1 %v10446_v6  ;;  %4421 = vmatprep.subr.bf16.mxu0 %v10451_v11  ;;  %v10532_v6 = vld [vmem:[#allocation6 + $0x6ac] ss:$40 sps:$4 sm:$0xff]   ;;  %v10527_v11 = vld [vmem:[#allocation6 + $0x1a8] ss:$40 sps:$4 sm:$0xff]  }
 0x1e0   :  { %4462 = vmatprep.subr.bf16.mxu1 %v10454_v45  ;;  %v10530_v45 = vld [vmem:[#allocation6 + $0x6a8] ss:$40 sps:$4 sm:$0xff]  }
 0x1e2   :  { %4422 = vmatpush1.bf16.msra.mxu0 %v10449_v46  ;;  %v10535_v46 = vld [vmem:[#allocation6 + $0x1fc] ss:$40 sps:$4 sm:$0xff]  }
 0x1e3   :  { %4463 = vmatpush1.bf16.msra.mxu1 %v10452_v47  ;;  %4423 = vmatprep.subr.bf16.mxu0 %v10457_v48  ;;  %v10538_v47 = vld [vmem:[#allocation6 + $0x6fc] ss:$40 sps:$4 sm:$0xff]  }
 0x1e4   :  { %4464 = vmatprep.subr.bf16.mxu1 %v10460_v50 }
 0x1e6   :  { %4424 = vmatpush1.bf16.msra.mxu0 %v10455_v51  ;;  %v10533_v51 = vld [vmem:[#allocation6 + $0x1f8] ss:$40 sps:$4 sm:$0xff]  }
 0x1e7   :  { %4465 = vmatpush1.bf16.msra.mxu1 %v10458_v53  ;;  %4425 = vmatprep.subr.bf16.mxu0 %v10463_v54  ;;  %v10536_v53 = vld [vmem:[#allocation6 + $0x6f8] ss:$40 sps:$4 sm:$0xff]  }
 0x1e8   :  { %4466 = vmatprep.subr.bf16.mxu1 %v10466_v55 }
 0x1ea   :  { %4426 = vmatpush1.bf16.msra.mxu0 %v10461_v56 }
 0x1eb   :  { %4467 = vmatpush1.bf16.msra.mxu1 %v10464_v57  ;;  %4427 = vmatprep.subr.bf16.mxu0 %v10469_v58 }
 0x1ec   :  { %4468 = vmatprep.subr.bf16.mxu1 %v10472_v59 }
 0x1ee   :  { %4428 = vmatpush1.bf16.msra.mxu0 %v10467_v60 }
 0x1ef   :  { %4469 = vmatpush1.bf16.msra.mxu1 %v10470_v61  ;;  %4429 = vmatprep.subr.bf16.mxu0 %v10475_v62  ;;  %v10541_v61 = vld [vmem:[#allocation6 + $0x24c] ss:$40 sps:$4 sm:$0xff]  }
 0x1f0   :  { %4470 = vmatprep.subr.bf16.mxu1 %v10478_v63  ;;  %v10544_v62 = vld [vmem:[#allocation6 + $0x74c] ss:$40 sps:$4 sm:$0xff]  }
 0x1f2   :  { %4430 = vmatpush1.bf16.msra.mxu0 %v10473_v0  ;;  %v10539_v0 = vld [vmem:[#allocation6 + $0x248] ss:$40 sps:$4 sm:$0xff]  }
 0x1f3   :  { %4471 = vmatpush1.bf16.msra.mxu1 %v10476_v1  ;;  %4431 = vmatprep.subr.bf16.mxu0 %v10481_v2  ;;  %v10542_v1 = vld [vmem:[#allocation6 + $0x748] ss:$40 sps:$4 sm:$0xff]   ;;  %v10547_v2 = vld [vmem:[#allocation6 + $0x29c] ss:$40 sps:$4 sm:$0xff]  }
 0x1f4   :  { %4472 = vmatprep.subr.bf16.mxu1 %v10484_v3  ;;  %v10550_v3 = vld [vmem:[#allocation6 + $0x79c] ss:$40 sps:$4 sm:$0xff]  }
 0x1f6   :  { %4432 = vmatpush1.bf16.msra.mxu0 %v10479_v4  ;;  %v10545_v4 = vld [vmem:[#allocation6 + $0x298] ss:$40 sps:$4 sm:$0xff]  }
 0x1f7   :  { %4473 = vmatpush1.bf16.msra.mxu1 %v10482_v5  ;;  %4433 = vmatprep.subr.bf16.mxu0 %v10487_v7  ;;  %v10548_v5 = vld [vmem:[#allocation6 + $0x798] ss:$40 sps:$4 sm:$0xff]   ;;  %v10553_v7 = vld [vmem:[#allocation6 + $0x2ec] ss:$40 sps:$4 sm:$0xff]  }
 0x1f8   :  { %4474 = vmatprep.subr.bf16.mxu1 %v10490_v10  ;;  %v10556_v10 = vld [vmem:[#allocation6 + $0x7ec] ss:$40 sps:$4 sm:$0xff]  }
 0x1fa   :  { %4434 = vmatpush1.bf16.msra.mxu0 %v10485_v12  ;;  %v10551_v12 = vld [vmem:[#allocation6 + $0x2e8] ss:$40 sps:$4 sm:$0xff]  }
 0x1fb   :  { %4475 = vmatpush1.bf16.msra.mxu1 %v10488_v13  ;;  %4435 = vmatprep.subr.bf16.mxu0 %v10493_v14  ;;  %v10554_v13 = vld [vmem:[#allocation6 + $0x7e8] ss:$40 sps:$4 sm:$0xff]   ;;  %v10559_v14 = vld [vmem:[#allocation6 + $0x33c] ss:$40 sps:$4 sm:$0xff]  }
 0x1fc   :  { %4476 = vmatprep.subr.bf16.mxu1 %v10496_v15  ;;  %v10562_v15 = vld [vmem:[#allocation6 + $0x83c] ss:$40 sps:$4 sm:$0xff]  }
 0x1fe   :  { %4436 = vmatpush1.bf16.msra.mxu0 %v10491_v16  ;;  %v10557_v16 = vld [vmem:[#allocation6 + $0x338] ss:$40 sps:$4 sm:$0xff]  }
 0x1ff   :  { %4477 = vmatpush1.bf16.msra.mxu1 %v10494_v17  ;;  %4487 = vmatprep.subr.bf16.mxu0 %v10499_v18  ;;  %v10560_v17 = vld [vmem:[#allocation6 + $0x838] ss:$40 sps:$4 sm:$0xff]   ;;  %v10565_v18 = vld [vmem:[#allocation6 + $0x38c] ss:$40 sps:$4 sm:$0xff]  }
 0x200   :  { %4528 = vmatprep.subr.bf16.mxu1 %v10502_v19  ;;  %v10568_v19 = vld [vmem:[#allocation6 + $0x88c] ss:$40 sps:$4 sm:$0xff]  }
 0x201   :  { %4438 = vmatmul.mubr.bf16.vlgmr.msra.gmra.mrb[20].mxu0 %v11826_v20 }
 0x202   :  { %4479 = vmatmul.mubr.bf16.vlgmr.msra.gmra.mrb[20].mxu1 %v11828_v23  ;;  %4488 = vmatpush1.bf16.msra.mxu0 %v10497_v21  ;;  %v10563_v21 = vld [vmem:[#allocation6 + $0x388] ss:$40 sps:$4 sm:$0xff]  }
 0x203   :  { %4529 = vmatpush1.bf16.msra.mxu1 %v10500_v22  ;;  %4489 = vmatprep.subr.bf16.mxu0 %v10505_v24  ;;  %v10566_v22 = vld [vmem:[#allocation6 + $0x888] ss:$40 sps:$4 sm:$0xff]   ;;  %v10571_v24 = vld [vmem:[#allocation6 + $0x3dc] ss:$40 sps:$4 sm:$0xff]  }
 0x204   :  { %4530 = vmatprep.subr.bf16.mxu1 %v10508_v25  ;;  %4519 = vmatprep.mubr.bf16.mxu0 %v11808_v49  ;;  %v10574_v25 = vld [vmem:[#allocation6 + $0x8dc] ss:$40 sps:$4 sm:$0xff]  }
 0x205   :  { %4560 = vmatprep.mubr.bf16.mxu1 %v11810_v52 }
 0x206   :  { %4490 = vmatpush1.bf16.msra.mxu0 %v10503_v26  ;;  %v10569_v26 = vld [vmem:[#allocation6 + $0x3d8] ss:$40 sps:$4 sm:$0xff]  }
 0x207   :  { %4531 = vmatpush1.bf16.msra.mxu1 %v10506_v27  ;;  %4491 = vmatprep.subr.bf16.mxu0 %v10511_v28  ;;  %v10572_v27 = vld [vmem:[#allocation6 + $0x8d8] ss:$40 sps:$4 sm:$0xff]   ;;  %v10577_v28 = vld [vmem:[#allocation6 + $0x42c] ss:$40 sps:$4 sm:$0xff]  }
 0x208   :  { %4532 = vmatprep.subr.bf16.mxu1 %v10514_v29  ;;  %v10580_v29 = vld [vmem:[#allocation6 + $0x92c] ss:$40 sps:$4 sm:$0xff]  }
 0x20a   :  { %4492 = vmatpush1.bf16.msra.mxu0 %v10509_v30  ;;  %v10575_v30 = vld [vmem:[#allocation6 + $0x428] ss:$40 sps:$4 sm:$0xff]  }
 0x20b   :  { %4533 = vmatpush1.bf16.msra.mxu1 %v10512_v31  ;;  %4493 = vmatprep.subr.bf16.mxu0 %v10517_v32  ;;  %v10578_v31 = vld [vmem:[#allocation6 + $0x928] ss:$40 sps:$4 sm:$0xff]   ;;  %v10583_v32 = vld [vmem:[#allocation6 + $0x47c] ss:$40 sps:$4 sm:$0xff]  }
 0x20c   :  { %4534 = vmatprep.subr.bf16.mxu1 %v10520_v33  ;;  %v10586_v33 = vld [vmem:[#allocation6 + $0x97c] ss:$40 sps:$4 sm:$0xff]  }
 0x20e   :  { %4494 = vmatpush1.bf16.msra.mxu0 %v10515_v34  ;;  %v10581_v34 = vld [vmem:[#allocation6 + $0x478] ss:$40 sps:$4 sm:$0xff]  }
 0x20f   :  { %4535 = vmatpush1.bf16.msra.mxu1 %v10518_v35  ;;  %4495 = vmatprep.subr.bf16.mxu0 %v10523_v38  ;;  %v10584_v35 = vld [vmem:[#allocation6 + $0x978] ss:$40 sps:$4 sm:$0xff]   ;;  %v10589_v38 = vld [vmem:[#allocation6 + $0x4cc] ss:$40 sps:$4 sm:$0xff]  }
 0x210   :  { %4536 = vmatprep.subr.bf16.mxu1 %v10526_v39  ;;  %v10592_v39 = vld [vmem:[#allocation6 + $0x9cc] ss:$40 sps:$4 sm:$0xff]  }
 0x212   :  { %4496 = vmatpush1.bf16.msra.mxu0 %v10521_v41  ;;  %v10587_v41 = vld [vmem:[#allocation6 + $0x4c8] ss:$40 sps:$4 sm:$0xff]  }
 0x213   :  { %4537 = vmatpush1.bf16.msra.mxu1 %v10524_v42  ;;  %4497 = vmatprep.subr.bf16.mxu0 %v10529_v44  ;;  %v10590_v42 = vld [vmem:[#allocation6 + $0x9c8] ss:$40 sps:$4 sm:$0xff]   ;;  %v10595_v44 = vld [vmem:[#allocation6 + $0xa1c] ss:$40 sps:$4 sm:$0xff]  }
 0x214   :  { %4538 = vmatprep.subr.bf16.mxu1 %v10532_v6  ;;  %v4193_v48 = vpop.f32.mrb[8].mxu0  ;;  %v10598_v6 = vld [vmem:[#allocation6 + $0xf1c] ss:$40 sps:$4 sm:$0xff]  }
 0x215   :  { %v4234_v50 = vpop.f32.mrb[8].mxu1  ;;  %v4195_v55 = vpop.f32.mrb[9].mxu0 }
 0x216   :  { %v11860_v54 = vadd.f32 %v4234_v50, %v4193_v48  ;;  %v4236_v56 = vpop.f32.mrb[9].mxu1  ;;  %v4197_v58 = vpop.f32.mrb[10].mxu0  ;;  %4498 = vmatpush1.bf16.msra.mxu0 %v10527_v11  ;;  %v10593_v11 = vld [vmem:[#allocation6 + $0xa18] ss:$40 sps:$4 sm:$0xff]   ;;  %v10599_v48 = vld [vmem:[#allocation6 + $0xa68] ss:$40 sps:$4 sm:$0xff]  }
 0x217   :  { %v11862_v57 = vadd.f32 %v4236_v56, %v4195_v55  ;;  %4539 = vmatpush1.bf16.msra.mxu1 %v10530_v45  ;;  %v4238_v59 = vpop.f32.mrb[10].mxu1  ;;  %v4198_v60 = vpop.f32.mrb[11].mxu0  ;;  %4499 = vmatprep.subr.bf16.mxu0 %v10535_v46  ;;  %v10596_v45 = vld [vmem:[#allocation6 + $0xf18] ss:$40 sps:$4 sm:$0xff]   ;;  %v10601_v46 = vld [vmem:[#allocation6 + $0xa6c] ss:$40 sps:$4 sm:$0xff]  }
 0x218   :  { %4540 = vmatprep.subr.bf16.mxu1 %v10538_v47  ;;  %v4239_v63 = vpop.f32.mrb[11].mxu1  ;;  %v10604_v47 = vld [vmem:[#allocation6 + $0xf6c] ss:$40 sps:$4 sm:$0xff]   ;;  %v10602_v50 = vld [vmem:[#allocation6 + $0xf68] ss:$40 sps:$4 sm:$0xff]  }
 0x219   :  { %v10605_v55 = vld [vmem:[#allocation6 + $0xab8] ss:$40 sps:$4 sm:$0xff]   ;;  %v10613_v58 = vld [vmem:[#allocation6 + $0xb0c] ss:$40 sps:$4 sm:$0xff]   ;;  %v10611_v60 = vld [vmem:[#allocation6 + $0xb08] ss:$40 sps:$4 sm:$0xff]  }
 0x21a   :  { %4500 = vmatpush1.bf16.msra.mxu0 %v10533_v51  ;;  %v10607_v51 = vld [vmem:[#allocation6 + $0xabc] ss:$40 sps:$4 sm:$0xff]   ;;  %v10608_v56 = vld [vmem:[#allocation6 + $0xfb8] ss:$40 sps:$4 sm:$0xff]   ;;  %v10616_v59 = vld [vmem:[#allocation6 + $0x100c] ss:$40 sps:$4 sm:$0xff]  }
 0x21b   :  { %4541 = vmatpush1.bf16.msra.mxu1 %v10536_v53  ;;  %4501 = vmatprep.subr.bf16.mxu0 %v10541_v61  ;;  %v10610_v53 = vld [vmem:[#allocation6 + $0xfbc] ss:$40 sps:$4 sm:$0xff]   ;;  %v10614_v61 = vld [vmem:[#allocation6 + $0x1008] ss:$40 sps:$4 sm:$0xff]  }
 0x21c   :  { %4542 = vmatprep.subr.bf16.mxu1 %v10544_v62  ;;  %v10619_v62 = vld [vmem:[#allocation6 + $0xb5c] ss:$40 sps:$4 sm:$0xff]  }
 0x21d   :  { %v10622_v63 = vld [vmem:[#allocation6 + $0x105c] ss:$40 sps:$4 sm:$0xff]  }
 0x21e   :  { %4502 = vmatpush1.bf16.msra.mxu0 %v10539_v0  ;;  %v10617_v0 = vld [vmem:[#allocation6 + $0xb58] ss:$40 sps:$4 sm:$0xff]  }
 0x21f   :  { %4543 = vmatpush1.bf16.msra.mxu1 %v10542_v1  ;;  %4503 = vmatprep.subr.bf16.mxu0 %v10547_v2  ;;  %v10620_v1 = vld [vmem:[#allocation6 + $0x1058] ss:$40 sps:$4 sm:$0xff]   ;;  %v10625_v2 = vld [vmem:[#allocation6 + $0xbac] ss:$40 sps:$4 sm:$0xff]  }
 0x220   :  { %4544 = vmatprep.subr.bf16.mxu1 %v10550_v3  ;;  %v10628_v3 = vld [vmem:[#allocation6 + $0x10ac] ss:$40 sps:$4 sm:$0xff]  }
 0x222   :  { %4504 = vmatpush1.bf16.msra.mxu0 %v10545_v4  ;;  %v10623_v4 = vld [vmem:[#allocation6 + $0xba8] ss:$40 sps:$4 sm:$0xff]  }
 0x223   :  { %4545 = vmatpush1.bf16.msra.mxu1 %v10548_v5  ;;  %4505 = vmatprep.subr.bf16.mxu0 %v10553_v7  ;;  %v10626_v5 = vld [vmem:[#allocation6 + $0x10a8] ss:$40 sps:$4 sm:$0xff]   ;;  %v10631_v7 = vld [vmem:[#allocation6 + $0xbfc] ss:$40 sps:$4 sm:$0xff]  }
 0x224   :  { %4546 = vmatprep.subr.bf16.mxu1 %v10556_v10  ;;  %v10634_v10 = vld [vmem:[#allocation6 + $0x10fc] ss:$40 sps:$4 sm:$0xff]  }
 0x226   :  { %4506 = vmatpush1.bf16.msra.mxu0 %v10551_v12 }
 0x227   :  { %4547 = vmatpush1.bf16.msra.mxu1 %v10554_v13  ;;  %4507 = vmatprep.subr.bf16.mxu0 %v10559_v14  ;;  %v10629_v14 = vld [vmem:[#allocation6 + $0xbf8] ss:$40 sps:$4 sm:$0xff]  }
 0x228   :  { %4548 = vmatprep.subr.bf16.mxu1 %v10562_v15  ;;  %v10632_v15 = vld [vmem:[#allocation6 + $0x10f8] ss:$40 sps:$4 sm:$0xff]  }
 0x22a   :  { %4508 = vmatpush1.bf16.msra.mxu0 %v10557_v16 }
 0x22b   :  { %4549 = vmatpush1.bf16.msra.mxu1 %v10560_v17  ;;  %4509 = vmatprep.subr.bf16.mxu0 %v10565_v18 }
 0x22c   :  { %4550 = vmatprep.subr.bf16.mxu1 %v10568_v19 }
 0x22e   :  { %4510 = vmatpush1.bf16.msra.mxu0 %v10563_v21 }
 0x22f   :  { %4551 = vmatpush1.bf16.msra.mxu1 %v10566_v22  ;;  %4511 = vmatprep.subr.bf16.mxu0 %v10571_v24 }
 0x230   :  { %4552 = vmatprep.subr.bf16.mxu1 %v10574_v25 }
 0x232   :  { %4512 = vmatpush1.bf16.msra.mxu0 %v10569_v26  ;;  %v10637_v26 = vld [vmem:[#allocation6 + $0xc4c] ss:$40 sps:$4 sm:$0xff]  }
 0x233   :  { %4553 = vmatpush1.bf16.msra.mxu1 %v10572_v27  ;;  %4513 = vmatprep.subr.bf16.mxu0 %v10577_v28  ;;  %v10640_v27 = vld [vmem:[#allocation6 + $0x114c] ss:$40 sps:$4 sm:$0xff]  }
 0x234   :  { %4554 = vmatprep.subr.bf16.mxu1 %v10580_v29 }
 0x236   :  { %4514 = vmatpush1.bf16.msra.mxu0 %v10575_v30  ;;  %v10635_v30 = vld [vmem:[#allocation6 + $0xc48] ss:$40 sps:$4 sm:$0xff]  }
 0x237   :  { %4555 = vmatpush1.bf16.msra.mxu1 %v10578_v31  ;;  %4515 = vmatprep.subr.bf16.mxu0 %v10583_v32  ;;  %v10646_v31 = vld [vmem:[#allocation6 + $0x119c] ss:$40 sps:$4 sm:$0xff]   ;;  %v10641_v32 = vld [vmem:[#allocation6 + $0xc98] ss:$40 sps:$4 sm:$0xff]  }
 0x238   :  { %4556 = vmatprep.subr.bf16.mxu1 %v10586_v33  ;;  %v10644_v33 = vld [vmem:[#allocation6 + $0x1198] ss:$40 sps:$4 sm:$0xff]  }
 0x23a   :  { %4516 = vmatpush1.bf16.msra.mxu0 %v10581_v34  ;;  %v10649_v34 = vld [vmem:[#allocation6 + $0xcec] ss:$40 sps:$4 sm:$0xff]  }
 0x23b   :  { %4557 = vmatpush1.bf16.msra.mxu1 %v10584_v35  ;;  %4517 = vmatprep.subr.bf16.mxu0 %v10589_v38  ;;  %v10652_v35 = vld [vmem:[#allocation6 + $0x11ec] ss:$40 sps:$4 sm:$0xff]   ;;  %v10647_v38 = vld [vmem:[#allocation6 + $0xce8] ss:$40 sps:$4 sm:$0xff]  }
 0x23c   :  { %4558 = vmatprep.subr.bf16.mxu1 %v10592_v39  ;;  %v10650_v39 = vld [vmem:[#allocation6 + $0x11e8] ss:$40 sps:$4 sm:$0xff]  }
 0x23e   :  { %4518 = vmatpush1.bf16.msra.mxu0 %v10587_v41  ;;  %v10655_v41 = vld [vmem:[#allocation6 + $0xd3c] ss:$40 sps:$4 sm:$0xff]  }
 0x23f   :  { %4559 = vmatpush1.bf16.msra.mxu1 %v10590_v42  ;;  %4569 = vmatprep.subr.bf16.mxu0 %v10595_v44  ;;  %v10658_v42 = vld [vmem:[#allocation6 + $0x123c] ss:$40 sps:$4 sm:$0xff]   ;;  %v10653_v44 = vld [vmem:[#allocation6 + $0xd38] ss:$40 sps:$4 sm:$0xff]  }
 0x240   :  { %4610 = vmatprep.subr.bf16.mxu1 %v10598_v6  ;;  %v10656_v6 = vld [vmem:[#allocation6 + $0x1238] ss:$40 sps:$4 sm:$0xff]  }
 0x241   :  { %4520 = vmatmul.mubr.bf16.vlgmr.msra.gmra.mrb[24].mxu0 %v11814_v8 }
 0x242   :  { %4561 = vmatmul.mubr.bf16.vlgmr.msra.gmra.mrb[24].mxu1 %v11816_v9  ;;  %4570 = vmatpush1.bf16.msra.mxu0 %v10593_v11  ;;  %v10661_v11 = vld [vmem:[#allocation6 + $0xd8c] ss:$40 sps:$4 sm:$0xff]  }
 0x243   :  { %4611 = vmatpush1.bf16.msra.mxu1 %v10596_v45  ;;  %4571 = vmatprep.subr.bf16.mxu0 %v10601_v46  ;;  %v10664_v45 = vld [vmem:[#allocation6 + $0x128c] ss:$40 sps:$4 sm:$0xff]   ;;  %v10659_v46 = vld [vmem:[#allocation6 + $0xd88] ss:$40 sps:$4 sm:$0xff]  }
 0x244   :  { %4612 = vmatprep.subr.bf16.mxu1 %v10604_v47  ;;  %4601 = vmatprep.mubr.bf16.mxu0 %v11820_v36  ;;  %v10662_v47 = vld [vmem:[#allocation6 + $0x1288] ss:$40 sps:$4 sm:$0xff]  }
 0x245   :  { %4642 = vmatprep.mubr.bf16.mxu1 %v11822_v40 }
 0x246   :  { %4572 = vmatpush1.bf16.msra.mxu0 %v10599_v48  ;;  %v10667_v48 = vld [vmem:[#allocation6 + $0xddc] ss:$40 sps:$4 sm:$0xff]  }
 0x247   :  { %4613 = vmatpush1.bf16.msra.mxu1 %v10602_v50  ;;  %4573 = vmatprep.subr.bf16.mxu0 %v10607_v51  ;;  %v10670_v50 = vld [vmem:[#allocation6 + $0x12dc] ss:$40 sps:$4 sm:$0xff]   ;;  %v10665_v51 = vld [vmem:[#allocation6 + $0xdd8] ss:$40 sps:$4 sm:$0xff]  }
 0x248   :  { %4614 = vmatprep.subr.bf16.mxu1 %v10610_v53  ;;  %v10668_v53 = vld [vmem:[#allocation6 + $0x12d8] ss:$40 sps:$4 sm:$0xff]  }
 0x24a   :  { %4574 = vmatpush1.bf16.msra.mxu0 %v10605_v55  ;;  %v10673_v55 = vld [vmem:[#allocation6 + $0xe2c] ss:$40 sps:$4 sm:$0xff]  }
 0x24b   :  { %4615 = vmatpush1.bf16.msra.mxu1 %v10608_v56  ;;  %4575 = vmatprep.subr.bf16.mxu0 %v10613_v58  ;;  %v10676_v56 = vld [vmem:[#allocation6 + $0x132c] ss:$40 sps:$4 sm:$0xff]   ;;  %v10671_v58 = vld [vmem:[#allocation6 + $0xe28] ss:$40 sps:$4 sm:$0xff]  }
 0x24c   :  { %4616 = vmatprep.subr.bf16.mxu1 %v10616_v59  ;;  %v10674_v59 = vld [vmem:[#allocation6 + $0x1328] ss:$40 sps:$4 sm:$0xff]  }
 0x24e   :  { %4576 = vmatpush1.bf16.msra.mxu0 %v10611_v60  ;;  %v10679_v60 = vld [vmem:[#allocation6 + $0xe7c] ss:$40 sps:$4 sm:$0xff]  }
 0x24f   :  { %4617 = vmatpush1.bf16.msra.mxu1 %v10614_v61  ;;  %4577 = vmatprep.subr.bf16.mxu0 %v10619_v62  ;;  %v10682_v61 = vld [vmem:[#allocation6 + $0x137c] ss:$40 sps:$4 sm:$0xff]   ;;  %v10677_v62 = vld [vmem:[#allocation6 + $0xe78] ss:$40 sps:$4 sm:$0xff]  }
 0x250   :  { %4618 = vmatprep.subr.bf16.mxu1 %v10622_v63  ;;  %v10680_v63 = vld [vmem:[#allocation6 + $0x1378] ss:$40 sps:$4 sm:$0xff]  }
 0x252   :  { %4578 = vmatpush1.bf16.msra.mxu0 %v10617_v0  ;;  %v10685_v0 = vld [vmem:[#allocation6 + $0xecc] ss:$40 sps:$4 sm:$0xff]  }
 0x253   :  { %4619 = vmatpush1.bf16.msra.mxu1 %v10620_v1  ;;  %4579 = vmatprep.subr.bf16.mxu0 %v10625_v2  ;;  %v10688_v1 = vld [vmem:[#allocation6 + $0x13cc] ss:$40 sps:$4 sm:$0xff]   ;;  %v10683_v2 = vld [vmem:[#allocation6 + $0xec8] ss:$40 sps:$4 sm:$0xff]  }
 0x254   :  { %4620 = vmatprep.subr.bf16.mxu1 %v10628_v3  ;;  %v4275_v12 = vpop.f32.mrb[12].mxu0  ;;  %v10686_v3 = vld [vmem:[#allocation6 + $0x13c8] ss:$40 sps:$4 sm:$0xff]  }
 0x255   :  { %v4316_v13 = vpop.f32.mrb[12].mxu1  ;;  %v4276_v16 = vadd.f32 %v4275_v12, %v11860_v54  ;;  %v4277_v17 = vpop.f32.mrb[13].mxu0  ;;  %v10638_v54 = vld [vmem:[#allocation6 + $0x1148] ss:$40 sps:$4 sm:$0xff]   ;;  %v10697_v12 = vld [vmem:[#allocation6 + $0x74] ss:$40 sps:$4 sm:$0xff]  }
 0x256   :  { %v4318_v18 = vpop.f32.mrb[13].mxu1  ;;  %v4278_v19 = vadd.f32 %v4277_v17, %v11862_v57  ;;  %v4279_v21 = vpop.f32.mrb[14].mxu0  ;;  %4580 = vmatpush1.bf16.msra.mxu0 %v10623_v4  ;;  %v10643_v57 = vld [vmem:[#allocation6 + $0xc9c] ss:$40 sps:$4 sm:$0xff]  }
 0x257   :  { %4621 = vmatpush1.bf16.msra.mxu1 %v10626_v5  ;;  %v4320_v22 = vpop.f32.mrb[14].mxu1  ;;  %v11870_v24 = vadd.f32 %v4316_v13, %v4276_v16  ;;  %v4280_v25 = vpop.f32.mrb[15].mxu0  ;;  %4581 = vmatprep.subr.bf16.mxu0 %v10631_v7  ;;  %v10691_v4 = vld [vmem:[#allocation6 + $0x24] ss:$40 sps:$4 sm:$0xff]   ;;  %v10689_v7 = vld [vmem:[#allocation6 + $0x20] ss:$40 sps:$4 sm:$0xff]  }
 0x258   :  { %4622 = vmatprep.subr.bf16.mxu1 %v10634_v10  ;;  %v4321_v28 = vpop.f32.mrb[15].mxu1  ;;  %v11872_v29 = vadd.f32 %v4318_v18, %v4278_v19  ;;  %v10694_v5 = vld [vmem:[#allocation6 + $0x524] ss:$40 sps:$4 sm:$0xff]   ;;  %v10692_v10 = vld [vmem:[#allocation6 + $0x520] ss:$40 sps:$4 sm:$0xff]  }
 0x259   :  { %v10700_v13 = vld [vmem:[#allocation6 + $0x574] ss:$40 sps:$4 sm:$0xff]   ;;  %v10703_v16 = vld [vmem:[#allocation6 + $0xc4] ss:$40 sps:$4 sm:$0xff]   ;;  %v10701_v18 = vld [vmem:[#allocation6 + $0xc0] ss:$40 sps:$4 sm:$0xff]  }
 0x25a   :  { %4582 = vmatpush1.bf16.msra.mxu0 %v10629_v14  ;;  %v10695_v14 = vld [vmem:[#allocation6 + $0x70] ss:$40 sps:$4 sm:$0xff]   ;;  %v10706_v17 = vld [vmem:[#allocation6 + $0x5c4] ss:$40 sps:$4 sm:$0xff]   ;;  %v10704_v19 = vld [vmem:[#allocation6 + $0x5c0] ss:$40 sps:$4 sm:$0xff]  }
 0x25b   :  { %4623 = vmatpush1.bf16.msra.mxu1 %v10632_v15  ;;  %4583 = vmatprep.subr.bf16.mxu0 %v10637_v26  ;;  %v10698_v15 = vld [vmem:[#allocation6 + $0x570] ss:$40 sps:$4 sm:$0xff]   ;;  %v10709_v21 = vld [vmem:[#allocation6 + $0x114] ss:$40 sps:$4 sm:$0xff]   ;;  %v10718_v28 = vld [vmem:[#allocation6 + $0x664] ss:$40 sps:$4 sm:$0xff]  }
 0x25c   :  { %4624 = vmatprep.subr.bf16.mxu1 %v10640_v27  ;;  %v10712_v22 = vld [vmem:[#allocation6 + $0x614] ss:$40 sps:$4 sm:$0xff]   ;;  %v10707_v25 = vld [vmem:[#allocation6 + $0x110] ss:$40 sps:$4 sm:$0xff]   ;;  %v10715_v27 = vld [vmem:[#allocation6 + $0x164] ss:$40 sps:$4 sm:$0xff]  }
 0x25d   :  { %v10710_v26 = vld [vmem:[#allocation6 + $0x610] ss:$40 sps:$4 sm:$0xff]  }
 0x25e   :  { %4584 = vmatpush1.bf16.msra.mxu0 %v10635_v30  ;;  %v10713_v30 = vld [vmem:[#allocation6 + $0x160] ss:$40 sps:$4 sm:$0xff]  }
 0x25f   :  { %4625 = vmatpush1.bf16.msra.mxu1 %v10638_v54  ;;  %4585 = vmatprep.subr.bf16.mxu0 %v10643_v57  ;;  %v10716_v54 = vld [vmem:[#allocation6 + $0x660] ss:$40 sps:$4 sm:$0xff]   ;;  %v10719_v57 = vld [vmem:[#allocation6 + $0x1b0] ss:$40 sps:$4 sm:$0xff]  }
 0x260   :  { %4626 = vmatprep.subr.bf16.mxu1 %v10646_v31  ;;  %v10722_v31 = vld [vmem:[#allocation6 + $0x6b0] ss:$40 sps:$4 sm:$0xff]  }
 0x262   :  { %4586 = vmatpush1.bf16.msra.mxu0 %v10641_v32  ;;  %v10727_v32 = vld [vmem:[#allocation6 + $0x204] ss:$40 sps:$4 sm:$0xff]  }
 0x263   :  { %4627 = vmatpush1.bf16.msra.mxu1 %v10644_v33  ;;  %4587 = vmatprep.subr.bf16.mxu0 %v10649_v34  ;;  %v10730_v33 = vld [vmem:[#allocation6 + $0x704] ss:$40 sps:$4 sm:$0xff]  }
 0x264   :  { %4628 = vmatprep.subr.bf16.mxu1 %v10652_v35 }
 0x266   :  { %4588 = vmatpush1.bf16.msra.mxu0 %v10647_v38 }
 0x267   :  { %4629 = vmatpush1.bf16.msra.mxu1 %v10650_v39  ;;  %4589 = vmatprep.subr.bf16.mxu0 %v10655_v41 }
 0x268   :  { %4630 = vmatprep.subr.bf16.mxu1 %v10658_v42  ;;  %v10725_v42 = vld [vmem:[#allocation6 + $0x200] ss:$40 sps:$4 sm:$0xff]  }
 0x26a   :  { %4590 = vmatpush1.bf16.msra.mxu0 %v10653_v44  ;;  %v10728_v44 = vld [vmem:[#allocation6 + $0x700] ss:$40 sps:$4 sm:$0xff]  }
 0x26b   :  { %4631 = vmatpush1.bf16.msra.mxu1 %v10656_v6  ;;  %4591 = vmatprep.subr.bf16.mxu0 %v10661_v11 }
 0x26c   :  { %4632 = vmatprep.subr.bf16.mxu1 %v10664_v45 }
 0x26e   :  { %4592 = vmatpush1.bf16.msra.mxu0 %v10659_v46 }
 0x26f   :  { %4633 = vmatpush1.bf16.msra.mxu1 %v10662_v47  ;;  %4593 = vmatprep.subr.bf16.mxu0 %v10667_v48  ;;  %v10733_v47 = vld [vmem:[#allocation6 + $0x254] ss:$40 sps:$4 sm:$0xff]  }
 0x270   :  { %4634 = vmatprep.subr.bf16.mxu1 %v10670_v50  ;;  %v10736_v48 = vld [vmem:[#allocation6 + $0x754] ss:$40 sps:$4 sm:$0xff]  }
 0x272   :  { %4594 = vmatpush1.bf16.msra.mxu0 %v10665_v51  ;;  %v10731_v51 = vld [vmem:[#allocation6 + $0x250] ss:$40 sps:$4 sm:$0xff]  }
 0x273   :  { %4635 = vmatpush1.bf16.msra.mxu1 %v10668_v53  ;;  %4595 = vmatprep.subr.bf16.mxu0 %v10673_v55  ;;  %v10734_v53 = vld [vmem:[#allocation6 + $0x750] ss:$40 sps:$4 sm:$0xff]   ;;  %v10739_v55 = vld [vmem:[#allocation6 + $0x2a4] ss:$40 sps:$4 sm:$0xff]  }
 0x274   :  { %4636 = vmatprep.subr.bf16.mxu1 %v10676_v56  ;;  %v10742_v56 = vld [vmem:[#allocation6 + $0x7a4] ss:$40 sps:$4 sm:$0xff]  }
 0x276   :  { %4596 = vmatpush1.bf16.msra.mxu0 %v10671_v58  ;;  %v10737_v58 = vld [vmem:[#allocation6 + $0x2a0] ss:$40 sps:$4 sm:$0xff]  }
 0x277   :  { %4637 = vmatpush1.bf16.msra.mxu1 %v10674_v59  ;;  %4597 = vmatprep.subr.bf16.mxu0 %v10679_v60  ;;  %v10740_v59 = vld [vmem:[#allocation6 + $0x7a0] ss:$40 sps:$4 sm:$0xff]   ;;  %v10745_v60 = vld [vmem:[#allocation6 + $0x2f4] ss:$40 sps:$4 sm:$0xff]  }
 0x278   :  { %4638 = vmatprep.subr.bf16.mxu1 %v10682_v61  ;;  %v10748_v61 = vld [vmem:[#allocation6 + $0x7f4] ss:$40 sps:$4 sm:$0xff]  }
 0x27a   :  { %4598 = vmatpush1.bf16.msra.mxu0 %v10677_v62  ;;  %v10743_v62 = vld [vmem:[#allocation6 + $0x2f0] ss:$40 sps:$4 sm:$0xff]  }
 0x27b   :  { %4639 = vmatpush1.bf16.msra.mxu1 %v10680_v63  ;;  %4599 = vmatprep.subr.bf16.mxu0 %v10685_v0  ;;  %v10746_v63 = vld [vmem:[#allocation6 + $0x7f0] ss:$40 sps:$4 sm:$0xff]   ;;  %v10751_v0 = vld [vmem:[#allocation6 + $0x344] ss:$40 sps:$4 sm:$0xff]  }
 0x27c   :  { %4640 = vmatprep.subr.bf16.mxu1 %v10688_v1  ;;  %v10754_v1 = vld [vmem:[#allocation6 + $0x844] ss:$40 sps:$4 sm:$0xff]  }
 0x27e   :  { %4600 = vmatpush1.bf16.msra.mxu0 %v10683_v2  ;;  %v10749_v2 = vld [vmem:[#allocation6 + $0x340] ss:$40 sps:$4 sm:$0xff]  }
 0x27f   :  { %4641 = vmatpush1.bf16.msra.mxu1 %v10686_v3  ;;  %4651 = vmatprep.subr.bf16.mxu0 %v10691_v4  ;;  %v10752_v3 = vld [vmem:[#allocation6 + $0x840] ss:$40 sps:$4 sm:$0xff]   ;;  %v10757_v4 = vld [vmem:[#allocation6 + $0x394] ss:$40 sps:$4 sm:$0xff]  }
 0x280   :  { %4692 = vmatprep.subr.bf16.mxu1 %v10694_v5  ;;  %v10760_v5 = vld [vmem:[#allocation6 + $0x894] ss:$40 sps:$4 sm:$0xff]  }
 0x281   :  { %4602 = vmatmul.mubr.bf16.vlgmr.msra.gmra.mrb[28].mxu0 %v11826_v20 }
 0x282   :  { %4643 = vmatmul.mubr.bf16.vlgmr.msra.gmra.mrb[28].mxu1 %v11828_v23  ;;  %4652 = vmatpush1.bf16.msra.mxu0 %v10689_v7  ;;  %v10755_v7 = vld [vmem:[#allocation6 + $0x390] ss:$40 sps:$4 sm:$0xff]  }
 0x283   :  { %4693 = vmatpush1.bf16.msra.mxu1 %v10692_v10  ;;  %4653 = vmatprep.subr.bf16.mxu0 %v10697_v12  ;;  %v10758_v10 = vld [vmem:[#allocation6 + $0x890] ss:$40 sps:$4 sm:$0xff]   ;;  %v10763_v12 = vld [vmem:[#allocation6 + $0x3e4] ss:$40 sps:$4 sm:$0xff]  }
 0x284   :  { %4694 = vmatprep.subr.bf16.mxu1 %v10700_v13  ;;  %4683 = vmatprep.mubr.bf16.mxu0 %v11808_v49  ;;  %v10721_v49 = vld [vmem:[#allocation6 + $0x1b4] ss:$40 sps:$4 sm:$0xff]   ;;  %v10766_v13 = vld [vmem:[#allocation6 + $0x8e4] ss:$40 sps:$4 sm:$0xff]  }
 0x285   :  { %4724 = vmatprep.mubr.bf16.mxu1 %v11810_v52  ;;  %v10724_v52 = vld [vmem:[#allocation6 + $0x6b4] ss:$40 sps:$4 sm:$0xff]  }
 0x286   :  { %4654 = vmatpush1.bf16.msra.mxu0 %v10695_v14  ;;  %v10761_v14 = vld [vmem:[#allocation6 + $0x3e0] ss:$40 sps:$4 sm:$0xff]  }
 0x287   :  { %4695 = vmatpush1.bf16.msra.mxu1 %v10698_v15  ;;  %4655 = vmatprep.subr.bf16.mxu0 %v10703_v16  ;;  %v10764_v15 = vld [vmem:[#allocation6 + $0x8e0] ss:$40 sps:$4 sm:$0xff]   ;;  %v10769_v16 = vld [vmem:[#allocation6 + $0x434] ss:$40 sps:$4 sm:$0xff]  }
 0x288   :  { %4696 = vmatprep.subr.bf16.mxu1 %v10706_v17  ;;  %v10772_v17 = vld [vmem:[#allocation6 + $0x934] ss:$40 sps:$4 sm:$0xff]  }
 0x28a   :  { %4656 = vmatpush1.bf16.msra.mxu0 %v10701_v18  ;;  %v10767_v18 = vld [vmem:[#allocation6 + $0x430] ss:$40 sps:$4 sm:$0xff]  }
 0x28b   :  { %4697 = vmatpush1.bf16.msra.mxu1 %v10704_v19  ;;  %4657 = vmatprep.subr.bf16.mxu0 %v10709_v21  ;;  %v10770_v19 = vld [vmem:[#allocation6 + $0x930] ss:$40 sps:$4 sm:$0xff]   ;;  %v10775_v21 = vld [vmem:[#allocation6 + $0x484] ss:$40 sps:$4 sm:$0xff]  }
 0x28c   :  { %4698 = vmatprep.subr.bf16.mxu1 %v10712_v22  ;;  %v10778_v22 = vld [vmem:[#allocation6 + $0x984] ss:$40 sps:$4 sm:$0xff]  }
 0x28e   :  { %4658 = vmatpush1.bf16.msra.mxu0 %v10707_v25  ;;  %v10773_v25 = vld [vmem:[#allocation6 + $0x480] ss:$40 sps:$4 sm:$0xff]  }
 0x28f   :  { %4699 = vmatpush1.bf16.msra.mxu1 %v10710_v26  ;;  %4659 = vmatprep.subr.bf16.mxu0 %v10715_v27  ;;  %v10776_v26 = vld [vmem:[#allocation6 + $0x980] ss:$40 sps:$4 sm:$0xff]   ;;  %v10781_v27 = vld [vmem:[#allocation6 + $0x4d4] ss:$40 sps:$4 sm:$0xff]  }
 0x290   :  { %4700 = vmatprep.subr.bf16.mxu1 %v10718_v28  ;;  %v10784_v28 = vld [vmem:[#allocation6 + $0x9d4] ss:$40 sps:$4 sm:$0xff]  }
 0x292   :  { %4660 = vmatpush1.bf16.msra.mxu0 %v10713_v30  ;;  %v10779_v30 = vld [vmem:[#allocation6 + $0x4d0] ss:$40 sps:$4 sm:$0xff]  }
 0x293   :  { %4701 = vmatpush1.bf16.msra.mxu1 %v10716_v54  ;;  %4661 = vmatprep.subr.bf16.mxu0 %v10721_v49  ;;  %v10782_v54 = vld [vmem:[#allocation6 + $0x9d0] ss:$40 sps:$4 sm:$0xff]   ;;  %v10787_v49 = vld [vmem:[#allocation6 + $0xa24] ss:$40 sps:$4 sm:$0xff]  }
 0x294   :  { %4702 = vmatprep.subr.bf16.mxu1 %v10724_v52  ;;  %v4357_v34 = vpop.f32.mrb[16].mxu0  ;;  %v10790_v52 = vld [vmem:[#allocation6 + $0xf24] ss:$40 sps:$4 sm:$0xff]  }
 0x295   :  { %v4398_v35 = vpop.f32.mrb[16].mxu1  ;;  %v4359_v39 = vpop.f32.mrb[17].mxu0 }
 0x296   :  { %v11878_v38 = vadd.f32 %v4398_v35, %v4357_v34  ;;  %v4400_v41 = vpop.f32.mrb[17].mxu1  ;;  %v4361_v11 = vpop.f32.mrb[18].mxu0  ;;  %4662 = vmatpush1.bf16.msra.mxu0 %v10719_v57  ;;  %v10785_v57 = vld [vmem:[#allocation6 + $0xa20] ss:$40 sps:$4 sm:$0xff]   ;;  %v10791_v34 = vld [vmem:[#allocation6 + $0xa70] ss:$40 sps:$4 sm:$0xff]  }
 0x297   :  { %v11880_v6 = vadd.f32 %v4400_v41, %v4359_v39  ;;  %4703 = vmatpush1.bf16.msra.mxu1 %v10722_v31  ;;  %v4402_v45 = vpop.f32.mrb[18].mxu1  ;;  %v4362_v46 = vpop.f32.mrb[19].mxu0  ;;  %4663 = vmatprep.subr.bf16.mxu0 %v10727_v32  ;;  %v10788_v31 = vld [vmem:[#allocation6 + $0xf20] ss:$40 sps:$4 sm:$0xff]   ;;  %v10793_v32 = vld [vmem:[#allocation6 + $0xa74] ss:$40 sps:$4 sm:$0xff]  }
 0x298   :  { %4704 = vmatprep.subr.bf16.mxu1 %v10730_v33  ;;  %v4403_v50 = vpop.f32.mrb[19].mxu1  ;;  %v10796_v33 = vld [vmem:[#allocation6 + $0xf74] ss:$40 sps:$4 sm:$0xff]   ;;  %v10794_v35 = vld [vmem:[#allocation6 + $0xf70] ss:$40 sps:$4 sm:$0xff]  }
 0x299   :  { %v10799_v39 = vld [vmem:[#allocation6 + $0xac4] ss:$40 sps:$4 sm:$0xff]   ;;  %v10805_v11 = vld [vmem:[#allocation6 + $0xb14] ss:$40 sps:$4 sm:$0xff]   ;;  %v10803_v45 = vld [vmem:[#allocation6 + $0xb10] ss:$40 sps:$4 sm:$0xff]  }
 0x29a   :  { %4664 = vmatpush1.bf16.msra.mxu0 %v10725_v42  ;;  %v10802_v41 = vld [vmem:[#allocation6 + $0xfc4] ss:$40 sps:$4 sm:$0xff]   ;;  %v10797_v42 = vld [vmem:[#allocation6 + $0xac0] ss:$40 sps:$4 sm:$0xff]  }
 0x29b   :  { %4705 = vmatpush1.bf16.msra.mxu1 %v10728_v44  ;;  %4665 = vmatprep.subr.bf16.mxu0 %v10733_v47  ;;  %v10800_v44 = vld [vmem:[#allocation6 + $0xfc0] ss:$40 sps:$4 sm:$0xff]   ;;  %v10811_v46 = vld [vmem:[#allocation6 + $0xb64] ss:$40 sps:$4 sm:$0xff]  }
 0x29c   :  { %4706 = vmatprep.subr.bf16.mxu1 %v10736_v48  ;;  %v10814_v47 = vld [vmem:[#allocation6 + $0x1064] ss:$40 sps:$4 sm:$0xff]   ;;  %v10809_v48 = vld [vmem:[#allocation6 + $0xb60] ss:$40 sps:$4 sm:$0xff]  }
 0x29d   :  { %v10812_v50 = vld [vmem:[#allocation6 + $0x1060] ss:$40 sps:$4 sm:$0xff]  }
 0x29e   :  { %4666 = vmatpush1.bf16.msra.mxu0 %v10731_v51  ;;  %v10815_v51 = vld [vmem:[#allocation6 + $0xbb0] ss:$40 sps:$4 sm:$0xff]  }
 0x29f   :  { %4707 = vmatpush1.bf16.msra.mxu1 %v10734_v53  ;;  %4667 = vmatprep.subr.bf16.mxu0 %v10739_v55  ;;  %v10818_v53 = vld [vmem:[#allocation6 + $0x10b0] ss:$40 sps:$4 sm:$0xff]   ;;  %v10823_v55 = vld [vmem:[#allocation6 + $0xc04] ss:$40 sps:$4 sm:$0xff]  }
 0x2a0   :  { %4708 = vmatprep.subr.bf16.mxu1 %v10742_v56  ;;  %v10826_v56 = vld [vmem:[#allocation6 + $0x1104] ss:$40 sps:$4 sm:$0xff]  }
 0x2a2   :  { %4668 = vmatpush1.bf16.msra.mxu0 %v10737_v58 }
 0x2a3   :  { %4709 = vmatpush1.bf16.msra.mxu1 %v10740_v59  ;;  %4669 = vmatprep.subr.bf16.mxu0 %v10745_v60 }
 0x2a4   :  { %4710 = vmatprep.subr.bf16.mxu1 %v10748_v61 }
 0x2a6   :  { %4670 = vmatpush1.bf16.msra.mxu0 %v10743_v62 }
 0x2a7   :  { %4711 = vmatpush1.bf16.msra.mxu1 %v10746_v63  ;;  %4671 = vmatprep.subr.bf16.mxu0 %v10751_v0  ;;  %v10821_v63 = vld [vmem:[#allocation6 + $0xc00] ss:$40 sps:$4 sm:$0xff]  }
 0x2a8   :  { %4712 = vmatprep.subr.bf16.mxu1 %v10754_v1 }
 0x2aa   :  { %4672 = vmatpush1.bf16.msra.mxu0 %v10749_v2  ;;  %v10824_v2 = vld [vmem:[#allocation6 + $0x1100] ss:$40 sps:$4 sm:$0xff]  }
 0x2ab   :  { %4713 = vmatpush1.bf16.msra.mxu1 %v10752_v3  ;;  %4673 = vmatprep.subr.bf16.mxu0 %v10757_v4  ;;  %v10829_v3 = vld [vmem:[#allocation6 + $0xc54] ss:$40 sps:$4 sm:$0xff]  }
 0x2ac   :  { %4714 = vmatprep.subr.bf16.mxu1 %v10760_v5 }
 0x2ae   :  { %4674 = vmatpush1.bf16.msra.mxu0 %v10755_v7 }
 0x2af   :  { %4715 = vmatpush1.bf16.msra.mxu1 %v10758_v10  ;;  %4675 = vmatprep.subr.bf16.mxu0 %v10763_v12  ;;  %v10832_v10 = vld [vmem:[#allocation6 + $0x1154] ss:$40 sps:$4 sm:$0xff]  }
 0x2b0   :  { %4716 = vmatprep.subr.bf16.mxu1 %v10766_v13 }
 0x2b2   :  { %4676 = vmatpush1.bf16.msra.mxu0 %v10761_v14  ;;  %v10830_v14 = vld [vmem:[#allocation6 + $0x1150] ss:$40 sps:$4 sm:$0xff]  }
 0x2b3   :  { %4717 = vmatpush1.bf16.msra.mxu1 %v10764_v15  ;;  %4677 = vmatprep.subr.bf16.mxu0 %v10769_v16  ;;  %v10838_v15 = vld [vmem:[#allocation6 + $0x11a4] ss:$40 sps:$4 sm:$0xff]   ;;  %v10833_v16 = vld [vmem:[#allocation6 + $0xca0] ss:$40 sps:$4 sm:$0xff]  }
 0x2b4   :  { %4718 = vmatprep.subr.bf16.mxu1 %v10772_v17  ;;  %v10836_v17 = vld [vmem:[#allocation6 + $0x11a0] ss:$40 sps:$4 sm:$0xff]  }
 0x2b6   :  { %4678 = vmatpush1.bf16.msra.mxu0 %v10767_v18  ;;  %v10841_v18 = vld [vmem:[#allocation6 + $0xcf4] ss:$40 sps:$4 sm:$0xff]  }
 0x2b7   :  { %4719 = vmatpush1.bf16.msra.mxu1 %v10770_v19  ;;  %4679 = vmatprep.subr.bf16.mxu0 %v10775_v21  ;;  %v10844_v19 = vld [vmem:[#allocation6 + $0x11f4] ss:$40 sps:$4 sm:$0xff]   ;;  %v10839_v21 = vld [vmem:[#allocation6 + $0xcf0] ss:$40 sps:$4 sm:$0xff]  }
 0x2b8   :  { %4720 = vmatprep.subr.bf16.mxu1 %v10778_v22  ;;  %v10842_v22 = vld [vmem:[#allocation6 + $0x11f0] ss:$40 sps:$4 sm:$0xff]  }
 0x2ba   :  { %4680 = vmatpush1.bf16.msra.mxu0 %v10773_v25  ;;  %v10847_v25 = vld [vmem:[#allocation6 + $0xd44] ss:$40 sps:$4 sm:$0xff]  }
 0x2bb   :  { %4721 = vmatpush1.bf16.msra.mxu1 %v10776_v26  ;;  %4681 = vmatprep.subr.bf16.mxu0 %v10781_v27  ;;  %v10850_v26 = vld [vmem:[#allocation6 + $0x1244] ss:$40 sps:$4 sm:$0xff]   ;;  %v10845_v27 = vld [vmem:[#allocation6 + $0xd40] ss:$40 sps:$4 sm:$0xff]  }
 0x2bc   :  { %4722 = vmatprep.subr.bf16.mxu1 %v10784_v28  ;;  %v10848_v28 = vld [vmem:[#allocation6 + $0x1240] ss:$40 sps:$4 sm:$0xff]  }
 0x2be   :  { %4682 = vmatpush1.bf16.msra.mxu0 %v10779_v30  ;;  %v4852_v30 = vlaneseq }
 0x2bf   :  { %4723 = vmatpush1.bf16.msra.mxu1 %v10782_v54  ;;  %4733 = vmatprep.subr.bf16.mxu0 %v10787_v49  ;;  %v10853_v54 = vld [vmem:[#allocation6 + $0xd94] ss:$40 sps:$4 sm:$0xff]  }
 0x2c0   :  { %4774 = vmatprep.subr.bf16.mxu1 %v10790_v52  ;;  %v10856_v49 = vld [vmem:[#allocation6 + $0x1294] ss:$40 sps:$4 sm:$0xff]   ;;  %v10851_v52 = vld [vmem:[#allocation6 + $0xd90] ss:$40 sps:$4 sm:$0xff]  }
 0x2c1   :  { %4684 = vmatmul.mubr.bf16.vlgmr.msra.gmra.mrb[32].mxu0 %v11814_v8  ;;  %v10808_v8 = vld [vmem:[#allocation6 + $0x1014] ss:$40 sps:$4 sm:$0xff]  }
 0x2c2   :  { %4725 = vmatmul.mubr.bf16.vlgmr.msra.gmra.mrb[32].mxu1 %v11816_v9  ;;  %4734 = vmatpush1.bf16.msra.mxu0 %v10785_v57  ;;  %v10806_v9 = vld [vmem:[#allocation6 + $0x1010] ss:$40 sps:$4 sm:$0xff]  }
 0x2c3   :  { %4775 = vmatpush1.bf16.msra.mxu1 %v10788_v31  ;;  %4735 = vmatprep.subr.bf16.mxu0 %v10793_v32  ;;  %v10854_v57 = vld [vmem:[#allocation6 + $0x1290] ss:$40 sps:$4 sm:$0xff]   ;;  %v11892_v31 = vshrl.u32 %v4852_v30, 7  ;;  %v10859_v32 = vld [vmem:[#allocation6 + $0xde4] ss:$40 sps:$4 sm:$0xff]  }
 0x2c4   :  { %4776 = vmatprep.subr.bf16.mxu1 %v10796_v33  ;;  %4765 = vmatprep.mubr.bf16.mxu0 %v11820_v36  ;;  %v10817_v36 = vld [vmem:[#allocation6 + $0xbb4] ss:$40 sps:$4 sm:$0xff]   ;;  %v10862_v33 = vld [vmem:[#allocation6 + $0x12e4] ss:$40 sps:$4 sm:$0xff]  }
 0x2c5   :  { %4806 = vmatprep.mubr.bf16.mxu1 %v11822_v40  ;;  %v10820_v40 = vld [vmem:[#allocation6 + $0x10b4] ss:$40 sps:$4 sm:$0xff]  }
 0x2c6   :  { %4736 = vmatpush1.bf16.msra.mxu0 %v10791_v34  ;;  %v10857_v34 = vld [vmem:[#allocation6 + $0xde0] ss:$40 sps:$4 sm:$0xff]  }
 0x2c7   :  { %4777 = vmatpush1.bf16.msra.mxu1 %v10794_v35  ;;  %4737 = vmatprep.subr.bf16.mxu0 %v10799_v39  ;;  %v10860_v35 = vld [vmem:[#allocation6 + $0x12e0] ss:$40 sps:$4 sm:$0xff]  }
 0x2c8   :  { %4778 = vmatprep.subr.bf16.mxu1 %v10802_v41  ;;  %v11894_v39 = vld [vmem:[#allocation8] sm:$0xff]  ;;  %v11897_v41 = vsub.s32 1, %v11892_v31 }
 0x2ca   :  { %4738 = vmatpush1.bf16.msra.mxu0 %v10797_v42  ;;  %v10865_v42 = vld [vmem:[#allocation6 + $0xe34] ss:$40 sps:$4 sm:$0xff]  }
 0x2cb   :  { %4779 = vmatpush1.bf16.msra.mxu1 %v10800_v44  ;;  %4739 = vmatprep.subr.bf16.mxu0 %v10805_v11  ;;  %v10868_v44 = vld [vmem:[#allocation6 + $0x1334] ss:$40 sps:$4 sm:$0xff]   ;;  %v10863_v11 = vld [vmem:[#allocation6 + $0xe30] ss:$40 sps:$4 sm:$0xff]  }
 0x2cc   :  { %4780 = vmatprep.subr.bf16.mxu1 %v10808_v8  ;;  %v10866_v8 = vld [vmem:[#allocation6 + $0x1330] ss:$40 sps:$4 sm:$0xff]  }
 0x2ce   :  { %4740 = vmatpush1.bf16.msra.mxu0 %v10803_v45  ;;  %v4859_v45 = vrot.slane %v11894_v39, %v11897_v41 }
 0x2cf   :  { %4781 = vmatpush1.bf16.msra.mxu1 %v10806_v9  ;;  %4741 = vmatprep.subr.bf16.mxu0 %v10811_v46  ;;  %v10871_v9 = vld [vmem:[#allocation6 + $0xe84] ss:$40 sps:$4 sm:$0xff]  }
 0x2d0   :  { %4782 = vmatprep.subr.bf16.mxu1 %v10814_v47  ;;  %v10874_v46 = vld [vmem:[#allocation6 + $0x1384] ss:$40 sps:$4 sm:$0xff]   ;;  %v10869_v47 = vld [vmem:[#allocation6 + $0xe80] ss:$40 sps:$4 sm:$0xff]  }
 0x2d2   :  { %4742 = vmatpush1.bf16.msra.mxu0 %v10809_v48  ;;  %v10872_v48 = vld [vmem:[#allocation6 + $0x1380] ss:$40 sps:$4 sm:$0xff]  }
 0x2d3   :  { %4783 = vmatpush1.bf16.msra.mxu1 %v10812_v50  ;;  %4743 = vmatprep.subr.bf16.mxu0 %v10817_v36  ;;  %v4903_v50 = vadd.f32 %v4859_v45, %v11854_v43  ;;  %v10877_v36 = vld [vmem:[#allocation6 + $0xed4] ss:$40 sps:$4 sm:$0xff]  }
 0x2d4   :  { %4784 = vmatprep.subr.bf16.mxu1 %v10820_v40  ;;  %v4439_v58 = vpop.f32.mrb[20].mxu0  ;;  %v10880_v40 = vld [vmem:[#allocation6 + $0x13d4] ss:$40 sps:$4 sm:$0xff]  }
 0x2d5   :  { %v4480_v59 = vpop.f32.mrb[20].mxu1  ;;  %v4440_v60 = vadd.f32 %v4439_v58, %v11878_v38  ;;  %v4441_v61 = vpop.f32.mrb[21].mxu0  ;;  %v10827_v38 = vld [vmem:[#allocation6 + $0xc50] ss:$40 sps:$4 sm:$0xff]  }
 0x2d6   :  { %v4482_v62 = vpop.f32.mrb[21].mxu1  ;;  %v4442_v0 = vadd.f32 %v4441_v61, %v11880_v6  ;;  %v4443_v1 = vpop.f32.mrb[22].mxu0  ;;  %4744 = vmatpush1.bf16.msra.mxu0 %v10815_v51  ;;  %v10835_v6 = vld [vmem:[#allocation6 + $0xca4] ss:$40 sps:$4 sm:$0xff]   ;;  %v10875_v51 = vld [vmem:[#allocation6 + $0xed0] ss:$40 sps:$4 sm:$0xff]  }
 0x2d7   :  { %4785 = vmatpush1.bf16.msra.mxu1 %v10818_v53  ;;  %v4484_v4 = vpop.f32.mrb[22].mxu1  ;;  %v11888_v5 = vadd.f32 %v4480_v59, %v4440_v60  ;;  %v4444_v7 = vpop.f32.mrb[23].mxu0  ;;  %4745 = vmatprep.subr.bf16.mxu0 %v10823_v55  ;;  %v10878_v53 = vld [vmem:[#allocation6 + $0x13d0] ss:$40 sps:$4 sm:$0xff]   ;;  %v4913_v55 = vmax.f32 %v4903_v50, 0.0 }
 0x2d8   :  { %4786 = vmatprep.subr.bf16.mxu1 %v10826_v56  ;;  %v4485_v12 = vpop.f32.mrb[23].mxu1  ;;  %v11890_v13 = vadd.f32 %v4482_v62, %v4442_v0  ;;  %v10883_v56 = vld [vmem:[#allocation9 + $0x4] ss:$20 sps:$4 sm:$0xff]   ;;  %v10886_v58 = vld [vmem:[#allocation9 + $0xc] ss:$20 sps:$4 sm:$0xff]  }
 0x2d9   :  { %v10881_v59 = vld [vmem:[#allocation9] ss:$20 sps:$4 sm:$0xff]   ;;  %v10884_v60 = vld [vmem:[#allocation9 + $0x8] ss:$20 sps:$4 sm:$0xff]   ;;  %v11902_v43 = vpack.c.bf16 %v4913_v55, %v4913_v55  ;;  %v10890_v0 = vld [vmem:[#allocation9 + $0x30] ss:$20 sps:$4 sm:$0xff]  }
 0x2da   :  { %4746 = vmatpush1.bf16.msra.mxu0 %v10821_v63  ;;  %v10889_v61 = vld [vmem:[#allocation9 + $0x2c] ss:$20 sps:$4 sm:$0xff]   ;;  %v10892_v62 = vld [vmem:[#allocation9 + $0x34] ss:$20 sps:$4 sm:$0xff]   ;;  %v10904_v7 = vld [vmem:[#allocation9 + $0x84] ss:$20 sps:$4 sm:$0xff]  }
 0x2db   :  { %4787 = vmatpush1.bf16.msra.mxu1 %v10824_v2  ;;  %4747 = vmatprep.subr.bf16.mxu0 %v10829_v3  ;;  %v10887_v63 = vld [vmem:[#allocation9 + $0x28] ss:$20 sps:$4 sm:$0xff]   ;;  %v10893_v3 = vld [vmem:[#allocation9 + $0x50] ss:$20 sps:$4 sm:$0xff]   ;;  %v10896_v4 = vld [vmem:[#allocation9 + $0x58] ss:$20 sps:$4 sm:$0xff]  }
 0x2dc   :  { %4788 = vmatprep.subr.bf16.mxu1 %v10832_v10  ;;  %v10895_v1 = vld [vmem:[#allocation9 + $0x54] ss:$20 sps:$4 sm:$0xff]   ;;  %v10898_v2 = vld [vmem:[#allocation9 + $0x5c] ss:$20 sps:$4 sm:$0xff]   ;;  %v10907_v12 = vld [vmem:[#allocation9 + $0xa4] ss:$20 sps:$4 sm:$0xff]  }
 0x2dd   :  { %v10902_v10 = vld [vmem:[#allocation9 + $0x80] ss:$20 sps:$4 sm:$0xff]   ;;  %v10938_v50 = vld [vmem:[#allocation9 + $0x170] ss:$20 sps:$4 sm:$0xff]  }
 0x2de   :  { %4748 = vmatpush1.bf16.msra.mxu0 %v10827_v38  ;;  %v10905_v38 = vld [vmem:[#allocation9 + $0xa0] ss:$20 sps:$4 sm:$0xff]   ;;  %v10949_v55 = vld [vmem:[#allocation9 + $0x1bc] ss:$20 sps:$4 sm:$0xff]  }
 0x2df   :  { %4789 = vmatpush1.bf16.msra.mxu1 %v10830_v14  ;;  %4749 = vmatprep.subr.bf16.mxu0 %v10835_v6  ;;  %v10910_v14 = vld [vmem:[#allocation9 + $0xac] ss:$20 sps:$4 sm:$0xff]   ;;  %v10908_v6 = vld [vmem:[#allocation9 + $0xa8] ss:$20 sps:$4 sm:$0xff]  }
 0x2e0   :  { %4790 = vmatprep.subr.bf16.mxu1 %v10838_v15  ;;  %v10913_v15 = vld [vmem:[#allocation9 + $0xcc] ss:$20 sps:$4 sm:$0xff]  }
 0x2e1   :  { %v10934_v45 = vld [vmem:[#allocation9 + $0x14c] ss:$20 sps:$4 sm:$0xff]  }
 0x2e2   :  { %4750 = vmatpush1.bf16.msra.mxu0 %v10833_v16  ;;  %v10916_v16 = vld [vmem:[#allocation9 + $0xd4] ss:$20 sps:$4 sm:$0xff]  }
 0x2e3   :  { %4791 = vmatpush1.bf16.msra.mxu1 %v10836_v17  ;;  %4751 = vmatprep.subr.bf16.mxu0 %v10841_v18  ;;  %v10911_v17 = vld [vmem:[#allocation9 + $0xc8] ss:$20 sps:$4 sm:$0xff]   ;;  %v10914_v18 = vld [vmem:[#allocation9 + $0xd0] ss:$20 sps:$4 sm:$0xff]  }
 0x2e4   :  { %4792 = vmatprep.subr.bf16.mxu1 %v10844_v19  ;;  %v10919_v19 = vld [vmem:[#allocation9 + $0xf4] ss:$20 sps:$4 sm:$0xff]  }
 0x2e6   :  { %4752 = vmatpush1.bf16.msra.mxu0 %v10839_v21  ;;  %v10922_v21 = vld [vmem:[#allocation9 + $0xfc] ss:$20 sps:$4 sm:$0xff]  }
 0x2e7   :  { %4793 = vmatpush1.bf16.msra.mxu1 %v10842_v22  ;;  %4753 = vmatprep.subr.bf16.mxu0 %v10847_v25 }
 0x2e8   :  { %4794 = vmatprep.subr.bf16.mxu1 %v10850_v26 }
 0x2ea   :  { %4754 = vmatpush1.bf16.msra.mxu0 %v10845_v27 }
 0x2eb   :  { %4795 = vmatpush1.bf16.msra.mxu1 %v10848_v28  ;;  %4755 = vmatprep.subr.bf16.mxu0 %v10853_v54 }
 0x2ec   :  { %4796 = vmatprep.subr.bf16.mxu1 %v10856_v49  ;;  %v10917_v49 = vld [vmem:[#allocation9 + $0xf0] ss:$20 sps:$4 sm:$0xff]  }
 0x2ee   :  { %4756 = vmatpush1.bf16.msra.mxu0 %v10851_v52 }
 0x2ef   :  { %4797 = vmatpush1.bf16.msra.mxu1 %v10854_v57  ;;  %4757 = vmatprep.subr.bf16.mxu0 %v10859_v32  ;;  %v10920_v32 = vld [vmem:[#allocation9 + $0xf8] ss:$20 sps:$4 sm:$0xff]  }
 0x2f0   :  { %4798 = vmatprep.subr.bf16.mxu1 %v10862_v33  ;;  %v10925_v33 = vld [vmem:[#allocation9 + $0x11c] ss:$20 sps:$4 sm:$0xff]  }
 0x2f2   :  { %4758 = vmatpush1.bf16.msra.mxu0 %v10857_v34 }
 0x2f3   :  { %4799 = vmatpush1.bf16.msra.mxu1 %v10860_v35  ;;  %4759 = vmatprep.subr.bf16.mxu0 %v10865_v42  ;;  %v10923_v35 = vld [vmem:[#allocation9 + $0x118] ss:$20 sps:$4 sm:$0xff]  }
 0x2f4   :  { %4800 = vmatprep.subr.bf16.mxu1 %v10868_v44  ;;  %v10928_v42 = vld [vmem:[#allocation9 + $0x124] ss:$20 sps:$4 sm:$0xff]   ;;  %v10926_v44 = vld [vmem:[#allocation9 + $0x120] ss:$20 sps:$4 sm:$0xff]  }
 0x2f6   :  { %4760 = vmatpush1.bf16.msra.mxu0 %v10863_v11  ;;  %v10931_v11 = vld [vmem:[#allocation9 + $0x144] ss:$20 sps:$4 sm:$0xff]  }
 0x2f7   :  { %4801 = vmatpush1.bf16.msra.mxu1 %v10866_v8  ;;  %4761 = vmatprep.subr.bf16.mxu0 %v10871_v9  ;;  %v10929_v8 = vld [vmem:[#allocation9 + $0x140] ss:$20 sps:$4 sm:$0xff]   ;;  %v10932_v9 = vld [vmem:[#allocation9 + $0x148] ss:$20 sps:$4 sm:$0xff]  }
 0x2f8   :  { %4802 = vmatprep.subr.bf16.mxu1 %v10874_v46  ;;  %v10937_v46 = vld [vmem:[#allocation9 + $0x16c] ss:$20 sps:$4 sm:$0xff]  }
 0x2fa   :  { %4762 = vmatpush1.bf16.msra.mxu0 %v10869_v47  ;;  %v10935_v47 = vld [vmem:[#allocation9 + $0x168] ss:$20 sps:$4 sm:$0xff]  }
 0x2fb   :  { %4803 = vmatpush1.bf16.msra.mxu1 %v10872_v48  ;;  %4763 = vmatprep.subr.bf16.mxu0 %v10877_v36  ;;  %v10940_v48 = vld [vmem:[#allocation9 + $0x174] ss:$20 sps:$4 sm:$0xff]  }
 0x2fc   :  { %4804 = vmatprep.subr.bf16.mxu1 %v10880_v40  ;;  %v10943_v36 = vld [vmem:[#allocation9 + $0x194] ss:$20 sps:$4 sm:$0xff]   ;;  %v10946_v40 = vld [vmem:[#allocation9 + $0x19c] ss:$20 sps:$4 sm:$0xff]  }
 0x2fe   :  { %4764 = vmatpush1.bf16.msra.mxu0 %v10875_v51  ;;  %v10941_v51 = vld [vmem:[#allocation9 + $0x190] ss:$20 sps:$4 sm:$0xff]  }
 0x2ff   :  { %4805 = vmatpush1.bf16.msra.mxu1 %v10878_v53  ;;  %7519 = vmatprep.subr.bf16.mxu0 %v10883_v56  ;;  %v10944_v53 = vld [vmem:[#allocation9 + $0x198] ss:$20 sps:$4 sm:$0xff]  }
 0x300   :  { %7724 = vmatprep.subr.bf16.mxu1 %v10886_v58  ;;  %v10952_v56 = vld [vmem:[#allocation9 + $0x1c4] ss:$20 sps:$4 sm:$0xff]  }
 0x301   :  { %4766 = vmatmul.mubr.bf16.vlgmr.msra.gmra.mrb[36].mxu0 %v11826_v20  ;;  %v10901_v20 = vld [vmem:[#allocation9 + $0x7c] ss:$20 sps:$4 sm:$0xff]   ;;  %v10947_v58 = vld [vmem:[#allocation9 + $0x1b8] ss:$20 sps:$4 sm:$0xff]  }
 0x302   :  { %4807 = vmatmul.mubr.bf16.vlgmr.msra.gmra.mrb[36].mxu1 %v11828_v23  ;;  %7520 = vmatpush1.bf16.msra.mxu0 %v10881_v59  ;;  %v10899_v23 = vld [vmem:[#allocation9 + $0x78] ss:$20 sps:$4 sm:$0xff]   ;;  %v10950_v59 = vld [vmem:[#allocation9 + $0x1c0] ss:$20 sps:$4 sm:$0xff]  }
 0x303   :  { %7551 = vmatprep.mubr.bf16.mxu0 %v11902_v43  ;;  %7725 = vmatpush1.bf16.msra.mxu1 %v10884_v60  ;;  %v10955_v60 = vld [vmem:[#allocation9 + $0x1e4] ss:$20 sps:$4 sm:$0xff]  }
 0x304   :  { %7756 = vmatprep.mubr.bf16.mxu1 %v11902_v43  ;;  %7521 = vmatprep.subr.bf16.mxu0 %v10889_v61  ;;  %v10958_v61 = vld [vmem:[#allocation9 + $0x1ec] ss:$20 sps:$4 sm:$0xff]  }
 0x305   :  { %7726 = vmatprep.subr.bf16.mxu1 %v10892_v62  ;;  %v10953_v62 = vld [vmem:[#allocation9 + $0x1e0] ss:$20 sps:$4 sm:$0xff]  }
 0x306   :  { %7522 = vmatpush1.bf16.msra.mxu0 %v10887_v63  ;;  %v11913_v63 = vsub.s32 0, %v11892_v31 }
 0x307   :  { %7727 = vmatpush1.bf16.msra.mxu1 %v10890_v0  ;;  %7523 = vmatprep.subr.bf16.mxu0 %v10895_v1  ;;  %v10956_v0 = vld [vmem:[#allocation9 + $0x1e8] ss:$20 sps:$4 sm:$0xff]   ;;  %v10961_v1 = vld [vmem:[#allocation9 + $0x20c] ss:$20 sps:$4 sm:$0xff]  }
 0x308   :  { %7728 = vmatprep.subr.bf16.mxu1 %v10898_v2  ;;  %v10964_v2 = vld [vmem:[#allocation9 + $0x214] ss:$20 sps:$4 sm:$0xff]  }
 0x30a   :  { %7524 = vmatpush1.bf16.msra.mxu0 %v10893_v3  ;;  %v4866_v3 = vsub.s32 3, %v11892_v31 }
 0x30b   :  { %7729 = vmatpush1.bf16.msra.mxu1 %v10896_v4  ;;  %7525 = vmatprep.subr.bf16.mxu0 %v10901_v20  ;;  %v10959_v4 = vld [vmem:[#allocation9 + $0x208] ss:$20 sps:$4 sm:$0xff]   ;;  %v4855_v20 = vrot.slane %v11894_v39, %v11913_v63 }
 0x30c   :  { %7730 = vmatprep.subr.bf16.mxu1 %v10904_v7  ;;  %v10967_v7 = vld [vmem:[#allocation9 + $0x234] ss:$20 sps:$4 sm:$0xff]  }
 0x30e   :  { %7526 = vmatpush1.bf16.msra.mxu0 %v10899_v23  ;;  %v10962_v23 = vld [vmem:[#allocation9 + $0x210] ss:$20 sps:$4 sm:$0xff]  }
 0x30f   :  { %7731 = vmatpush1.bf16.msra.mxu1 %v10902_v10  ;;  %7527 = vmatprep.subr.bf16.mxu0 %v10907_v12  ;;  %v10970_v10 = vld [vmem:[#allocation9 + $0x23c] ss:$20 sps:$4 sm:$0xff]   ;;  %v4867_v12 = vrot.slane %v11894_v39, %v4866_v3 }
 0x310   :  { %7732 = vmatprep.subr.bf16.mxu1 %v10910_v14  ;;  %v4902_v14 = vadd.f32 %v4855_v20, %v11852_v37  ;;  %v10977_v37 = vld [vmem:[#allocation9 + $0x280] ss:$20 sps:$4 sm:$0xff]  }
 0x312   :  { %7528 = vmatpush1.bf16.msra.mxu0 %v10905_v38  ;;  %v10965_v38 = vld [vmem:[#allocation9 + $0x230] ss:$20 sps:$4 sm:$0xff]  }
 0x313   :  { %7733 = vmatpush1.bf16.msra.mxu1 %v10908_v6  ;;  %7529 = vmatprep.subr.bf16.mxu0 %v10913_v15  ;;  %v10968_v6 = vld [vmem:[#allocation9 + $0x238] ss:$20 sps:$4 sm:$0xff]   ;;  %v10973_v15 = vld [vmem:[#allocation9 + $0x25c] ss:$20 sps:$4 sm:$0xff]  }
 0x314   :  { %v4521_v22 = vpop.f32.mrb[24].mxu0  ;;  %7734 = vmatprep.subr.bf16.mxu1 %v10916_v16  ;;  %v10976_v16 = vld [vmem:[#allocation9 + $0x264] ss:$20 sps:$4 sm:$0xff]  }
 0x315   :  { %v4562_v25 = vpop.f32.mrb[24].mxu1  ;;  %v4523_v27 = vpop.f32.mrb[25].mxu0 }
 0x316   :  { %v11908_v26 = vadd.f32 %v4562_v25, %v4521_v22  ;;  %v4564_v28 = vpop.f32.mrb[25].mxu1  ;;  %v4525_v54 = vpop.f32.mrb[26].mxu0  ;;  %7530 = vmatpush1.bf16.msra.mxu0 %v10911_v17  ;;  %v4905_v17 = vadd.f32 %v4867_v12, %v11872_v29  ;;  %v10979_v22 = vld [vmem:[#allocation9 + $0x284] ss:$20 sps:$4 sm:$0xff]   ;;  %v10982_v25 = vld [vmem:[#allocation9 + $0x28c] ss:$20 sps:$4 sm:$0xff]  }
 0x317   :  { %v11910_v30 = vadd.f32 %v4564_v28, %v4523_v27  ;;  %v4566_v52 = vpop.f32.mrb[26].mxu1  ;;  %7735 = vmatpush1.bf16.msra.mxu1 %v10914_v18  ;;  %v4526_v57 = vpop.f32.mrb[27].mxu0  ;;  %7531 = vmatprep.subr.bf16.mxu0 %v10919_v19  ;;  %v10971_v18 = vld [vmem:[#allocation9 + $0x258] ss:$20 sps:$4 sm:$0xff]   ;;  %v4912_v19 = vmax.f32 %v4902_v14, 0.0 }
 0x318   :  { %v4567_v34 = vpop.f32.mrb[27].mxu1  ;;  %7736 = vmatprep.subr.bf16.mxu1 %v10922_v21  ;;  %v10974_v21 = vld [vmem:[#allocation9 + $0x260] ss:$20 sps:$4 sm:$0xff]   ;;  %v4915_v27 = vmax.f32 %v4905_v17, 0.0  ;;  %v10980_v54 = vld [vmem:[#allocation9 + $0x288] ss:$20 sps:$4 sm:$0xff]  }
 0x319   :  { %v11923_v28 = vpack.c.bf16 %v4912_v19, %v4912_v19  ;;  %v10988_v52 = vld [vmem:[#allocation9 + $0x2b4] ss:$20 sps:$4 sm:$0xff]   ;;  %v10994_v34 = vld [vmem:[#allocation9 + $0x2dc] ss:$20 sps:$4 sm:$0xff]   ;;  %v11027_v14 = vld [vmem:[#allocation9 + $0x3c4] ss:$20 sps:$4 sm:$0xff]  }
 0x31a   :  { %7532 = vmatpush1.bf16.msra.mxu0 %v10917_v49  ;;  %v10985_v49 = vld [vmem:[#allocation9 + $0x2ac] ss:$20 sps:$4 sm:$0xff]   ;;  %v11925_v29 = vpack.c.bf16 %v4915_v27, %v4915_v27  ;;  %v10983_v57 = vld [vmem:[#allocation9 + $0x2a8] ss:$20 sps:$4 sm:$0xff]   ;;  %v11037_v27 = vld [vmem:[#allocation9 + $0x410] ss:$20 sps:$4 sm:$0xff]  }
 0x31b   :  { %7737 = vmatpush1.bf16.msra.mxu1 %v10920_v32  ;;  %7533 = vmatprep.subr.bf16.mxu0 %v10925_v33  ;;  %v10986_v32 = vld [vmem:[#allocation9 + $0x2b0] ss:$20 sps:$4 sm:$0xff]   ;;  %v10991_v33 = vld [vmem:[#allocation9 + $0x2d4] ss:$20 sps:$4 sm:$0xff]   ;;  %v11033_v17 = vld [vmem:[#allocation9 + $0x3ec] ss:$20 sps:$4 sm:$0xff]  }
 0x31c   :  { %7738 = vmatprep.subr.bf16.mxu1 %v10928_v42  ;;  %v10992_v42 = vld [vmem:[#allocation9 + $0x2d8] ss:$20 sps:$4 sm:$0xff]   ;;  %v11031_v19 = vld [vmem:[#allocation9 + $0x3e8] ss:$20 sps:$4 sm:$0xff]  }
 0x31e   :  { %7534 = vmatpush1.bf16.msra.mxu0 %v10923_v35  ;;  %v10989_v35 = vld [vmem:[#allocation9 + $0x2d0] ss:$20 sps:$4 sm:$0xff]  }
 0x31f   :  { %7739 = vmatpush1.bf16.msra.mxu1 %v10926_v44  ;;  %7535 = vmatprep.subr.bf16.mxu0 %v10931_v11  ;;  %v10997_v44 = vld [vmem:[#allocation9 + $0x2fc] ss:$20 sps:$4 sm:$0xff]   ;;  %v11000_v11 = vld [vmem:[#allocation9 + $0x304] ss:$20 sps:$4 sm:$0xff]  }
 0x320   :  { %7740 = vmatprep.subr.bf16.mxu1 %v10934_v45  ;;  %v10998_v45 = vld [vmem:[#allocation9 + $0x300] ss:$20 sps:$4 sm:$0xff]  }
 0x322   :  { %7536 = vmatpush1.bf16.msra.mxu0 %v10929_v8  ;;  %v10995_v8 = vld [vmem:[#allocation9 + $0x2f8] ss:$20 sps:$4 sm:$0xff]  }
 0x323   :  { %7741 = vmatpush1.bf16.msra.mxu1 %v10932_v9  ;;  %7537 = vmatprep.subr.bf16.mxu0 %v10937_v46  ;;  %v11003_v9 = vld [vmem:[#allocation9 + $0x324] ss:$20 sps:$4 sm:$0xff]   ;;  %v11006_v46 = vld [vmem:[#allocation9 + $0x32c] ss:$20 sps:$4 sm:$0xff]  }
 0x324   :  { %7742 = vmatprep.subr.bf16.mxu1 %v10940_v48  ;;  %v11004_v48 = vld [vmem:[#allocation9 + $0x328] ss:$20 sps:$4 sm:$0xff]  }
 0x326   :  { %7538 = vmatpush1.bf16.msra.mxu0 %v10935_v47  ;;  %v11001_v47 = vld [vmem:[#allocation9 + $0x320] ss:$20 sps:$4 sm:$0xff]  }
 0x327   :  { %7743 = vmatpush1.bf16.msra.mxu1 %v10938_v50  ;;  %7539 = vmatprep.subr.bf16.mxu0 %v10943_v36  ;;  %v11009_v50 = vld [vmem:[#allocation9 + $0x34c] ss:$20 sps:$4 sm:$0xff]   ;;  %v11012_v36 = vld [vmem:[#allocation9 + $0x354] ss:$20 sps:$4 sm:$0xff]  }
 0x328   :  { %7744 = vmatprep.subr.bf16.mxu1 %v10946_v40  ;;  %v11007_v40 = vld [vmem:[#allocation9 + $0x348] ss:$20 sps:$4 sm:$0xff]  }
 0x32a   :  { %7540 = vmatpush1.bf16.msra.mxu0 %v10941_v51  ;;  %v11010_v51 = vld [vmem:[#allocation9 + $0x350] ss:$20 sps:$4 sm:$0xff]  }
 0x32b   :  { %7745 = vmatpush1.bf16.msra.mxu1 %v10944_v53  ;;  %7541 = vmatprep.subr.bf16.mxu0 %v10949_v55  ;;  %v11015_v53 = vld [vmem:[#allocation9 + $0x374] ss:$20 sps:$4 sm:$0xff]  }
 0x32c   :  { %7746 = vmatprep.subr.bf16.mxu1 %v10952_v56 }
 0x32e   :  { %7542 = vmatpush1.bf16.msra.mxu0 %v10947_v58  ;;  %v11018_v58 = vld [vmem:[#allocation9 + $0x37c] ss:$20 sps:$4 sm:$0xff]  }
 0x32f   :  { %7747 = vmatpush1.bf16.msra.mxu1 %v10950_v59  ;;  %7543 = vmatprep.subr.bf16.mxu0 %v10955_v60 }
 0x330   :  { %7748 = vmatprep.subr.bf16.mxu1 %v10958_v61 }
 0x332   :  { %7544 = vmatpush1.bf16.msra.mxu0 %v10953_v62 }
 0x333   :  { %7749 = vmatpush1.bf16.msra.mxu1 %v10956_v0  ;;  %7545 = vmatprep.subr.bf16.mxu0 %v10961_v1  ;;  %v11013_v1 = vld [vmem:[#allocation9 + $0x370] ss:$20 sps:$4 sm:$0xff]  }
 0x334   :  { %7750 = vmatprep.subr.bf16.mxu1 %v10964_v2 }
 0x336   :  { %7546 = vmatpush1.bf16.msra.mxu0 %v10959_v4 }
 0x337   :  { %7751 = vmatpush1.bf16.msra.mxu1 %v10962_v23  ;;  %7547 = vmatprep.subr.bf16.mxu0 %v10967_v7  ;;  %v11016_v23 = vld [vmem:[#allocation9 + $0x378] ss:$20 sps:$4 sm:$0xff]   ;;  %v11021_v7 = vld [vmem:[#allocation9 + $0x39c] ss:$20 sps:$4 sm:$0xff]  }
 0x338   :  { %7752 = vmatprep.subr.bf16.mxu1 %v10970_v10 }
 0x33a   :  { %7548 = vmatpush1.bf16.msra.mxu0 %v10965_v38  ;;  %v11019_v38 = vld [vmem:[#allocation9 + $0x398] ss:$20 sps:$4 sm:$0xff]  }
 0x33b   :  { %7753 = vmatpush1.bf16.msra.mxu1 %v10968_v6  ;;  %7549 = vmatprep.subr.bf16.mxu0 %v10973_v15  ;;  %v11030_v6 = vld [vmem:[#allocation9 + $0x3cc] ss:$20 sps:$4 sm:$0xff]  }
 0x33c   :  { %7754 = vmatprep.subr.bf16.mxu1 %v10976_v16  ;;  %v11025_v15 = vld [vmem:[#allocation9 + $0x3c0] ss:$20 sps:$4 sm:$0xff]   ;;  %v11028_v16 = vld [vmem:[#allocation9 + $0x3c8] ss:$20 sps:$4 sm:$0xff]  }
 0x33e   :  { %7550 = vmatpush1.bf16.msra.mxu0 %v10971_v18  ;;  %v11036_v18 = vld [vmem:[#allocation9 + $0x3f4] ss:$20 sps:$4 sm:$0xff]  }
 0x33f   :  { %7755 = vmatpush1.bf16.msra.mxu1 %v10974_v21  ;;  %7560 = vmatprep.subr.bf16.mxu0 %v10979_v22  ;;  %v11034_v21 = vld [vmem:[#allocation9 + $0x3f0] ss:$20 sps:$4 sm:$0xff]   ;;  %v11039_v22 = vld [vmem:[#allocation9 + $0x414] ss:$20 sps:$4 sm:$0xff]  }
 0x340   :  { %7765 = vmatprep.subr.bf16.mxu1 %v10982_v25  ;;  %v11042_v25 = vld [vmem:[#allocation9 + $0x41c] ss:$20 sps:$4 sm:$0xff]  }
 0x341   :  { %7552 = vmatmul.mubr.bf16.vlgmr.msra.gmra.mrb[40].mxu0 %v11923_v28 }
 0x342   :  { %7757 = vmatmul.mubr.bf16.vlgmr.msra.gmra.mrb[40].mxu1 %v11923_v28  ;;  %7561 = vmatpush1.bf16.msra.mxu0 %v10977_v37  ;;  %v11040_v37 = vld [vmem:[#allocation9 + $0x418] ss:$20 sps:$4 sm:$0xff]  }
 0x343   :  { %7592 = vmatprep.mubr.bf16.mxu0 %v11925_v29  ;;  %7766 = vmatpush1.bf16.msra.mxu1 %v10980_v54  ;;  %v11045_v54 = vld [vmem:[#allocation9 + $0x43c] ss:$20 sps:$4 sm:$0xff]  }
 0x344   :  { %7797 = vmatprep.mubr.bf16.mxu1 %v11925_v29  ;;  %7562 = vmatprep.subr.bf16.mxu0 %v10985_v49  ;;  %v11048_v49 = vld [vmem:[#allocation9 + $0x444] ss:$20 sps:$4 sm:$0xff]  }
 0x345   :  { %7767 = vmatprep.subr.bf16.mxu1 %v10988_v52  ;;  %v11043_v52 = vld [vmem:[#allocation9 + $0x438] ss:$20 sps:$4 sm:$0xff]  }
 0x346   :  { %7563 = vmatpush1.bf16.msra.mxu0 %v10983_v57  ;;  %v11046_v57 = vld [vmem:[#allocation9 + $0x440] ss:$20 sps:$4 sm:$0xff]  }
 0x347   :  { %7768 = vmatpush1.bf16.msra.mxu1 %v10986_v32  ;;  %7564 = vmatprep.subr.bf16.mxu0 %v10991_v33  ;;  %v11051_v32 = vld [vmem:[#allocation9 + $0x464] ss:$20 sps:$4 sm:$0xff]   ;;  %v11054_v33 = vld [vmem:[#allocation9 + $0x46c] ss:$20 sps:$4 sm:$0xff]  }
 0x348   :  { %7769 = vmatprep.subr.bf16.mxu1 %v10994_v34  ;;  %v11049_v34 = vld [vmem:[#allocation9 + $0x460] ss:$20 sps:$4 sm:$0xff]  }
 0x34a   :  { %7565 = vmatpush1.bf16.msra.mxu0 %v10989_v35  ;;  %v4862_v35 = vsub.s32 2, %v11892_v31 }
 0x34b   :  { %7770 = vmatpush1.bf16.msra.mxu1 %v10992_v42  ;;  %7566 = vmatprep.subr.bf16.mxu0 %v10997_v44  ;;  %v11052_v42 = vld [vmem:[#allocation9 + $0x468] ss:$20 sps:$4 sm:$0xff]   ;;  %v11057_v44 = vld [vmem:[#allocation9 + $0x48c] ss:$20 sps:$4 sm:$0xff]  }
 0x34c   :  { %7771 = vmatprep.subr.bf16.mxu1 %v11000_v11  ;;  %v11060_v11 = vld [vmem:[#allocation9 + $0x494] ss:$20 sps:$4 sm:$0xff]  }
 0x34e   :  { %7567 = vmatpush1.bf16.msra.mxu0 %v10995_v8  ;;  %v4874_v8 = vsub.s32 5, %v11892_v31 }
 0x34f   :  { %7772 = vmatpush1.bf16.msra.mxu1 %v10998_v45  ;;  %7568 = vmatprep.subr.bf16.mxu0 %v11003_v9  ;;  %v11055_v45 = vld [vmem:[#allocation9 + $0x488] ss:$20 sps:$4 sm:$0xff]   ;;  %v4863_v9 = vrot.slane %v11894_v39, %v4862_v35 }
 0x350   :  { %7773 = vmatprep.subr.bf16.mxu1 %v11006_v46  ;;  %v11058_v46 = vld [vmem:[#allocation9 + $0x490] ss:$20 sps:$4 sm:$0xff]  }
 0x352   :  { %7569 = vmatpush1.bf16.msra.mxu0 %v11001_v47  ;;  %v11063_v47 = vld [vmem:[#allocation9 + $0x4b4] ss:$20 sps:$4 sm:$0xff]  }
 0x353   :  { %7774 = vmatpush1.bf16.msra.mxu1 %v11004_v48  ;;  %7570 = vmatprep.subr.bf16.mxu0 %v11009_v50  ;;  %v11066_v48 = vld [vmem:[#allocation9 + $0x4bc] ss:$20 sps:$4 sm:$0xff]   ;;  %v4875_v50 = vrot.slane %v11894_v39, %v4874_v8  ;;  %v11078_v39 = vld [vmem:[#allocation9 + $0x50c] ss:$20 sps:$4 sm:$0xff]  }
 0x354   :  { %v4603_v55 = vpop.f32.mrb[28].mxu0  ;;  %7775 = vmatprep.subr.bf16.mxu1 %v11012_v36  ;;  %v11061_v36 = vld [vmem:[#allocation9 + $0x4b0] ss:$20 sps:$4 sm:$0xff]  }
 0x355   :  { %v4644_v56 = vpop.f32.mrb[28].mxu1  ;;  %v4604_v59 = vadd.f32 %v4603_v55, %v11908_v26  ;;  %v4605_v60 = vpop.f32.mrb[29].mxu0  ;;  %v11024_v26 = vld [vmem:[#allocation9 + $0x3a4] ss:$20 sps:$4 sm:$0xff]  }
 0x356   :  { %v4646_v61 = vpop.f32.mrb[29].mxu1  ;;  %v4606_v62 = vadd.f32 %v4605_v60, %v11910_v30  ;;  %v4607_v0 = vpop.f32.mrb[30].mxu0  ;;  %7571 = vmatpush1.bf16.msra.mxu0 %v11007_v40  ;;  %v11022_v30 = vld [vmem:[#allocation9 + $0x3a0] ss:$20 sps:$4 sm:$0xff]   ;;  %v4904_v40 = vadd.f32 %v4863_v9, %v11870_v24  ;;  %v11072_v55 = vld [vmem:[#allocation9 + $0x4e4] ss:$20 sps:$4 sm:$0xff]  }
 0x357   :  { %v4648_v2 = vpop.f32.mrb[30].mxu1  ;;  %v11933_v4 = vadd.f32 %v4644_v56, %v4604_v59  ;;  %7776 = vmatpush1.bf16.msra.mxu1 %v11010_v51  ;;  %v4608_v20 = vpop.f32.mrb[31].mxu0  ;;  %7572 = vmatprep.subr.bf16.mxu0 %v11015_v53  ;;  %v11064_v51 = vld [vmem:[#allocation9 + $0x4b8] ss:$20 sps:$4 sm:$0xff]   ;;  %v11069_v53 = vld [vmem:[#allocation9 + $0x4dc] ss:$20 sps:$4 sm:$0xff]   ;;  %v4907_v56 = vadd.f32 %v4875_v50, %v11890_v13 }
 0x358   :  { %v4649_v10 = vpop.f32.mrb[31].mxu1  ;;  %v11935_v12 = vadd.f32 %v4646_v61, %v4606_v62  ;;  %7777 = vmatprep.subr.bf16.mxu1 %v11018_v58  ;;  %v11067_v58 = vld [vmem:[#allocation9 + $0x4d8] ss:$20 sps:$4 sm:$0xff]   ;;  %v4914_v59 = vmax.f32 %v4904_v40, 0.0  ;;  %v11070_v60 = vld [vmem:[#allocation9 + $0x4e0] ss:$20 sps:$4 sm:$0xff]  }
 0x359   :  { %v11075_v61 = vld [vmem:[#allocation9 + $0x504] ss:$20 sps:$4 sm:$0xff]   ;;  %v4917_v62 = vmax.f32 %v4907_v56, 0.0  ;;  %v11073_v24 = vld [vmem:[#allocation9 + $0x500] ss:$20 sps:$4 sm:$0xff]  }
 0x35a   :  { %7573 = vmatpush1.bf16.msra.mxu0 %v11013_v1  ;;  %v11945_v0 = vpack.c.bf16 %v4914_v59, %v4914_v59  ;;  %v11076_v1 = vld [vmem:[#allocation9 + $0x508] ss:$20 sps:$4 sm:$0xff]   ;;  %v11081_v2 = vld [vmem:[#allocation9 + $0x52c] ss:$20 sps:$4 sm:$0xff]   ;;  %v11123_v40 = vld [vmem:[#allocation9 + $0x644] ss:$20 sps:$4 sm:$0xff]  }
 0x35b   :  { %7778 = vmatpush1.bf16.msra.mxu1 %v11016_v23  ;;  %7574 = vmatprep.subr.bf16.mxu0 %v11021_v7  ;;  %v11947_v13 = vpack.c.bf16 %v4917_v62, %v4917_v62  ;;  %v11084_v20 = vld [vmem:[#allocation9 + $0x534] ss:$20 sps:$4 sm:$0xff]   ;;  %v11082_v7 = vld [vmem:[#allocation9 + $0x530] ss:$20 sps:$4 sm:$0xff]   ;;  %v11112_v9 = vld [vmem:[#allocation9 + $0x5f8] ss:$20 sps:$4 sm:$0xff]  }
 0x35c   :  { %7779 = vmatprep.subr.bf16.mxu1 %v11024_v26  ;;  %v11079_v23 = vld [vmem:[#allocation9 + $0x528] ss:$20 sps:$4 sm:$0xff]   ;;  %v11115_v50 = vld [vmem:[#allocation9 + $0x618] ss:$20 sps:$4 sm:$0xff]   ;;  %v11133_v62 = vld [vmem:[#allocation9 + $0x690] ss:$20 sps:$4 sm:$0xff]  }
 0x35d   :  { %v11087_v10 = vld [vmem:[#allocation9 + $0x554] ss:$20 sps:$4 sm:$0xff]   ;;  %v11090_v26 = vld [vmem:[#allocation9 + $0x55c] ss:$20 sps:$4 sm:$0xff]   ;;  %v11129_v56 = vld [vmem:[#allocation9 + $0x66c] ss:$20 sps:$4 sm:$0xff]  }
 0x35e   :  { %7575 = vmatpush1.bf16.msra.mxu0 %v11019_v38  ;;  %v11085_v38 = vld [vmem:[#allocation9 + $0x550] ss:$20 sps:$4 sm:$0xff]   ;;  %v11127_v59 = vld [vmem:[#allocation9 + $0x668] ss:$20 sps:$4 sm:$0xff]  }
 0x35f   :  { %7780 = vmatpush1.bf16.msra.mxu1 %v11022_v30  ;;  %7576 = vmatprep.subr.bf16.mxu0 %v11027_v14  ;;  %v11088_v30 = vld [vmem:[#allocation9 + $0x558] ss:$20 sps:$4 sm:$0xff]   ;;  %v11093_v14 = vld [vmem:[#allocation9 + $0x57c] ss:$20 sps:$4 sm:$0xff]  }
 0x360   :  { %7781 = vmatprep.subr.bf16.mxu1 %v11030_v6  ;;  %v11096_v6 = vld [vmem:[#allocation9 + $0x584] ss:$20 sps:$4 sm:$0xff]  }
 0x362   :  { %7577 = vmatpush1.bf16.msra.mxu0 %v11025_v15  ;;  %v11091_v15 = vld [vmem:[#allocation9 + $0x578] ss:$20 sps:$4 sm:$0xff]  }
 0x363   :  { %7782 = vmatpush1.bf16.msra.mxu1 %v11028_v16  ;;  %7578 = vmatprep.subr.bf16.mxu0 %v11033_v17  ;;  %v11094_v16 = vld [vmem:[#allocation9 + $0x580] ss:$20 sps:$4 sm:$0xff]   ;;  %v11099_v17 = vld [vmem:[#allocation9 + $0x5a4] ss:$20 sps:$4 sm:$0xff]  }
 0x364   :  { %7783 = vmatprep.subr.bf16.mxu1 %v11036_v18  ;;  %v11102_v18 = vld [vmem:[#allocation9 + $0x5ac] ss:$20 sps:$4 sm:$0xff]  }
 0x366   :  { %7579 = vmatpush1.bf16.msra.mxu0 %v11031_v19  ;;  %v11097_v19 = vld [vmem:[#allocation9 + $0x5a0] ss:$20 sps:$4 sm:$0xff]  }
 0x367   :  { %7784 = vmatpush1.bf16.msra.mxu1 %v11034_v21  ;;  %7580 = vmatprep.subr.bf16.mxu0 %v11039_v22  ;;  %v11100_v21 = vld [vmem:[#allocation9 + $0x5a8] ss:$20 sps:$4 sm:$0xff]   ;;  %v11105_v22 = vld [vmem:[#allocation9 + $0x5cc] ss:$20 sps:$4 sm:$0xff]  }
 0x368   :  { %7785 = vmatprep.subr.bf16.mxu1 %v11042_v25  ;;  %v11108_v25 = vld [vmem:[#allocation9 + $0x5d4] ss:$20 sps:$4 sm:$0xff]  }
 0x36a   :  { %7581 = vmatpush1.bf16.msra.mxu0 %v11037_v27  ;;  %v11103_v27 = vld [vmem:[#allocation9 + $0x5c8] ss:$20 sps:$4 sm:$0xff]  }
 0x36b   :  { %7786 = vmatpush1.bf16.msra.mxu1 %v11040_v37  ;;  %7582 = vmatprep.subr.bf16.mxu0 %v11045_v54  ;;  %v11106_v37 = vld [vmem:[#allocation9 + $0x5d0] ss:$20 sps:$4 sm:$0xff]   ;;  %v11111_v54 = vld [vmem:[#allocation9 + $0x5f4] ss:$20 sps:$4 sm:$0xff]  }
 0x36c   :  { %7787 = vmatprep.subr.bf16.mxu1 %v11048_v49 }
 0x36e   :  { %7583 = vmatpush1.bf16.msra.mxu0 %v11043_v52 }
 0x36f   :  { %7788 = vmatpush1.bf16.msra.mxu1 %v11046_v57  ;;  %7584 = vmatprep.subr.bf16.mxu0 %v11051_v32  ;;  %v11114_v57 = vld [vmem:[#allocation9 + $0x5fc] ss:$20 sps:$4 sm:$0xff]  }
 0x370   :  { %7789 = vmatprep.subr.bf16.mxu1 %v11054_v33 }
 0x372   :  { %7585 = vmatpush1.bf16.msra.mxu0 %v11049_v34 }
 0x373   :  { %7790 = vmatpush1.bf16.msra.mxu1 %v11052_v42  ;;  %7586 = vmatprep.subr.bf16.mxu0 %v11057_v44 }
 0x374   :  { %7791 = vmatprep.subr.bf16.mxu1 %v11060_v11  ;;  %v11109_v11 = vld [vmem:[#allocation9 + $0x5f0] ss:$20 sps:$4 sm:$0xff]  }
 0x376   :  { %7587 = vmatpush1.bf16.msra.mxu0 %v11055_v45 }
 0x377   :  { %7792 = vmatpush1.bf16.msra.mxu1 %v11058_v46  ;;  %7588 = vmatprep.subr.bf16.mxu0 %v11063_v47  ;;  %v11117_v46 = vld [vmem:[#allocation9 + $0x61c] ss:$20 sps:$4 sm:$0xff]  }
 0x378   :  { %7793 = vmatprep.subr.bf16.mxu1 %v11066_v48  ;;  %v11120_v48 = vld [vmem:[#allocation9 + $0x624] ss:$20 sps:$4 sm:$0xff]  }
 0x37a   :  { %7589 = vmatpush1.bf16.msra.mxu0 %v11061_v36  ;;  %v11118_v36 = vld [vmem:[#allocation9 + $0x620] ss:$20 sps:$4 sm:$0xff]  }
 0x37b   :  { %7794 = vmatpush1.bf16.msra.mxu1 %v11064_v51  ;;  %7590 = vmatprep.subr.bf16.mxu0 %v11069_v53  ;;  %v11126_v51 = vld [vmem:[#allocation9 + $0x64c] ss:$20 sps:$4 sm:$0xff]  }
 0x37c   :  { %7795 = vmatprep.subr.bf16.mxu1 %v11072_v55  ;;  %v11121_v53 = vld [vmem:[#allocation9 + $0x640] ss:$20 sps:$4 sm:$0xff]   ;;  %v11124_v55 = vld [vmem:[#allocation9 + $0x648] ss:$20 sps:$4 sm:$0xff]  }
 0x37e   :  { %7591 = vmatpush1.bf16.msra.mxu0 %v11067_v58  ;;  %v11132_v58 = vld [vmem:[#allocation9 + $0x674] ss:$20 sps:$4 sm:$0xff]  }
 0x37f   :  { %7796 = vmatpush1.bf16.msra.mxu1 %v11070_v60  ;;  %7601 = vmatprep.subr.bf16.mxu0 %v11075_v61  ;;  %v11130_v60 = vld [vmem:[#allocation9 + $0x670] ss:$20 sps:$4 sm:$0xff]   ;;  %v11135_v61 = vld [vmem:[#allocation9 + $0x694] ss:$20 sps:$4 sm:$0xff]  }
 0x380   :  { %7806 = vmatprep.subr.bf16.mxu1 %v11078_v39  ;;  %v11138_v39 = vld [vmem:[#allocation9 + $0x69c] ss:$20 sps:$4 sm:$0xff]  }
 0x381   :  { %7593 = vmatmul.mubr.bf16.vlgmr.msra.gmra.mrb[40].mxu0 %v11945_v0 }
 0x382   :  { %7798 = vmatmul.mubr.bf16.vlgmr.msra.gmra.mrb[40].mxu1 %v11945_v0  ;;  %7602 = vmatpush1.bf16.msra.mxu0 %v11073_v24  ;;  %v11136_v24 = vld [vmem:[#allocation9 + $0x698] ss:$20 sps:$4 sm:$0xff]  }
 0x383   :  { %7633 = vmatprep.mubr.bf16.mxu0 %v11947_v13  ;;  %7807 = vmatpush1.bf16.msra.mxu1 %v11076_v1  ;;  %v11141_v1 = vld [vmem:[#allocation9 + $0x6bc] ss:$20 sps:$4 sm:$0xff]  }
 0x384   :  { %7838 = vmatprep.mubr.bf16.mxu1 %v11947_v13  ;;  %7603 = vmatprep.subr.bf16.mxu0 %v11081_v2  ;;  %v11144_v2 = vld [vmem:[#allocation9 + $0x6c4] ss:$20 sps:$4 sm:$0xff]  }
 0x385   :  { %7808 = vmatprep.subr.bf16.mxu1 %v11084_v20  ;;  %v11139_v20 = vld [vmem:[#allocation9 + $0x6b8] ss:$20 sps:$4 sm:$0xff]  }
 0x386   :  { %7604 = vmatpush1.bf16.msra.mxu0 %v11079_v23  ;;  %v11142_v23 = vld [vmem:[#allocation9 + $0x6c0] ss:$20 sps:$4 sm:$0xff]  }
 0x387   :  { %7809 = vmatpush1.bf16.msra.mxu1 %v11082_v7  ;;  %7605 = vmatprep.subr.bf16.mxu0 %v11087_v10  ;;  %v11147_v7 = vld [vmem:[#allocation9 + $0x6e4] ss:$20 sps:$4 sm:$0xff]   ;;  %v11150_v10 = vld [vmem:[#allocation9 + $0x6ec] ss:$20 sps:$4 sm:$0xff]  }
 0x388   :  { %7810 = vmatprep.subr.bf16.mxu1 %v11090_v26  ;;  %v11145_v26 = vld [vmem:[#allocation9 + $0x6e0] ss:$20 sps:$4 sm:$0xff]  }
 0x38a   :  { %7606 = vmatpush1.bf16.msra.mxu0 %v11085_v38  ;;  %v4870_v38 = vsub.s32 4, %v11892_v31 }
 0x38b   :  { %7811 = vmatpush1.bf16.msra.mxu1 %v11088_v30  ;;  %7607 = vmatprep.subr.bf16.mxu0 %v11093_v14  ;;  %v11148_v30 = vld [vmem:[#allocation9 + $0x6e8] ss:$20 sps:$4 sm:$0xff]   ;;  %v11153_v14 = vld [vmem:[#allocation9 + $0x70c] ss:$20 sps:$4 sm:$0xff]  }
 0x38c   :  { %7812 = vmatprep.subr.bf16.mxu1 %v11096_v6  ;;  %v11156_v6 = vld [vmem:[#allocation9 + $0x714] ss:$20 sps:$4 sm:$0xff]  }
 0x38e   :  { %7608 = vmatpush1.bf16.msra.mxu0 %v11091_v15  ;;  %v4882_v15 = vsub.s32 7, %v11892_v31 }
 0x38f   :  { %7813 = vmatpush1.bf16.msra.mxu1 %v11094_v16  ;;  %7609 = vmatprep.subr.bf16.mxu0 %v11099_v17  ;;  %v11151_v16 = vld [vmem:[#allocation9 + $0x708] ss:$20 sps:$4 sm:$0xff]  }
 0x390   :  { %7814 = vmatprep.subr.bf16.mxu1 %v11102_v18  ;;  %v11959_v17 = vld [vmem:[#allocation8] sm:$0xff] }
 0x391   :  { %v4871_v18 = vrot.slane %v11959_v17, %v4870_v38 }
 0x392   :  { %7610 = vmatpush1.bf16.msra.mxu0 %v11097_v19  ;;  %v11154_v19 = vld [vmem:[#allocation9 + $0x710] ss:$20 sps:$4 sm:$0xff]  }
 0x393   :  { %7815 = vmatpush1.bf16.msra.mxu1 %v11100_v21  ;;  %7611 = vmatprep.subr.bf16.mxu0 %v11105_v22  ;;  %v11159_v21 = vld [vmem:[#allocation9 + $0x734] ss:$20 sps:$4 sm:$0xff]   ;;  %v11162_v22 = vld [vmem:[#allocation9 + $0x73c] ss:$20 sps:$4 sm:$0xff]  }
 0x394   :  { %v4685_v49 = vpop.f32.mrb[32].mxu0  ;;  %7816 = vmatprep.subr.bf16.mxu1 %v11108_v25  ;;  %v4883_v25 = vrot.slane %v11959_v17, %v4882_v15 }
 0x395   :  { %v4726_v52 = vpop.f32.mrb[32].mxu1  ;;  %v4687_v33 = vpop.f32.mrb[33].mxu0 }
 0x396   :  { %v11953_v32 = vadd.f32 %v4726_v52, %v4685_v49  ;;  %v4728_v34 = vpop.f32.mrb[33].mxu1  ;;  %v4689_v44 = vpop.f32.mrb[34].mxu0  ;;  %7612 = vmatpush1.bf16.msra.mxu0 %v11103_v27  ;;  %v11157_v27 = vld [vmem:[#allocation9 + $0x730] ss:$20 sps:$4 sm:$0xff]  }
 0x397   :  { %v11955_v42 = vadd.f32 %v4728_v34, %v4687_v33  ;;  %v4730_v8 = vpop.f32.mrb[34].mxu1  ;;  %7817 = vmatpush1.bf16.msra.mxu1 %v11106_v37  ;;  %v4690_v45 = vpop.f32.mrb[35].mxu0  ;;  %7613 = vmatprep.subr.bf16.mxu0 %v11111_v54  ;;  %v4906_v37 = vadd.f32 %v4871_v18, %v11888_v5  ;;  %v11160_v54 = vld [vmem:[#allocation9 + $0x738] ss:$20 sps:$4 sm:$0xff]   ;;  %v11165_v49 = vld [vmem:[#allocation9 + $0x75c] ss:$20 sps:$4 sm:$0xff]  }
 0x398   :  { %v4731_v47 = vpop.f32.mrb[35].mxu1  ;;  %7818 = vmatprep.subr.bf16.mxu1 %v11114_v57  ;;  %v11168_v52 = vld [vmem:[#allocation9 + $0x764] ss:$20 sps:$4 sm:$0xff]   ;;  %v4909_v57 = vadd.f32 %v4883_v25, %v11935_v12  ;;  %v11166_v44 = vld [vmem:[#allocation9 + $0x760] ss:$20 sps:$4 sm:$0xff]  }
 0x399   :  { %v11163_v33 = vld [vmem:[#allocation9 + $0x758] ss:$20 sps:$4 sm:$0xff]   ;;  %v4916_v34 = vmax.f32 %v4906_v37, 0.0  ;;  %v11169_v5 = vld [vmem:[#allocation9 + $0x780] ss:$20 sps:$4 sm:$0xff]  }
 0x39a   :  { %7614 = vmatpush1.bf16.msra.mxu0 %v11109_v11  ;;  %v11171_v11 = vld [vmem:[#allocation9 + $0x784] ss:$20 sps:$4 sm:$0xff]   ;;  %v11174_v8 = vld [vmem:[#allocation9 + $0x78c] ss:$20 sps:$4 sm:$0xff]   ;;  %v4919_v45 = vmax.f32 %v4909_v57, 0.0 }
 0x39b   :  { %7819 = vmatpush1.bf16.msra.mxu1 %v11112_v9  ;;  %7615 = vmatprep.subr.bf16.mxu0 %v11117_v46  ;;  %v11967_v9 = vpack.c.bf16 %v4916_v34, %v4916_v34  ;;  %v11172_v46 = vld [vmem:[#allocation9 + $0x788] ss:$20 sps:$4 sm:$0xff]   ;;  %v11177_v47 = vld [vmem:[#allocation9 + $0x7ac] ss:$20 sps:$4 sm:$0xff]   ;;  %v11219_v57 = vld [vmem:[#allocation9 + $0x8c4] ss:$20 sps:$4 sm:$0xff]  }
 0x39c   :  { %7820 = vmatprep.subr.bf16.mxu1 %v11120_v48  ;;  %v11969_v12 = vpack.c.bf16 %v4919_v45, %v4919_v45  ;;  %v11180_v48 = vld [vmem:[#allocation9 + $0x7b4] ss:$20 sps:$4 sm:$0xff]   ;;  %v11213_v37 = vld [vmem:[#allocation9 + $0x89c] ss:$20 sps:$4 sm:$0xff]  }
 0x39d   :  { %v11217_v34 = vld [vmem:[#allocation9 + $0x8c0] ss:$20 sps:$4 sm:$0xff]   ;;  %v11223_v45 = vld [vmem:[#allocation9 + $0x8e8] ss:$20 sps:$4 sm:$0xff]  }
 0x39e   :  { %7616 = vmatpush1.bf16.msra.mxu0 %v11115_v50  ;;  %v11175_v50 = vld [vmem:[#allocation9 + $0x7a8] ss:$20 sps:$4 sm:$0xff]  }
 0x39f   :  { %7821 = vmatpush1.bf16.msra.mxu1 %v11118_v36  ;;  %7617 = vmatprep.subr.bf16.mxu0 %v11123_v40  ;;  %v11178_v36 = vld [vmem:[#allocation9 + $0x7b0] ss:$20 sps:$4 sm:$0xff]   ;;  %v11183_v40 = vld [vmem:[#allocation9 + $0x7d4] ss:$20 sps:$4 sm:$0xff]  }
 0x3a0   :  { %7822 = vmatprep.subr.bf16.mxu1 %v11126_v51  ;;  %v11186_v51 = vld [vmem:[#allocation9 + $0x7dc] ss:$20 sps:$4 sm:$0xff]  }
 0x3a2   :  { %7618 = vmatpush1.bf16.msra.mxu0 %v11121_v53  ;;  %v11181_v53 = vld [vmem:[#allocation9 + $0x7d0] ss:$20 sps:$4 sm:$0xff]  }
 0x3a3   :  { %7823 = vmatpush1.bf16.msra.mxu1 %v11124_v55  ;;  %7619 = vmatprep.subr.bf16.mxu0 %v11129_v56  ;;  %v11184_v55 = vld [vmem:[#allocation9 + $0x7d8] ss:$20 sps:$4 sm:$0xff]   ;;  %v11189_v56 = vld [vmem:[#allocation9 + $0x7fc] ss:$20 sps:$4 sm:$0xff]  }
 0x3a4   :  { %7824 = vmatprep.subr.bf16.mxu1 %v11132_v58  ;;  %v11192_v58 = vld [vmem:[#allocation9 + $0x804] ss:$20 sps:$4 sm:$0xff]  }
 0x3a6   :  { %7620 = vmatpush1.bf16.msra.mxu0 %v11127_v59  ;;  %v11187_v59 = vld [vmem:[#allocation9 + $0x7f8] ss:$20 sps:$4 sm:$0xff]  }
 0x3a7   :  { %7825 = vmatpush1.bf16.msra.mxu1 %v11130_v60  ;;  %7621 = vmatprep.subr.bf16.mxu0 %v11135_v61  ;;  %v11190_v60 = vld [vmem:[#allocation9 + $0x800] ss:$20 sps:$4 sm:$0xff]   ;;  %v11195_v61 = vld [vmem:[#allocation9 + $0x824] ss:$20 sps:$4 sm:$0xff]  }
 0x3a8   :  { %7826 = vmatprep.subr.bf16.mxu1 %v11138_v39  ;;  %v11198_v39 = vld [vmem:[#allocation9 + $0x82c] ss:$20 sps:$4 sm:$0xff]  }
 0x3aa   :  { %7622 = vmatpush1.bf16.msra.mxu0 %v11133_v62  ;;  %v11193_v62 = vld [vmem:[#allocation9 + $0x820] ss:$20 sps:$4 sm:$0xff]  }
 0x3ab   :  { %7827 = vmatpush1.bf16.msra.mxu1 %v11136_v24  ;;  %7623 = vmatprep.subr.bf16.mxu0 %v11141_v1  ;;  %v11196_v24 = vld [vmem:[#allocation9 + $0x828] ss:$20 sps:$4 sm:$0xff]   ;;  %v11201_v1 = vld [vmem:[#allocation9 + $0x84c] ss:$20 sps:$4 sm:$0xff]  }
 0x3ac   :  { %7828 = vmatprep.subr.bf16.mxu1 %v11144_v2  ;;  %v11204_v2 = vld [vmem:[#allocation9 + $0x854] ss:$20 sps:$4 sm:$0xff]  }
 0x3ae   :  { %7624 = vmatpush1.bf16.msra.mxu0 %v11139_v20  ;;  %v11199_v20 = vld [vmem:[#allocation9 + $0x848] ss:$20 sps:$4 sm:$0xff]  }
 0x3af   :  { %7829 = vmatpush1.bf16.msra.mxu1 %v11142_v23  ;;  %7625 = vmatprep.subr.bf16.mxu0 %v11147_v7  ;;  %v11202_v23 = vld [vmem:[#allocation9 + $0x850] ss:$20 sps:$4 sm:$0xff]   ;;  %v11207_v7 = vld [vmem:[#allocation9 + $0x874] ss:$20 sps:$4 sm:$0xff]  }
 0x3b0   :  { %7830 = vmatprep.subr.bf16.mxu1 %v11150_v10 }
 0x3b2   :  { %7626 = vmatpush1.bf16.msra.mxu0 %v11145_v26 }
 0x3b3   :  { %7831 = vmatpush1.bf16.msra.mxu1 %v11148_v30  ;;  %7627 = vmatprep.subr.bf16.mxu0 %v11153_v14  ;;  %v11210_v30 = vld [vmem:[#allocation9 + $0x87c] ss:$20 sps:$4 sm:$0xff]  }
 0x3b4   :  { %7832 = vmatprep.subr.bf16.mxu1 %v11156_v6 }
 0x3b6   :  { %7628 = vmatpush1.bf16.msra.mxu0 %v11151_v16 }
 0x3b7   :  { %7833 = vmatpush1.bf16.msra.mxu1 %v11154_v19  ;;  %7629 = vmatprep.subr.bf16.mxu0 %v11159_v21  ;;  %v11205_v19 = vld [vmem:[#allocation9 + $0x870] ss:$20 sps:$4 sm:$0xff]  }
 0x3b8   :  { %7834 = vmatprep.subr.bf16.mxu1 %v11162_v22 }
 0x3ba   :  { %7630 = vmatpush1.bf16.msra.mxu0 %v11157_v27  ;;  %v11208_v27 = vld [vmem:[#allocation9 + $0x878] ss:$20 sps:$4 sm:$0xff]  }
 0x3bb   :  { %7835 = vmatpush1.bf16.msra.mxu1 %v11160_v54  ;;  %7631 = vmatprep.subr.bf16.mxu0 %v11165_v49 }
 0x3bc   :  { %7836 = vmatprep.subr.bf16.mxu1 %v11168_v52  ;;  %v11211_v52 = vld [vmem:[#allocation9 + $0x898] ss:$20 sps:$4 sm:$0xff]  }
 0x3be   :  { %7632 = vmatpush1.bf16.msra.mxu0 %v11163_v33  ;;  %v11222_v33 = vld [vmem:[#allocation9 + $0x8cc] ss:$20 sps:$4 sm:$0xff]  }
 0x3bf   :  { %7837 = vmatpush1.bf16.msra.mxu1 %v11166_v44  ;;  %7642 = vmatprep.subr.bf16.mxu0 %v11171_v11  ;;  %v11220_v44 = vld [vmem:[#allocation9 + $0x8c8] ss:$20 sps:$4 sm:$0xff]   ;;  %v11225_v11 = vld [vmem:[#allocation9 + $0x8ec] ss:$20 sps:$4 sm:$0xff]  }
 0x3c0   :  { %7847 = vmatprep.subr.bf16.mxu1 %v11174_v8  ;;  %v11228_v8 = vld [vmem:[#allocation9 + $0x8f4] ss:$20 sps:$4 sm:$0xff]  }
 0x3c1   :  { %7634 = vmatmul.mubr.bf16.vlgmr.msra.gmra.mrb[40].mxu0 %v11967_v9 }
 0x3c2   :  { %7839 = vmatmul.mubr.bf16.vlgmr.msra.gmra.mrb[40].mxu1 %v11967_v9  ;;  %7643 = vmatpush1.bf16.msra.mxu0 %v11169_v5  ;;  %v11226_v5 = vld [vmem:[#allocation9 + $0x8f0] ss:$20 sps:$4 sm:$0xff]  }
 0x3c3   :  { %7674 = vmatprep.mubr.bf16.mxu0 %v11969_v12  ;;  %7848 = vmatpush1.bf16.msra.mxu1 %v11172_v46  ;;  %v11231_v46 = vld [vmem:[#allocation9 + $0x914] ss:$20 sps:$4 sm:$0xff]  }
 0x3c4   :  { %7879 = vmatprep.mubr.bf16.mxu1 %v11969_v12  ;;  %7644 = vmatprep.subr.bf16.mxu0 %v11177_v47  ;;  %v11234_v47 = vld [vmem:[#allocation9 + $0x91c] ss:$20 sps:$4 sm:$0xff]  }
 0x3c5   :  { %7849 = vmatprep.subr.bf16.mxu1 %v11180_v48  ;;  %v11229_v48 = vld [vmem:[#allocation9 + $0x910] ss:$20 sps:$4 sm:$0xff]  }
 0x3c6   :  { %7645 = vmatpush1.bf16.msra.mxu0 %v11175_v50  ;;  %v11232_v50 = vld [vmem:[#allocation9 + $0x918] ss:$20 sps:$4 sm:$0xff]  }
 0x3c7   :  { %7850 = vmatpush1.bf16.msra.mxu1 %v11178_v36  ;;  %7646 = vmatprep.subr.bf16.mxu0 %v11183_v40  ;;  %v11237_v36 = vld [vmem:[#allocation9 + $0x93c] ss:$20 sps:$4 sm:$0xff]   ;;  %v11240_v40 = vld [vmem:[#allocation9 + $0x944] ss:$20 sps:$4 sm:$0xff]  }
 0x3c8   :  { %7851 = vmatprep.subr.bf16.mxu1 %v11186_v51  ;;  %v11235_v51 = vld [vmem:[#allocation9 + $0x938] ss:$20 sps:$4 sm:$0xff]  }
 0x3ca   :  { %7647 = vmatpush1.bf16.msra.mxu0 %v11181_v53  ;;  %v11238_v53 = vld [vmem:[#allocation9 + $0x940] ss:$20 sps:$4 sm:$0xff]  }
 0x3cb   :  { %7852 = vmatpush1.bf16.msra.mxu1 %v11184_v55  ;;  %7648 = vmatprep.subr.bf16.mxu0 %v11189_v56  ;;  %v11243_v55 = vld [vmem:[#allocation9 + $0x964] ss:$20 sps:$4 sm:$0xff]   ;;  %v11246_v56 = vld [vmem:[#allocation9 + $0x96c] ss:$20 sps:$4 sm:$0xff]  }
 0x3cc   :  { %7853 = vmatprep.subr.bf16.mxu1 %v11192_v58  ;;  %v11241_v58 = vld [vmem:[#allocation9 + $0x960] ss:$20 sps:$4 sm:$0xff]  }
 0x3ce   :  { %7649 = vmatpush1.bf16.msra.mxu0 %v11187_v59  ;;  %v4878_v59 = vsub.s32 6, %v11892_v31 }
 0x3cf   :  { %7854 = vmatpush1.bf16.msra.mxu1 %v11190_v60  ;;  %7650 = vmatprep.subr.bf16.mxu0 %v11195_v61  ;;  %v11244_v60 = vld [vmem:[#allocation9 + $0x968] ss:$20 sps:$4 sm:$0xff]   ;;  %v11249_v61 = vld [vmem:[#allocation9 + $0x98c] ss:$20 sps:$4 sm:$0xff]  }
 0x3d0   :  { %7855 = vmatprep.subr.bf16.mxu1 %v11198_v39  ;;  %v11252_v39 = vld [vmem:[#allocation9 + $0x994] ss:$20 sps:$4 sm:$0xff]  }
 0x3d2   :  { %7651 = vmatpush1.bf16.msra.mxu0 %v11193_v62  ;;  %v11982_v62 = vld [vmem:[#allocation8 + $0x8] sm:$0x3] }
 0x3d3   :  { %7856 = vmatpush1.bf16.msra.mxu1 %v11196_v24  ;;  %7652 = vmatprep.subr.bf16.mxu0 %v11201_v1  ;;  %v11247_v24 = vld [vmem:[#allocation9 + $0x988] ss:$20 sps:$4 sm:$0xff]   ;;  %v4879_v1 = vrot.slane %v11959_v17, %v4878_v59  ;;  %v11304_v59 = vld [vmem:[#allocation9 + $0xaf8] ss:$20 sps:$4 sm:$0xff]  }
 0x3d4   :  { %v4767_v10 = vpop.f32.mrb[36].mxu0  ;;  %7857 = vmatprep.subr.bf16.mxu1 %v11204_v2  ;;  %v11250_v2 = vld [vmem:[#allocation9 + $0x990] ss:$20 sps:$4 sm:$0xff]  }
 0x3d5   :  { %v4808_v26 = vpop.f32.mrb[36].mxu1  ;;  %v4768_v14 = vadd.f32 %v4767_v10, %v11953_v32  ;;  %v4769_v6 = vpop.f32.mrb[37].mxu0  ;;  %v11216_v32 = vld [vmem:[#allocation9 + $0x8a4] ss:$20 sps:$4 sm:$0xff]  }
 0x3d6   :  { %v4810_v15 = vpop.f32.mrb[37].mxu1  ;;  %v4770_v16 = vadd.f32 %v4769_v6, %v11955_v42  ;;  %v4771_v18 = vpop.f32.mrb[38].mxu0  ;;  %7653 = vmatpush1.bf16.msra.mxu0 %v11199_v20  ;;  %v11214_v42 = vld [vmem:[#allocation9 + $0x8a0] ss:$20 sps:$4 sm:$0xff]   ;;  %v11253_v10 = vld [vmem:[#allocation9 + $0x9b0] ss:$20 sps:$4 sm:$0xff]  }
 0x3d7   :  { %v4812_v21 = vpop.f32.mrb[38].mxu1  ;;  %v11977_v22 = vadd.f32 %v4808_v26, %v4768_v14  ;;  %7858 = vmatpush1.bf16.msra.mxu1 %v11202_v23  ;;  %v4772_v25 = vpop.f32.mrb[39].mxu0  ;;  %7654 = vmatprep.subr.bf16.mxu0 %v11207_v7  ;;  %v11255_v20 = vld [vmem:[#allocation9 + $0x9b4] ss:$20 sps:$4 sm:$0xff]   ;;  %v11258_v23 = vld [vmem:[#allocation9 + $0x9bc] ss:$20 sps:$4 sm:$0xff]   ;;  %v4891_v7 = vrot.slane %v11982_v62, %v11897_v41  ;;  %v4908_v26 = vadd.f32 %v4879_v1, %v11933_v4 }
 0x3d8   :  { %v4813_v54 = vpop.f32.mrb[39].mxu1  ;;  %v11979_v49 = vadd.f32 %v4810_v15, %v4770_v16  ;;  %7859 = vmatprep.subr.bf16.mxu1 %v11210_v30  ;;  %v11256_v30 = vld [vmem:[#allocation9 + $0x9b8] ss:$20 sps:$4 sm:$0xff]   ;;  %v11261_v14 = vld [vmem:[#allocation9 + $0x9dc] ss:$20 sps:$4 sm:$0xff]  }
 0x3d9   :  { %v11264_v6 = vld [vmem:[#allocation9 + $0x9e4] ss:$20 sps:$4 sm:$0xff]   ;;  %v4918_v16 = vmax.f32 %v4908_v26, 0.0  ;;  %v11262_v18 = vld [vmem:[#allocation9 + $0x9e0] ss:$20 sps:$4 sm:$0xff]  }
 0x3da   :  { %7655 = vmatpush1.bf16.msra.mxu0 %v11205_v19  ;;  %v4911_v17 = vadd.f32 %v4891_v7, %v11979_v49  ;;  %v11259_v15 = vld [vmem:[#allocation9 + $0x9d8] ss:$20 sps:$4 sm:$0xff]   ;;  %v11265_v4 = vld [vmem:[#allocation9 + $0xa00] ss:$20 sps:$4 sm:$0xff]   ;;  %v11319_v26 = vld [vmem:[#allocation9 + $0xb68] ss:$20 sps:$4 sm:$0xff]  }
 0x3db   :  { %7860 = vmatpush1.bf16.msra.mxu1 %v11208_v27  ;;  %7656 = vmatprep.subr.bf16.mxu0 %v11213_v37  ;;  %v11267_v19 = vld [vmem:[#allocation9 + $0xa04] ss:$20 sps:$4 sm:$0xff]   ;;  %v11270_v21 = vld [vmem:[#allocation9 + $0xa0c] ss:$20 sps:$4 sm:$0xff]   ;;  %v11989_v27 = vpack.c.bf16 %v4918_v16, %v4918_v16  ;;  %v11268_v37 = vld [vmem:[#allocation9 + $0xa08] ss:$20 sps:$4 sm:$0xff]  }
 0x3dc   :  { %7861 = vmatprep.subr.bf16.mxu1 %v11216_v32  ;;  %v4921_v25 = vmax.f32 %v4911_v17, 0.0  ;;  %v11273_v54 = vld [vmem:[#allocation9 + $0xa2c] ss:$20 sps:$4 sm:$0xff]   ;;  %v11276_v32 = vld [vmem:[#allocation9 + $0xa34] ss:$20 sps:$4 sm:$0xff]  }
 0x3dd   :  { %v11315_v1 = vld [vmem:[#allocation9 + $0xb44] ss:$20 sps:$4 sm:$0xff]   ;;  %v11321_v7 = vld [vmem:[#allocation9 + $0xb6c] ss:$20 sps:$4 sm:$0xff]   ;;  %v11333_v16 = vld [vmem:[#allocation9 + $0xbbc] ss:$20 sps:$4 sm:$0xff]  }
 0x3de   :  { %7657 = vmatpush1.bf16.msra.mxu0 %v11211_v52  ;;  %v11991_v49 = vpack.c.bf16 %v4921_v25, %v4921_v25  ;;  %v11271_v52 = vld [vmem:[#allocation9 + $0xa28] ss:$20 sps:$4 sm:$0xff]   ;;  %v11325_v17 = vld [vmem:[#allocation9 + $0xb90] ss:$20 sps:$4 sm:$0xff]  }
 0x3df   :  { %7862 = vmatpush1.bf16.msra.mxu1 %v11214_v42  ;;  %7658 = vmatprep.subr.bf16.mxu0 %v11219_v57  ;;  %v11274_v42 = vld [vmem:[#allocation9 + $0xa30] ss:$20 sps:$4 sm:$0xff]   ;;  %v11279_v57 = vld [vmem:[#allocation9 + $0xa54] ss:$20 sps:$4 sm:$0xff]  }
 0x3e0   :  { %7863 = vmatprep.subr.bf16.mxu1 %v11222_v33  ;;  %v11282_v33 = vld [vmem:[#allocation9 + $0xa5c] ss:$20 sps:$4 sm:$0xff]   ;;  %v11339_v25 = vld [vmem:[#allocation9 + $0xbe4] ss:$20 sps:$4 sm:$0xff]  }
 0x3e2   :  { %7659 = vmatpush1.bf16.msra.mxu0 %v11217_v34  ;;  %v11277_v34 = vld [vmem:[#allocation9 + $0xa50] ss:$20 sps:$4 sm:$0xff]  }
 0x3e3   :  { %7864 = vmatpush1.bf16.msra.mxu1 %v11220_v44  ;;  %7660 = vmatprep.subr.bf16.mxu0 %v11225_v11  ;;  %v11280_v44 = vld [vmem:[#allocation9 + $0xa58] ss:$20 sps:$4 sm:$0xff]   ;;  %v11285_v11 = vld [vmem:[#allocation9 + $0xa7c] ss:$20 sps:$4 sm:$0xff]  }
 0x3e4   :  { %7865 = vmatprep.subr.bf16.mxu1 %v11228_v8  ;;  %v11288_v8 = vld [vmem:[#allocation9 + $0xa84] ss:$20 sps:$4 sm:$0xff]  }
 0x3e6   :  { %7661 = vmatpush1.bf16.msra.mxu0 %v11223_v45  ;;  %v11283_v45 = vld [vmem:[#allocation9 + $0xa78] ss:$20 sps:$4 sm:$0xff]  }
 0x3e7   :  { %7866 = vmatpush1.bf16.msra.mxu1 %v11226_v5  ;;  %7662 = vmatprep.subr.bf16.mxu0 %v11231_v46  ;;  %v11286_v5 = vld [vmem:[#allocation9 + $0xa80] ss:$20 sps:$4 sm:$0xff]   ;;  %v11291_v46 = vld [vmem:[#allocation9 + $0xaa4] ss:$20 sps:$4 sm:$0xff]  }
 0x3e8   :  { %7867 = vmatprep.subr.bf16.mxu1 %v11234_v47  ;;  %v11294_v47 = vld [vmem:[#allocation9 + $0xaac] ss:$20 sps:$4 sm:$0xff]  }
 0x3ea   :  { %7663 = vmatpush1.bf16.msra.mxu0 %v11229_v48  ;;  %v11289_v48 = vld [vmem:[#allocation9 + $0xaa0] ss:$20 sps:$4 sm:$0xff]  }
 0x3eb   :  { %7868 = vmatpush1.bf16.msra.mxu1 %v11232_v50  ;;  %7664 = vmatprep.subr.bf16.mxu0 %v11237_v36  ;;  %v11292_v50 = vld [vmem:[#allocation9 + $0xaa8] ss:$20 sps:$4 sm:$0xff]   ;;  %v11297_v36 = vld [vmem:[#allocation9 + $0xacc] ss:$20 sps:$4 sm:$0xff]  }
 0x3ec   :  { %7869 = vmatprep.subr.bf16.mxu1 %v11240_v40  ;;  %v11300_v40 = vld [vmem:[#allocation9 + $0xad4] ss:$20 sps:$4 sm:$0xff]  }
 0x3ee   :  { %7665 = vmatpush1.bf16.msra.mxu0 %v11235_v51  ;;  %v11295_v51 = vld [vmem:[#allocation9 + $0xac8] ss:$20 sps:$4 sm:$0xff]  }
 0x3ef   :  { %7870 = vmatpush1.bf16.msra.mxu1 %v11238_v53  ;;  %7666 = vmatprep.subr.bf16.mxu0 %v11243_v55  ;;  %v11298_v53 = vld [vmem:[#allocation9 + $0xad0] ss:$20 sps:$4 sm:$0xff]   ;;  %v11303_v55 = vld [vmem:[#allocation9 + $0xaf4] ss:$20 sps:$4 sm:$0xff]  }
 0x3f0   :  { %7871 = vmatprep.subr.bf16.mxu1 %v11246_v56  ;;  %v11306_v56 = vld [vmem:[#allocation9 + $0xafc] ss:$20 sps:$4 sm:$0xff]  }
 0x3f2   :  { %7667 = vmatpush1.bf16.msra.mxu0 %v11241_v58  ;;  %v11301_v58 = vld [vmem:[#allocation9 + $0xaf0] ss:$20 sps:$4 sm:$0xff]  }
 0x3f3   :  { %7872 = vmatpush1.bf16.msra.mxu1 %v11244_v60  ;;  %7668 = vmatprep.subr.bf16.mxu0 %v11249_v61  ;;  %v11309_v60 = vld [vmem:[#allocation9 + $0xb1c] ss:$20 sps:$4 sm:$0xff]   ;;  %v11312_v61 = vld [vmem:[#allocation9 + $0xb24] ss:$20 sps:$4 sm:$0xff]  }
 0x3f4   :  { %7873 = vmatprep.subr.bf16.mxu1 %v11252_v39  ;;  %v11307_v39 = vld [vmem:[#allocation9 + $0xb18] ss:$20 sps:$4 sm:$0xff]  }
 0x3f6   :  { %7669 = vmatpush1.bf16.msra.mxu0 %v11247_v24  ;;  %v11310_v24 = vld [vmem:[#allocation9 + $0xb20] ss:$20 sps:$4 sm:$0xff]  }
 0x3f7   :  { %7874 = vmatpush1.bf16.msra.mxu1 %v11250_v2  ;;  %7670 = vmatprep.subr.bf16.mxu0 %v11255_v20  ;;  %v11318_v2 = vld [vmem:[#allocation9 + $0xb4c] ss:$20 sps:$4 sm:$0xff]  }
 0x3f8   :  { %7875 = vmatprep.subr.bf16.mxu1 %v11258_v23  ;;  %v11313_v20 = vld [vmem:[#allocation9 + $0xb40] ss:$20 sps:$4 sm:$0xff]   ;;  %v11316_v23 = vld [vmem:[#allocation9 + $0xb48] ss:$20 sps:$4 sm:$0xff]  }
 0x3fa   :  { %7671 = vmatpush1.bf16.msra.mxu0 %v11253_v10  ;;  %v11324_v10 = vld [vmem:[#allocation9 + $0xb74] ss:$20 sps:$4 sm:$0xff]  }
 0x3fb   :  { %7876 = vmatpush1.bf16.msra.mxu1 %v11256_v30  ;;  %7672 = vmatprep.subr.bf16.mxu0 %v11261_v14  ;;  %v11322_v30 = vld [vmem:[#allocation9 + $0xb70] ss:$20 sps:$4 sm:$0xff]   ;;  %v11327_v14 = vld [vmem:[#allocation9 + $0xb94] ss:$20 sps:$4 sm:$0xff]  }
 0x3fc   :  { %7877 = vmatprep.subr.bf16.mxu1 %v11264_v6  ;;  %v11330_v6 = vld [vmem:[#allocation9 + $0xb9c] ss:$20 sps:$4 sm:$0xff]  }
 0x3fe   :  { %7673 = vmatpush1.bf16.msra.mxu0 %v11259_v15  ;;  %v11328_v15 = vld [vmem:[#allocation9 + $0xb98] ss:$20 sps:$4 sm:$0xff]  }
 0x3ff   :  { %7878 = vmatpush1.bf16.msra.mxu1 %v11262_v18  ;;  %7683 = vmatprep.subr.bf16.mxu0 %v11267_v19  ;;  %v11336_v18 = vld [vmem:[#allocation9 + $0xbc4] ss:$20 sps:$4 sm:$0xff]  }
 0x400   :  { %7888 = vmatprep.subr.bf16.mxu1 %v11270_v21  ;;  %v11331_v19 = vld [vmem:[#allocation9 + $0xbb8] ss:$20 sps:$4 sm:$0xff]   ;;  %v11334_v21 = vld [vmem:[#allocation9 + $0xbc0] ss:$20 sps:$4 sm:$0xff]  }
 0x401   :  { %7675 = vmatmul.mubr.bf16.vlgmr.msra.gmra.mrb[40].mxu0 %v11989_v27 }
 0x402   :  { %7880 = vmatmul.mubr.bf16.vlgmr.msra.gmra.mrb[40].mxu1 %v11989_v27  ;;  %7684 = vmatpush1.bf16.msra.mxu0 %v11265_v4  ;;  %v11342_v4 = vld [vmem:[#allocation9 + $0xbec] ss:$20 sps:$4 sm:$0xff]  }
 0x403   :  { %7715 = vmatprep.mubr.bf16.mxu0 %v11991_v49  ;;  %7889 = vmatpush1.bf16.msra.mxu1 %v11268_v37  ;;  %v11337_v37 = vld [vmem:[#allocation9 + $0xbe0] ss:$20 sps:$4 sm:$0xff]  }
 0x404   :  { %7920 = vmatprep.mubr.bf16.mxu1 %v11991_v49  ;;  %7685 = vmatprep.subr.bf16.mxu0 %v11273_v54  ;;  %v11340_v54 = vld [vmem:[#allocation9 + $0xbe8] ss:$20 sps:$4 sm:$0xff]  }
 0x405   :  { %7890 = vmatprep.subr.bf16.mxu1 %v11276_v32  ;;  %v11345_v32 = vld [vmem:[#allocation9 + $0xc0c] ss:$20 sps:$4 sm:$0xff]  }
 0x406   :  { %7686 = vmatpush1.bf16.msra.mxu0 %v11271_v52  ;;  %v11348_v52 = vld [vmem:[#allocation9 + $0xc14] ss:$20 sps:$4 sm:$0xff]  }
 0x407   :  { %7891 = vmatpush1.bf16.msra.mxu1 %v11274_v42  ;;  %7687 = vmatprep.subr.bf16.mxu0 %v11279_v57  ;;  %v11343_v42 = vld [vmem:[#allocation9 + $0xc08] ss:$20 sps:$4 sm:$0xff]   ;;  %v4887_v57 = vrot.slane %v11982_v62, %v11913_v63  ;;  %v11358_v62 = vld [vmem:[#allocation9 + $0xc60] ss:$20 sps:$4 sm:$0xff]  }
 0x408   :  { %7892 = vmatprep.subr.bf16.mxu1 %v11282_v33  ;;  %v11346_v33 = vld [vmem:[#allocation9 + $0xc10] ss:$20 sps:$4 sm:$0xff]  }
 0x40a   :  { %7688 = vmatpush1.bf16.msra.mxu0 %v11277_v34  ;;  %v11351_v34 = vld [vmem:[#allocation9 + $0xc34] ss:$20 sps:$4 sm:$0xff]  }
 0x40b   :  { %7893 = vmatpush1.bf16.msra.mxu1 %v11280_v44  ;;  %7689 = vmatprep.subr.bf16.mxu0 %v11285_v11  ;;  %v11354_v44 = vld [vmem:[#allocation9 + $0xc3c] ss:$20 sps:$4 sm:$0xff]  }
 0x40c   :  { %7894 = vmatprep.subr.bf16.mxu1 %v11288_v8  ;;  %v11349_v11 = vld [vmem:[#allocation9 + $0xc30] ss:$20 sps:$4 sm:$0xff]   ;;  %v4910_v8 = vadd.f32 %v4887_v57, %v11977_v22  ;;  %v11399_v57 = vld [vmem:[#allocation9 + $0x538] ss:$20 sps:$4 sm:$0xff]  }
 0x40d   :  { %v11364_v22 = vld [vmem:[#allocation9 + $0x290] ss:$20 sps:$4 sm:$0xff]  }
 0x40e   :  { %7690 = vmatpush1.bf16.msra.mxu0 %v11283_v45  ;;  %v11352_v45 = vld [vmem:[#allocation9 + $0xc38] ss:$20 sps:$4 sm:$0xff]  }
 0x40f   :  { %7895 = vmatpush1.bf16.msra.mxu1 %v11286_v5  ;;  %7691 = vmatprep.subr.bf16.mxu0 %v11291_v46  ;;  %v11357_v5 = vld [vmem:[#allocation9 + $0xc5c] ss:$20 sps:$4 sm:$0xff]   ;;  %v11360_v46 = vld [vmem:[#allocation9 + $0xc64] ss:$20 sps:$4 sm:$0xff]  }
 0x410   :  { %7896 = vmatprep.subr.bf16.mxu1 %v11294_v47  ;;  %v11355_v47 = vld [vmem:[#allocation9 + $0xc58] ss:$20 sps:$4 sm:$0xff]  }
 0x412   :  { %7692 = vmatpush1.bf16.msra.mxu0 %v11289_v48  ;;  %v4920_v48 = vmax.f32 %v4910_v8, 0.0  ;;  %v11405_v8 = vld [vmem:[#allocation9 + $0x6c8] ss:$20 sps:$4 sm:$0xff]  }
 0x413   :  { %7897 = vmatpush1.bf16.msra.mxu1 %v11292_v50  ;;  %7693 = vmatprep.subr.bf16.mxu0 %v11297_v36  ;;  %v11361_v50 = vld [vmem:[#allocation9 + $0x150] ss:$20 sps:$4 sm:$0xff]  }
 0x414   :  { %7898 = vmatprep.subr.bf16.mxu1 %v11300_v40  ;;  %v11362_v36 = vld [vmem:[#allocation9 + $0x3d0] ss:$20 sps:$4 sm:$0xff]  }
 0x415   :  { %v11363_v40 = vld [vmem:[#allocation9 + $0x10] ss:$20 sps:$4 sm:$0xff]  }
 0x416   :  { %7694 = vmatpush1.bf16.msra.mxu0 %v11295_v51  ;;  %v12000_v51 = vpack.c.bf16 %v4920_v48, %v4920_v48  ;;  %v11413_v48 = vld [vmem:[#allocation9 + $0x718] ss:$20 sps:$4 sm:$0xff]  }
 0x417   :  { %7899 = vmatpush1.bf16.msra.mxu1 %v11298_v53  ;;  %7695 = vmatprep.subr.bf16.mxu0 %v11303_v55  ;;  %v11365_v53 = vld [vmem:[#allocation9 + $0x178] ss:$20 sps:$4 sm:$0xff]  }
 0x418   :  { %7900 = vmatprep.subr.bf16.mxu1 %v11306_v56  ;;  %v11366_v55 = vld [vmem:[#allocation9 + $0x3f8] ss:$20 sps:$4 sm:$0xff]  }
 0x419   :  { %v11367_v56 = vld [vmem:[#allocation9 + $0x38] ss:$20 sps:$4 sm:$0xff]  }
 0x41a   :  { %7696 = vmatpush1.bf16.msra.mxu0 %v11301_v58  ;;  %v11368_v58 = vld [vmem:[#allocation9 + $0x2b8] ss:$20 sps:$4 sm:$0xff]  }
 0x41b   :  { %7901 = vmatpush1.bf16.msra.mxu1 %v11304_v59  ;;  %7697 = vmatprep.subr.bf16.mxu0 %v11309_v60  ;;  %v11369_v59 = vld [vmem:[#allocation9 + $0x1a0] ss:$20 sps:$4 sm:$0xff]  }
 0x41c   :  { %7902 = vmatprep.subr.bf16.mxu1 %v11312_v61  ;;  %v11370_v60 = vld [vmem:[#allocation9 + $0x420] ss:$20 sps:$4 sm:$0xff]  }
 0x41d   :  { %v11371_v61 = vld [vmem:[#allocation9 + $0x60] ss:$20 sps:$4 sm:$0xff]  }
 0x41e   :  { %7698 = vmatpush1.bf16.msra.mxu0 %v11307_v39  ;;  %v11372_v39 = vld [vmem:[#allocation9 + $0x2e0] ss:$20 sps:$4 sm:$0xff]  }
 0x41f   :  { %7903 = vmatpush1.bf16.msra.mxu1 %v11310_v24  ;;  %7699 = vmatprep.subr.bf16.mxu0 %v11315_v1  ;;  %v11373_v24 = vld [vmem:[#allocation9 + $0x1c8] ss:$20 sps:$4 sm:$0xff]  }
 0x420   :  { %7904 = vmatprep.subr.bf16.mxu1 %v11318_v2  ;;  %v11374_v1 = vld [vmem:[#allocation9 + $0x448] ss:$20 sps:$4 sm:$0xff]  }
 0x421   :  { %v11375_v2 = vld [vmem:[#allocation9 + $0x88] ss:$20 sps:$4 sm:$0xff]  }
 0x422   :  { %7700 = vmatpush1.bf16.msra.mxu0 %v11313_v20  ;;  %v11377_v20 = vld [vmem:[#allocation9 + $0x1f0] ss:$20 sps:$4 sm:$0xff]  }
 0x423   :  { %7905 = vmatpush1.bf16.msra.mxu1 %v11316_v23  ;;  %7701 = vmatprep.subr.bf16.mxu0 %v11321_v7  ;;  %v11378_v23 = vld [vmem:[#allocation9 + $0x470] ss:$20 sps:$4 sm:$0xff]  }
 0x424   :  { %7906 = vmatprep.subr.bf16.mxu1 %v11324_v10  ;;  %v11380_v7 = vld [vmem:[#allocation9 + $0x330] ss:$20 sps:$4 sm:$0xff]   ;;  %v11381_v10 = vld [vmem:[#allocation9 + $0x218] ss:$20 sps:$4 sm:$0xff]  }
 0x426   :  { %7702 = vmatpush1.bf16.msra.mxu0 %v11319_v26  ;;  %v11382_v26 = vld [vmem:[#allocation9 + $0x498] ss:$20 sps:$4 sm:$0xff]  }
 0x427   :  { %7907 = vmatpush1.bf16.msra.mxu1 %v11322_v30  ;;  %7703 = vmatprep.subr.bf16.mxu0 %v11327_v14  ;;  %v11383_v30 = vld [vmem:[#allocation9 + $0xd8] ss:$20 sps:$4 sm:$0xff]  }
 0x428   :  { %7908 = vmatprep.subr.bf16.mxu1 %v11330_v6  ;;  %v11384_v14 = vld [vmem:[#allocation9 + $0x358] ss:$20 sps:$4 sm:$0xff]   ;;  %v11385_v6 = vld [vmem:[#allocation9 + $0x240] ss:$20 sps:$4 sm:$0xff]  }
 0x42a   :  { %7704 = vmatpush1.bf16.msra.mxu0 %v11325_v17  ;;  %v11386_v17 = vld [vmem:[#allocation9 + $0x4c0] ss:$20 sps:$4 sm:$0xff]  }
 0x42b   :  { %7909 = vmatpush1.bf16.msra.mxu1 %v11328_v15  ;;  %7705 = vmatprep.subr.bf16.mxu0 %v11333_v16  ;;  %v11387_v15 = vld [vmem:[#allocation9 + $0x100] ss:$20 sps:$4 sm:$0xff]  }
 0x42c   :  { %7910 = vmatprep.subr.bf16.mxu1 %v11336_v18  ;;  %v11388_v16 = vld [vmem:[#allocation9 + $0x380] ss:$20 sps:$4 sm:$0xff]   ;;  %v11389_v18 = vld [vmem:[#allocation9 + $0x268] ss:$20 sps:$4 sm:$0xff]  }
 0x42e   :  { %7706 = vmatpush1.bf16.msra.mxu0 %v11331_v19  ;;  %v11390_v19 = vld [vmem:[#allocation9 + $0x4e8] ss:$20 sps:$4 sm:$0xff]  }
 0x42f   :  { %7911 = vmatpush1.bf16.msra.mxu1 %v11334_v21  ;;  %7707 = vmatprep.subr.bf16.mxu0 %v11339_v25  ;;  %v11391_v21 = vld [vmem:[#allocation9 + $0x128] ss:$20 sps:$4 sm:$0xff]  }
 0x430   :  { %7912 = vmatprep.subr.bf16.mxu1 %v11342_v4  ;;  %v11392_v25 = vld [vmem:[#allocation9 + $0x3a8] ss:$20 sps:$4 sm:$0xff]   ;;  %v11393_v4 = vld [vmem:[#allocation9 + $0x650] ss:$20 sps:$4 sm:$0xff]  }
 0x432   :  { %7708 = vmatpush1.bf16.msra.mxu0 %v11337_v37  ;;  %v11394_v37 = vld [vmem:[#allocation9 + $0x8d0] ss:$20 sps:$4 sm:$0xff]  }
 0x433   :  { %7913 = vmatpush1.bf16.msra.mxu1 %v11340_v54  ;;  %7709 = vmatprep.subr.bf16.mxu0 %v11345_v32  ;;  %v11395_v54 = vld [vmem:[#allocation9 + $0x510] ss:$20 sps:$4 sm:$0xff]  }
 0x434   :  { %7914 = vmatprep.subr.bf16.mxu1 %v11348_v52  ;;  %v11396_v32 = vld [vmem:[#allocation9 + $0x790] ss:$20 sps:$4 sm:$0xff]   ;;  %v11397_v52 = vld [vmem:[#allocation9 + $0x678] ss:$20 sps:$4 sm:$0xff]  }
 0x436   :  { %7710 = vmatpush1.bf16.msra.mxu0 %v11343_v42  ;;  %v11398_v42 = vld [vmem:[#allocation9 + $0x8f8] ss:$20 sps:$4 sm:$0xff]  }
 0x437   :  { %7915 = vmatpush1.bf16.msra.mxu1 %v11346_v33  ;;  %7711 = vmatprep.subr.bf16.mxu0 %v11351_v34  ;;  %v11400_v33 = vld [vmem:[#allocation9 + $0x7b8] ss:$20 sps:$4 sm:$0xff]   ;;  %v11401_v34 = vld [vmem:[#allocation9 + $0x6a0] ss:$20 sps:$4 sm:$0xff]  }
 0x438   :  { %7916 = vmatprep.subr.bf16.mxu1 %v11354_v44  ;;  %v11402_v44 = vld [vmem:[#allocation9 + $0x920] ss:$20 sps:$4 sm:$0xff]  }
 0x43a   :  { %7712 = vmatpush1.bf16.msra.mxu0 %v11349_v11  ;;  %v11403_v11 = vld [vmem:[#allocation9 + $0x560] ss:$20 sps:$4 sm:$0xff]  }
 0x43b   :  { %7917 = vmatpush1.bf16.msra.mxu1 %v11352_v45  ;;  %7713 = vmatprep.subr.bf16.mxu0 %v11357_v5  ;;  %v11407_v45 = vld [vmem:[#allocation9 + $0x588] ss:$20 sps:$4 sm:$0xff]   ;;  %v11409_v5 = vld [vmem:[#allocation9 + $0x6f0] ss:$20 sps:$4 sm:$0xff]  }
 0x43c   :  { %7918 = vmatprep.subr.bf16.mxu1 %v11360_v46  ;;  %v11410_v46 = vld [vmem:[#allocation9 + $0x970] ss:$20 sps:$4 sm:$0xff]  }
 0x43e   :  { %7714 = vmatpush1.bf16.msra.mxu0 %v11355_v47  ;;  %v11412_v47 = vld [vmem:[#allocation9 + $0x830] ss:$20 sps:$4 sm:$0xff]  }
 0x43f   :  { %7919 = vmatpush1.bf16.msra.mxu1 %v11358_v62  ;;  %9686 = vmatprep.subr.bf16.mxu0 %v11361_v50  ;;  %v11414_v62 = vld [vmem:[#allocation9 + $0x998] ss:$20 sps:$4 sm:$0xff]  }
 0x440   :  { %9708 = vmatprep.subr.bf16.mxu1 %v11362_v36  ;;  %v11415_v50 = vld [vmem:[#allocation9 + $0x5d8] ss:$20 sps:$4 sm:$0xff]  }
 0x441   :  { %7716 = vmatmul.mubr.bf16.vlgmr.msra.gmra.mrb[40].mxu0 %v12000_v51  ;;  %v11416_v36 = vld [vmem:[#allocation9 + $0x858] ss:$20 sps:$4 sm:$0xff]  }
 0x442   :  { %7921 = vmatmul.mubr.bf16.vlgmr.msra.gmra.mrb[40].mxu1 %v12000_v51  ;;  %9687 = vmatpush3.bf16.msra.mxu0 %v11363_v40  ;;  %v11417_v40 = vld [vmem:[#allocation9 + $0x740] ss:$20 sps:$4 sm:$0xff]  }
 0x443   :  { %7961 = vmatprep.mubr.bf16.mxu0 %v11902_v43  ;;  %9709 = vmatpush3.bf16.msra.mxu1 %v11364_v22  ;;  %v11376_v43 = vld [vmem:[#allocation9 + $0x308] ss:$20 sps:$4 sm:$0xff]   ;;  %v11418_v22 = vld [vmem:[#allocation9 + $0x9c0] ss:$20 sps:$4 sm:$0xff]  }
 0x444   :  { %8001 = vmatprep.mubr.bf16.mxu1 %v11925_v29  ;;  %9688 = vmatprep.subr.bf16.mxu0 %v11365_v53  ;;  %v11379_v29 = vld [vmem:[#allocation9 + $0xb0] ss:$20 sps:$4 sm:$0xff]   ;;  %v11419_v53 = vld [vmem:[#allocation9 + $0x600] ss:$20 sps:$4 sm:$0xff]  }
 0x445   :  { %9710 = vmatprep.subr.bf16.mxu1 %v11366_v55  ;;  %v11420_v55 = vld [vmem:[#allocation9 + $0x880] ss:$20 sps:$4 sm:$0xff]  }
 0x446   :  { %9689 = vmatpush3.bf16.msra.mxu0 %v11367_v56  ;;  %v11421_v56 = vld [vmem:[#allocation9 + $0x768] ss:$20 sps:$4 sm:$0xff]  }
 0x447   :  { %9711 = vmatpush3.bf16.msra.mxu1 %v11368_v58  ;;  %9690 = vmatprep.subr.bf16.mxu0 %v11369_v59  ;;  %v11422_v58 = vld [vmem:[#allocation9 + $0x9e8] ss:$20 sps:$4 sm:$0xff]  }
 0x448   :  { %9712 = vmatprep.subr.bf16.mxu1 %v11370_v60  ;;  %v11423_v59 = vld [vmem:[#allocation9 + $0x628] ss:$20 sps:$4 sm:$0xff]  }
 0x449   :  { %v11424_v60 = vld [vmem:[#allocation9 + $0x8a8] ss:$20 sps:$4 sm:$0xff]  }
 0x44a   :  { %9691 = vmatpush3.bf16.msra.mxu0 %v11371_v61  ;;  %v11425_v61 = vld [vmem:[#allocation9 + $0xb50] ss:$20 sps:$4 sm:$0xff]  }
 0x44b   :  { %9713 = vmatpush3.bf16.msra.mxu1 %v11372_v39  ;;  %9692 = vmatprep.subr.bf16.mxu0 %v11373_v24  ;;  %v11441_v39 = vld [vmem:[#allocation12 + $0x40] sm:$0xff]  }
 0x44c   :  { %9714 = vmatprep.subr.bf16.mxu1 %v11374_v1  ;;  %v11426_v24 = vld [vmem:[#allocation9 + $0xa10] ss:$20 sps:$4 sm:$0xff]   ;;  %v11427_v1 = vld [vmem:[#allocation9 + $0xb78] ss:$20 sps:$4 sm:$0xff]  }
 0x44e   :  { %9693 = vmatpush3.bf16.msra.mxu0 %v11375_v2  ;;  %v11443_v2 = vld [vmem:[#allocation12] sm:$0xff]  }
 0x44f   :  { %9715 = vmatpush3.bf16.msra.mxu1 %v11376_v43  ;;  %9694 = vmatprep.subr.bf16.mxu0 %v11377_v20  ;;  %v11445_v43 = vld [vmem:[#allocation12 + $0x48] sm:$0xff]  }
 0x450   :  { %9716 = vmatprep.subr.bf16.mxu1 %v11378_v23  ;;  %v11428_v20 = vld [vmem:[#allocation9 + $0xa38] ss:$20 sps:$4 sm:$0xff]   ;;  %v11429_v23 = vld [vmem:[#allocation9 + $0xba0] ss:$20 sps:$4 sm:$0xff]  }
 0x452   :  { %9695 = vmatpush3.bf16.msra.mxu0 %v11379_v29  ;;  %v11447_v29 = vld [vmem:[#allocation12 + $0x8] sm:$0xff]  }
 0x453   :  { %9717 = vmatpush3.bf16.msra.mxu1 %v11380_v7  ;;  %9696 = vmatprep.subr.bf16.mxu0 %v11381_v10  ;;  %v11449_v7 = vld [vmem:[#allocation12 + $0x50] sm:$0xff]  }
 0x454   :  { %9718 = vmatprep.subr.bf16.mxu1 %v11382_v26  ;;  %v11430_v10 = vld [vmem:[#allocation9 + $0xa60] ss:$20 sps:$4 sm:$0xff]   ;;  %v11431_v26 = vld [vmem:[#allocation9 + $0xbc8] ss:$20 sps:$4 sm:$0xff]  }
 0x456   :  { %9697 = vmatpush3.bf16.msra.mxu0 %v11383_v30  ;;  %v11451_v30 = vld [vmem:[#allocation12 + $0x10] sm:$0xff]  }
 0x457   :  { %9719 = vmatpush3.bf16.msra.mxu1 %v11384_v14  ;;  %9698 = vmatprep.subr.bf16.mxu0 %v11385_v6  ;;  %v11433_v14 = vld [vmem:[#allocation9 + $0xbf0] ss:$20 sps:$4 sm:$0xff]  }
 0x458   :  { %9720 = vmatprep.subr.bf16.mxu1 %v11386_v17  ;;  %v11457_v6 = vld [vmem:[#allocation12 + $0x60] sm:$0xff]  }
 0x459   :  { %v11434_v17 = vld [vmem:[#allocation9 + $0xab0] ss:$20 sps:$4 sm:$0xff]  }
 0x45a   :  { %9699 = vmatpush3.bf16.msra.mxu0 %v11387_v15  ;;  %v11435_v15 = vld [vmem:[#allocation9 + $0xc18] ss:$20 sps:$4 sm:$0xff]  }
 0x45b   :  { %9721 = vmatpush3.bf16.msra.mxu1 %v11388_v16  ;;  %9700 = vmatprep.subr.bf16.mxu0 %v11389_v18  ;;  %v11459_v16 = vld [vmem:[#allocation12 + $0x20] sm:$0xff]   ;;  %v11461_v18 = vld [vmem:[#allocation12 + $0x68] sm:$0xff]  }
 0x45c   :  { %9722 = vmatprep.subr.bf16.mxu1 %v11390_v19  ;;  %v11436_v19 = vld [vmem:[#allocation9 + $0xad8] ss:$20 sps:$4 sm:$0xff]  }
 0x45e   :  { %9701 = vmatpush3.bf16.msra.mxu0 %v11391_v21  ;;  %v11437_v21 = vld [vmem:[#allocation9 + $0xc40] ss:$20 sps:$4 sm:$0xff]  }
 0x45f   :  { %9723 = vmatpush3.bf16.msra.mxu1 %v11392_v25  ;;  %9730 = vmatprep.subr.bf16.mxu0 %v11393_v4  ;;  %v11463_v25 = vld [vmem:[#allocation12 + $0x28] sm:$0xff]   ;;  %v11465_v4 = vld [vmem:[#allocation12 + $0x70] sm:$0xff]  }
 0x460   :  { %9752 = vmatprep.subr.bf16.mxu1 %v11394_v37  ;;  %v11438_v37 = vld [vmem:[#allocation9 + $0xb00] ss:$20 sps:$4 sm:$0xff]  }
 0x461   :  { %7962 = vmatmul.mubr.bf16.vlgmr.msra.gmra.mrb[44].mxu0 %v11923_v28  ;;  %v11404_v28 = vld [vmem:[#allocation9 + $0x7e0] ss:$20 sps:$4 sm:$0xff]  }
 0x462   :  { %8002 = vmatmul.mubr.bf16.vlgmr.msra.gmra.mrb[44].mxu1 %v11945_v0  ;;  %9731 = vmatpush3.bf16.msra.mxu0 %v11395_v54  ;;  %v11406_v0 = vld [vmem:[#allocation9 + $0x948] ss:$20 sps:$4 sm:$0xff]  }
 0x463   :  { %8041 = vmatprep.mubr.bf16.mxu0 %v11947_v13  ;;  %9753 = vmatpush3.bf16.msra.mxu1 %v11396_v32  ;;  %v11408_v13 = vld [vmem:[#allocation9 + $0x808] ss:$20 sps:$4 sm:$0xff]  }
 0x464   :  { %8081 = vmatprep.mubr.bf16.mxu1 %v11969_v12  ;;  %9732 = vmatprep.subr.bf16.mxu0 %v11397_v52  ;;  %v11411_v12 = vld [vmem:[#allocation9 + $0x5b0] ss:$20 sps:$4 sm:$0xff]   ;;  %v11439_v54 = vld [vmem:[#allocation9 + $0xc68] ss:$20 sps:$4 sm:$0xff]  }
 0x465   :  { %9754 = vmatprep.subr.bf16.mxu1 %v11398_v42  ;;  %v11467_v32 = vld [vmem:[#allocation12 + $0x30] sm:$0xff]   ;;  %v11469_v52 = vld [vmem:[#allocation12 + $0x78] sm:$0xff]  }
 0x466   :  { %9733 = vmatpush3.bf16.msra.mxu0 %v11399_v57  ;;  %v11440_v42 = vld [vmem:[#allocation9 + $0xb28] ss:$20 sps:$4 sm:$0xff]  }
 0x467   :  { %9755 = vmatpush3.bf16.msra.mxu1 %v11400_v33  ;;  %9734 = vmatprep.subr.bf16.mxu0 %v11401_v34  ;;  %v11442_v57 = vld [vmem:[#allocation12 + $0xc0] sm:$0xff]   ;;  %v11471_v33 = vld [vmem:[#allocation12 + $0x38] sm:$0xff]  }
 0x468   :  { %9756 = vmatprep.subr.bf16.mxu1 %v11402_v44  ;;  %v11444_v34 = vld [vmem:[#allocation12 + $0x80] sm:$0xff]   ;;  %v11446_v44 = vld [vmem:[#allocation12 + $0xc8] sm:$0xff]  }
 0x46a   :  { %9735 = vmatpush3.bf16.msra.mxu0 %v11403_v11  ;;  %v11448_v11 = vld [vmem:[#allocation12 + $0x88] sm:$0xff]  }
 0x46b   :  { %9757 = vmatpush3.bf16.msra.mxu1 %v11404_v28  ;;  %9736 = vmatprep.subr.bf16.mxu0 %v11405_v8  ;;  %v11450_v28 = vld [vmem:[#allocation12 + $0xd0] sm:$0xff]  }
 0x46c   :  { %9758 = vmatprep.subr.bf16.mxu1 %v11406_v0  ;;  %v11452_v8 = vld [vmem:[#allocation12 + $0x90] sm:$0xff]   ;;  %v11454_v0 = vld [vmem:[#allocation12 + $0xd8] sm:$0xff]  }
 0x46e   :  { %9737 = vmatpush3.bf16.msra.mxu0 %v11407_v45  ;;  %v11456_v45 = vld [vmem:[#allocation12 + $0x98] sm:$0xff]  }
 0x46f   :  { %9759 = vmatpush3.bf16.msra.mxu1 %v11408_v13  ;;  %9738 = vmatprep.subr.bf16.mxu0 %v11409_v5  ;;  %v11458_v13 = vld [vmem:[#allocation12 + $0xe0] sm:$0xff]  }
 0x470   :  { %9760 = vmatprep.subr.bf16.mxu1 %v11410_v46  ;;  %v11460_v5 = vld [vmem:[#allocation12 + $0xa0] sm:$0xff]   ;;  %v11462_v46 = vld [vmem:[#allocation12 + $0xe8] sm:$0xff]  }
 0x472   :  { %9739 = vmatpush3.bf16.msra.mxu0 %v11411_v12  ;;  %v11464_v12 = vld [vmem:[#allocation12 + $0xa8] sm:$0xff]  }
 0x473   :  { %9761 = vmatpush3.bf16.msra.mxu1 %v11412_v47  ;;  %9740 = vmatprep.subr.bf16.mxu0 %v11413_v48  ;;  %v11468_v47 = vld [vmem:[#allocation12 + $0xb0] sm:$0xff]   ;;  %v11470_v48 = vld [vmem:[#allocation12 + $0xf8] sm:$0xff]  }
 0x474   :  { %9762 = vmatprep.subr.bf16.mxu1 %v11414_v62  ;;  %v11472_v62 = vld [vmem:[#allocation12 + $0xb8] sm:$0xff]  }
 0x476   :  { %9741 = vmatpush3.bf16.msra.mxu0 %v11415_v50  ;;  %v11681_v50 = vmov 0.0  }
 0x477   :  { %9763 = vmatpush3.bf16.msra.mxu1 %v11416_v36  ;;  %9742 = vmatprep.subr.bf16.mxu0 %v11417_v40  ;;  %v5412_v36 = vld [vmem:[#allocation11] sm:$0x1f] }
 0x478   :  { %9764 = vmatprep.subr.bf16.mxu1 %v11418_v22  ;;  %v5417_v40 = vrot.slane %v5412_v36, %v11913_v63  ;;  %v5425_v22 = vrot.slane %v5412_v36, %v4862_v35 }
 0x47a   :  { %9743 = vmatpush3.bf16.msra.mxu0 %v11419_v53  ;;  %v5421_v53 = vrot.slane %v5412_v36, %v11897_v41 }
 0x47b   :  { %9765 = vmatpush3.bf16.msra.mxu1 %v11420_v55  ;;  %9744 = vmatprep.subr.bf16.mxu0 %v11421_v56  ;;  %v5429_v55 = vrot.slane %v5412_v36, %v4866_v3 }
 0x47c   :  { %9766 = vmatprep.subr.bf16.mxu1 %v11422_v58 }
 0x47e   :  { %9745 = vmatpush3.bf16.msra.mxu0 %v11423_v59 }
 0x47f   :  { %9767 = vmatpush3.bf16.msra.mxu1 %v11424_v60  ;;  %9774 = vmatprep.subr.bf16.mxu0 %v11425_v61 }
 0x480   :  { %9796 = vmatprep.subr.bf16.mxu1 %v11441_v39 }
 0x481   :  { %8042 = vmatmul.mubr.bf16.vlgmr.msra.gmra.mrb[48].mxu0 %v11967_v9  ;;  %v11453_v9 = vld [vmem:[#allocation12 + $0x58] sm:$0xff]  }
 0x482   :  { %8082 = vmatmul.mubr.bf16.vlgmr.msra.gmra.mrb[48].mxu1 %v11989_v27  ;;  %9775 = vmatpush3.bf16.msra.mxu0 %v11426_v24  ;;  %v11432_v27 = vld [vmem:[#allocation9 + $0xa88] ss:$20 sps:$4 sm:$0xff]  }
 0x483   :  { %8121 = vmatprep.mubr.bf16.mxu0 %v11991_v49  ;;  %9776 = vmatprep.subr.bf16.mxu0 %v11427_v1  ;;  %v11455_v49 = vld [vmem:[#allocation12 + $0x18] sm:$0xff]  }
 0x484   :  { %9797 = vmatpush3.bf16.msra.mxu1 %v11443_v2 }
 0x485   :  { %9798 = vmatprep.subr.bf16.mxu1 %v11445_v43 }
 0x486   :  { %9777 = vmatpush3.bf16.msra.mxu0 %v11428_v20 }
 0x487   :  { %9778 = vmatprep.subr.bf16.mxu0 %v11429_v23 }
 0x488   :  { %9799 = vmatpush3.bf16.msra.mxu1 %v11447_v29 }
 0x489   :  { %9800 = vmatprep.subr.bf16.mxu1 %v11449_v7 }
 0x48a   :  { %9779 = vmatpush3.bf16.msra.mxu0 %v11430_v10  ;;  %v11473_v10 = vld [vmem:[#allocation12 + $0x100] sm:$0xff]  }
 0x48b   :  { %9780 = vmatprep.subr.bf16.mxu0 %v11431_v26 }
 0x48c   :  { %9801 = vmatpush3.bf16.msra.mxu1 %v11451_v30 }
 0x48d   :  { %9802 = vmatprep.subr.bf16.mxu1 %v11453_v9  ;;  %v11474_v9 = vld [vmem:[#allocation12 + $0x108] sm:$0xff]  }
 0x48e   :  { %9781 = vmatpush3.bf16.msra.mxu0 %v11432_v27  ;;  %v11475_v27 = vld [vmem:[#allocation12 + $0x110] sm:$0xff]  }
 0x48f   :  { %9782 = vmatprep.subr.bf16.mxu0 %v11433_v14  ;;  %v11476_v14 = vld [vmem:[#allocation12 + $0x118] sm:$0xff]  }
 0x490   :  { %9803 = vmatpush3.bf16.msra.mxu1 %v11455_v49  ;;  %v11477_v49 = vld [vmem:[#allocation12 + $0x120] sm:$0xff]  }
 0x491   :  { %9804 = vmatprep.subr.bf16.mxu1 %v11457_v6  ;;  %v11478_v6 = vld [vmem:[#allocation12 + $0x128] sm:$0xff]  }
 0x492   :  { %9783 = vmatpush3.bf16.msra.mxu0 %v11434_v17  ;;  %v11479_v17 = vld [vmem:[#allocation12 + $0x130] sm:$0xff]  }
 0x493   :  { %9784 = vmatprep.subr.bf16.mxu0 %v11435_v15 }
 0x494   :  { %9805 = vmatpush3.bf16.msra.mxu1 %v11459_v16  ;;  %v5433_v16 = vrot.slane %v5412_v36, %v4870_v38 }
 0x495   :  { %9806 = vmatprep.subr.bf16.mxu1 %v11461_v18 }
 0x496   :  { %9785 = vmatpush3.bf16.msra.mxu0 %v11436_v19 }
 0x497   :  { %9786 = vmatprep.subr.bf16.mxu0 %v11437_v21 }
 0x498   :  { %9807 = vmatpush3.bf16.msra.mxu1 %v11463_v25 }
 0x499   :  { %9808 = vmatprep.subr.bf16.mxu1 %v11465_v4 }
 0x49a   :  { %9787 = vmatpush3.bf16.msra.mxu0 %v11438_v37  ;;  %v11480_v37 = vld [vmem:[#allocation12 + $0x138] sm:$0xff]  }
 0x49b   :  { %9788 = vmatprep.subr.bf16.mxu0 %v11439_v54 }
 0x49c   :  { %9809 = vmatpush3.bf16.msra.mxu1 %v11467_v32 }
 0x49d   :  { %9810 = vmatprep.subr.bf16.mxu1 %v11469_v52 }
 0x49e   :  { %9789 = vmatpush3.bf16.msra.mxu0 %v11440_v42 }
 0x49f   :  { %9818 = vmatprep.subr.bf16.mxu0 %v11442_v57 }
 0x4a0   :  { %9811 = vmatpush3.bf16.msra.mxu1 %v11471_v33 }
 0x4a1   :  { %8122 = vmatmul.mubr.bf16.vlgmr.msra.gmra.mrb[52].mxu0 %v12000_v51  ;;  %v11466_v51 = vld [vmem:[#allocation12 + $0xf0] sm:$0xff]   ;;  %9849 = vmatprep.subr.bf16.mxu1 %v11681_v50 }
 0x4a2   :  { %9819 = vmatpush3.bf16.msra.mxu0 %v11444_v34 }
 0x4a3   :  { %9820 = vmatprep.subr.bf16.mxu0 %v11446_v44 }
 0x4a6   :  { %9821 = vmatpush3.bf16.msra.mxu0 %v11448_v11 }
 0x4a7   :  { %9822 = vmatprep.subr.bf16.mxu0 %v11450_v28 }
 0x4aa   :  { %9823 = vmatpush3.bf16.msra.mxu0 %v11452_v8 }
 0x4ab   :  { %9824 = vmatprep.subr.bf16.mxu0 %v11454_v0 }
 0x4ae   :  { %9825 = vmatpush3.bf16.msra.mxu0 %v11456_v45 }
 0x4af   :  { %9826 = vmatprep.subr.bf16.mxu0 %v11458_v13 }
 0x4b2   :  { %9827 = vmatpush3.bf16.msra.mxu0 %v11460_v5 }
 0x4b3   :  { %9828 = vmatprep.subr.bf16.mxu0 %v11462_v46 }
 0x4b6   :  { %9829 = vmatpush3.bf16.msra.mxu0 %v11464_v12 }
 0x4b7   :  { %9830 = vmatprep.subr.bf16.mxu0 %v11466_v51 }
 0x4ba   :  { %9831 = vmatpush3.bf16.msra.mxu0 %v11468_v47 }
 0x4bb   :  { %9832 = vmatprep.subr.bf16.mxu0 %v11470_v48 }
 0x4be   :  { %9833 = vmatpush3.bf16.msra.mxu0 %v11472_v62 }
 0x514   :  { %v7717_v56 = vpop.f32.mrb[40].mxu0 }
 0x515   :  { %v9869_v58 = vadd.f32 %v7717_v56, %v5417_v40  ;;  %v7922_v59 = vpop.f32.mrb[40].mxu1  ;;  %v7719_v60 = vpop.f32.mrb[41].mxu0 }
 0x516   :  { %v9871_v61 = vadd.f32 %v7922_v59, %v5425_v22  ;;  %v9870_v39 = vadd.f32 %v7719_v60, %v5421_v53  ;;  %v7924_v24 = vpop.f32.mrb[41].mxu1  ;;  %v7721_v1 = vpop.f32.mrb[42].mxu0 }
 0x517   :  { %v8129_v2 = vmax.f32 %v9869_v58, 0.0  ;;  %v9872_v43 = vadd.f32 %v7924_v24, %v5429_v55  ;;  %v7926_v20 = vpop.f32.mrb[42].mxu1  ;;  %v7722_v63 = vpop.f32.mrb[43].mxu0  ;;  %v9645_v55 = vld [vmem:[#allocation14] ss:$0 sm:$0xff] }
 0x518   :  { %v8131_v23 = vmax.f32 %v9871_v61, 0.0  ;;  %v8130_v29 = vmax.f32 %v9870_v39, 0.0  ;;  %v7927_v35 = vpop.f32.mrb[43].mxu1 }
 0x519   :  { %v8132_v7 = vmax.f32 %v9872_v43, 0.0  ;;  %v8134_v26 = vpack.c.bf16 %v8129_v2, %v8129_v2 }
 0x51a   :  { %v8135_v41 = vpack.c.bf16 %v8130_v29, %v8130_v29  ;;  %v8136_v30 = vpack.c.bf16 %v8131_v23, %v8131_v23 }
 0x51b   :  { %v8137_v3 = vpack.c.bf16 %v8132_v7, %v8132_v7 }
 0x51c   :  { %8498 = vmatprep.mubr.bf16.mxu1 %v8135_v41 }
 0x51d   :  { %8538 = vmatprep.mubr.bf16.mxu0 %v8137_v3  ;;  %8499 = vmatmul.mubr.bf16.vlgmr.msra.gmra.mrb[52].mxu1 %v8134_v26 }
 0x51e   :  { %8539 = vmatmul.mubr.bf16.vlgmr.msra.gmra.mrb[56].mxu0 %v8136_v30  ;;  %9850 = vmatpush3.bf16.msra.mxu1 %v11473_v10 }
 0x51f   :  { %9851 = vmatprep.subr.bf16.mxu1 %v11681_v50  ;;  %9865 = vmatprep.mubr.msk.bf16.mxu1 %vm11682_vm0, %v11681_v50 }
 0x522   :  { %9852 = vmatpush3.bf16.msra.mxu1 %v11474_v9 }
 0x523   :  { %9853 = vmatprep.subr.bf16.mxu1 %v11681_v50 }
 0x526   :  { %9854 = vmatpush3.bf16.msra.mxu1 %v11475_v27 }
 0x527   :  { %9855 = vmatprep.subr.bf16.mxu1 %v11681_v50 }
 0x52a   :  { %9856 = vmatpush3.bf16.msra.mxu1 %v11476_v14 }
 0x52b   :  { %9857 = vmatprep.subr.bf16.mxu1 %v11681_v50 }
 0x52e   :  { %9858 = vmatpush3.bf16.msra.mxu1 %v11477_v49 }
 0x52f   :  { %9859 = vmatprep.subr.bf16.mxu1 %v11681_v50 }
 0x532   :  { %9860 = vmatpush3.bf16.msra.mxu1 %v11478_v6 }
 0x533   :  { %9861 = vmatprep.subr.bf16.mxu1 %v11681_v50 }
 0x534   :  { %v9702_v15 = vpop.f32.mrb[44].mxu0 }
 0x535   :  { %v9724_v18 = vpop.f32.mrb[44].mxu1  ;;  %v9703_v19 = vpop.f32.mrb[45].mxu0 }
 0x536   :  { %v9704_v21 = vadd.f32 %v9703_v19, %v9702_v15  ;;  %v9725_v25 = vpop.f32.mrb[45].mxu1  ;;  %v9705_v4 = vpop.f32.mrb[46].mxu0  ;;  %9862 = vmatpush3.bf16.msra.mxu1 %v11479_v17 }
 0x537   :  { %v9726_v54 = vadd.f32 %v9725_v25, %v9724_v18  ;;  %v9727_v32 = vpop.f32.mrb[46].mxu1  ;;  %v9706_v52 = vpop.f32.mrb[47].mxu0  ;;  %9863 = vmatprep.subr.bf16.mxu1 %v11681_v50 }
 0x538   :  { %v7964_v42 = vadd.f32 %v9704_v21, %v5433_v16  ;;  %v9728_v57 = vpop.f32.mrb[47].mxu1 }
 0x53a   :  { %v8004_v33 = vadd.f32 %v9726_v54, %v7964_v42  ;;  %9864 = vmatpush3.bf16.msra.mxu1 %v11480_v37 }
 0x554   :  { %v9746_v34 = vpop.f32.mrb[48].mxu0 }
 0x555   :  { %v9768_v44 = vpop.f32.mrb[48].mxu1  ;;  %v9747_v31 = vpop.f32.mrb[49].mxu0 }
 0x556   :  { %v9748_v38 = vadd.f32 %v9747_v31, %v9746_v34  ;;  %v9769_v11 = vpop.f32.mrb[49].mxu1  ;;  %v9749_v28 = vpop.f32.mrb[50].mxu0 }
 0x557   :  { %v9770_v8 = vadd.f32 %v9769_v11, %v9768_v44  ;;  %v9771_v0 = vpop.f32.mrb[50].mxu1  ;;  %v9750_v45 = vpop.f32.mrb[51].mxu0 }
 0x558   :  { %v8044_v13 = vadd.f32 %v9748_v38, %v8004_v33  ;;  %v9772_v5 = vpop.f32.mrb[51].mxu1 }
 0x55a   :  { %v8084_v46 = vadd.f32 %v9770_v8, %v8044_v13 }
 0x574   :  { %v9790_v12 = vpop.f32.mrb[52].mxu0 }
 0x575   :  { %v9791_v51 = vpop.f32.mrb[53].mxu0 }
 0x576   :  { %v9792_v47 = vadd.f32 %v9791_v51, %v9790_v12  ;;  %v9793_v48 = vpop.f32.mrb[54].mxu0 }
 0x577   :  { %v9794_v62 = vpop.f32.mrb[55].mxu0 }
 0x578   :  { %v8124_v50 = vadd.f32 %v9792_v47, %v8084_v46 }
 0x57a   :  { %v8133_v36 = vmax.f32 %v8124_v50, 0.0 }
 0x57c   :  { %v8138_v40 = vpack.c.bf16 %v8133_v36, %v8133_v36 }
 0x57e   :  { %9866 = vmatmul.mubr.bf16.vlgmr.msra.gmra.mrb[56].mxu1 %v8138_v40 }
 0x5f0   :  { %v9812_v22 = vpop.f32.mrb[52].mxu1 }
 0x5f1   :  { %v9834_v53 = vpop.f32.mrb[56].mxu0  ;;  %v9813_v56 = vpop.f32.mrb[53].mxu1 }
 0x5f2   :  { %v9814_v58 = vadd.f32 %v9813_v56, %v9812_v22  ;;  %v9835_v59 = vpop.f32.mrb[57].mxu0  ;;  %v9815_v60 = vpop.f32.mrb[54].mxu1 }
 0x5f3   :  { %v9836_v61 = vadd.f32 %v9835_v59, %v9834_v53  ;;  %v9837_v39 = vpop.f32.mrb[58].mxu0  ;;  %v9816_v24 = vpop.f32.mrb[55].mxu1 }
 0x5f4   :  { %v8501_v1 = vadd.f32 %v9814_v58, %v9645_v55  ;;  %v9838_v2 = vpop.f32.mrb[59].mxu0 }
 0x5f6   :  { %v8541_v43 = vadd.f32 %v9836_v61, %v8501_v1 }
 0x651   :  { %v8580_v20 = vpop.f32.mrb[56].mxu1 }
 0x652   :  { %v8581_v63 = vadd.f32 %v8580_v20, %v8541_v43  ;;  %v9867_v23 = vpop.f32.mrb[57].mxu1 }
 0x653   :  { %v8583_v29 = vpop.f32.mrb[58].mxu1 }
 0x654   :  { %8586 = vst [vmem:[#allocation15] sm:$0xff] %v8581_v63  ;;  %v9868_v35 = vpop.f32.mrb[59].mxu1 }
 0x655   :  { %11647 = shalt.err (!%p11644_p4)
}
 0x656   :  { %s11648_s16 = scalar_lea.hbm %s12050_s7, 128 }
 0x657   :  { %p11649_p5 = scmp.ne.s32.totalorder %s12050_s7, %s11648_s16  ;;  %p11652_p6 = scmp.lt.u32.totalorder %s11648_s16, %s12050_s7 }
 0x659   :  { %p11654_p7 = pnand %p11652_p6, %p11649_p5 }
 0x65b   :  { %11657 = shalt.err (!%p11654_p7)
}
 0x65c   :  { %8596 = dma.vmem_to_hbm [thread:$0]  %s8594_s14, 128, %s12050_s7, [#allocation5]  }
 0x65d   :  { %11666 = dma.done.wait [#allocation5], 128  }
 0x65e   :  { %11667 = vsyncadd [#allocation5], 4294967168 }
 0x65f   :  { %8600 = vsyncpa [#allocation4], 1 }
 0x660   :  { %8601 = vsyncpa [#allocation7], 1 }
 0x661   :  { %8602 = vsyncpa [#allocation10], 1 }
 0x662   :  { %8603 = vsyncpa [#allocation13], 1 }
 0x663   :  { %8604 = vsyncpa [#allocation5], 1 }

</bundles_post_ra>
